<compile_context>
chip_gen: v6e
topology: v6e:2x2x1
jax: 0.10.0
libtpu: 0.0.40
codegen_flags: <defaults>
</compile_context>

<pallas_src>
import math
import numpy as np
import jax
import jax.numpy as jnp
from jax.experimental import pallas as pl
from jax.experimental.pallas import tpu as pltpu

_LN_EPS = 1e-5  # torch.nn.LayerNorm default


def _layernorm(x, w, b):
    mu = jnp.mean(x, axis=-1, keepdims=True)
    var = jnp.mean((x - mu) ** 2, axis=-1, keepdims=True)
    return (x - mu) * jax.lax.rsqrt(var + _LN_EPS) * w + b


def _gelu_tanh(x):
    c = math.sqrt(2.0 / math.pi)
    return 0.5 * x * (1.0 + jnp.tanh(c * (x + 0.044715 * x * x * x)))


# ----------------------------- fused Pallas kernel -------------------------- #

def _fused_kernel(x_ref, pe_ref, w_in_ref, b_in_ref, hn_ref, w_out_ref,
                  b_out_ref, wqkv_ref, bqkv_ref, wo_ref, wp_ref, bp_ref,
                  wg_ref, bg_ref, wfcs_ref, wfg_ref, vec_ref,
                  o_ref, h_ref):
    l = pl.program_id(1)
    n_layers = pl.num_programs(1)

    bblk = o_ref.shape[0]                    # batch elements per grid step
    bs, d = h_ref.shape                      # (batch_block*S, D)
    seq = bs // bblk
    nhead, hd, _ = wo_ref.shape
    wdt = w_in_ref.dtype                     # matmul operand dtype (f32/bf16)

    # ---- first layer step: input projection + positional encoding ----------
    @pl.when(l == 0)
    def _init():
        h0 = jnp.dot(x_ref[...].astype(wdt), w_in_ref[...],
                     preferred_element_type=jnp.float32)
        h_ref[...] = h0 + b_in_ref[...] + pe_ref[...]

    # ---- one encoder layer; this step's weights were streamed in -----------
    h = h_ref[...]                            # (bs, d) float32
    vec = vec_ref[...]                        # (6, d): b_o, n1_w, n1_b, b_f, n2_w, n2_b

    # Multi-head self-attention: per (batch element, head) 2-D MXU matmuls.
    # q-scale is folded into wqkv/bqkv at pack time; head outputs accumulate
    # directly into a float32 (S, D) accumulator (no concat, no head reduce).
    attn_parts = []
    for b in range(bblk):
        hb = h[b * seq:(b + 1) * seq, :]      # (S, D)
        hb_m = hb.astype(wdt)
        acc = jnp.zeros((seq, d), jnp.float32)
        for hh in range(nhead):
            q = (jnp.dot(hb_m, wqkv_ref[hh], preferred_element_type=jnp.float32)
                 + bqkv_ref[hh])                                     # (S, hd)
            k = (jnp.dot(hb_m, wqkv_ref[nhead + hh],
                         preferred_element_type=jnp.float32)
                 + bqkv_ref[nhead + hh])
            v = (jnp.dot(hb_m, wqkv_ref[2 * nhead + hh],
                         preferred_element_type=jnp.float32)
                 + bqkv_ref[2 * nhead + hh])
            s = jnp.einsum('qd,kd->qk', q, k,
                           preferred_element_type=jnp.float32)       # (S, S)
            s = s - jnp.max(s, axis=-1, keepdims=True)
            p = jnp.exp(s)
            p = p * pl.reciprocal(jnp.sum(p, axis=-1, keepdims=True),
                                  approx=True)
            ctx = jnp.dot(p, v, preferred_element_type=jnp.float32)  # (S, hd)
            acc = acc + jnp.dot(ctx.astype(wdt), wo_ref[hh],
                                preferred_element_type=jnp.float32)
        attn_parts.append(acc)
    attn = attn_parts[0] if bblk == 1 else jnp.concatenate(attn_parts, axis=0)
    attn = attn + vec[0:1, :]                 # b_o

    h = _layernorm(h + attn, vec[1:2, :], vec[2:3, :])

    # FAN gated feed-forward (gate sigmoid folded into wf_cs / wf_g).
    h_m = h.astype(wdt)
    p_ = (jnp.dot(h_m, wp_ref[...], preferred_element_type=jnp.float32)
          + bp_ref[...])                                             # (bs, P)
    g_ = _gelu_tanh(jnp.dot(h_m, wg_ref[...],
                            preferred_element_type=jnp.float32)
                    + bg_ref[...])                                   # (bs, G)
    ff = jnp.dot(jnp.cos(p_).astype(wdt), wfcs_ref[0],
                 preferred_element_type=jnp.float32)
    ff = ff + jnp.dot(jnp.sin(p_).astype(wdt), wfcs_ref[1],
                      preferred_element_type=jnp.float32)
    ff = ff + jnp.dot(g_.astype(wdt), wfg_ref[...],
                      preferred_element_type=jnp.float32)
    ff = ff + vec[3:4, :]                     # b_f

    h = _layernorm(h + ff, vec[4:5, :], vec[5:6, :])
    h_ref[...] = h

    # ---- last layer step: last token -> LayerNorm -> output projection -----
    @pl.when(l == n_layers - 1)
    def _head():
        rows = [h[b * seq + seq - 1:b * seq + seq, :] for b in range(bblk)]
        last = rows[0] if bblk == 1 else jnp.concatenate(rows, axis=0)
        hn = _layernorm(last, hn_ref[0:1, :], hn_ref[1:2, :])
        y = (jnp.dot(hn.astype(wdt), w_out_ref[...],
                     preferred_element_type=jnp.float32) + b_out_ref[...])
        o_ref[...] = y.astype(o_ref.dtype)


# ------------------------------ host wrappers ------------------------------ #

def make_pe(max_len, d_model):
    position = jnp.arange(max_len, dtype=jnp.float32)[:, None]
    div_term = jnp.exp(jnp.arange(0, d_model, 2, dtype=jnp.float32)
                       * (-math.log(10000.0) / d_model))
    pe = jnp.zeros((max_len, d_model), jnp.float32)
    pe = pe.at[:, 0::2].set(jnp.sin(position * div_term))
    pe = pe.at[:, 1::2].set(jnp.cos(position * div_term))
    return pe[None]                                # (1, max_len, d_model)


def init_params(key, *, input_dim, hidden_dim, output_dim, horizon,
                nhead, num_layers, max_len=64):
    D = hidden_dim
    H = 4 * D
    P = H // 4
    G = H - 2 * P
    assert D % nhead == 0
    keys = iter(jax.random.split(key, 6 + 15 * num_layers))

    def rnd(shape, scale=0.02):
        return (scale * jax.random.normal(next(keys), shape)).astype(jnp.float32)

    params = {
        'w_in': rnd((input_dim, D)),
        'b_in': rnd((1, D)),
        'pe': make_pe(max_len, D),
        'layers': [],
        'norm_w': 1.0 + rnd((1, D), 0.1),
        'norm_b': rnd((1, D), 0.1),
        'w_out': rnd((D, output_dim * horizon)),
        'b_out': rnd((1, output_dim * horizon)),
    }
    for _ in range(num_layers):
        params['layers'].append({
            'w_qkv': rnd((D, 3 * D)), 'b_qkv': rnd((1, 3 * D)),
            'w_o': rnd((D, D)), 'b_o': rnd((1, D)),
            'n1_w': 1.0 + rnd((1, D), 0.1), 'n1_b': rnd((1, D), 0.1),
            'w_p': rnd((D, P)), 'b_p': rnd((1, P)),
            'w_g': rnd((D, G)), 'b_g': rnd((1, G)),
            'w_f': rnd((H, D)), 'b_f': rnd((1, D)),
            'gate': rnd((1, 1), 1.0),
            'n2_w': 1.0 + rnd((1, D), 0.1), 'n2_b': rnd((1, D), 0.1),
        })
    return params


def pack_params(params, *, nhead, matmul_dtype=jnp.float32):
    """One-time host-side packing into the streamed/fused kernel layout.

    matmul_dtype=jnp.bfloat16 is recommended on v6e/v7x (halves streamed-weight
    DMA + ~2x MXU throughput); jnp.float32 gives strict parity with the
    reference.
    """
    D = params['w_in'].shape[1]
    hd = D // nhead
    scale = 1.0 / math.sqrt(hd)
    P = params['layers'][0]['w_p'].shape[1]

    def heads_w(w):      # (D, D) columns -> (nhead, D, hd)
        return w.reshape(D, nhead, hd).transpose(1, 0, 2)

    def heads_b(b):      # (1, D) -> (nhead, 1, hd)
        return b.reshape(nhead, hd)[:, None, :]

    wqkv, bqkv, wo, wp, bp, wg, bg, wfcs, wfg, vec = ([] for _ in range(10))
    for lp in params['layers']:
        wq = lp['w_qkv'][:, :D] * scale          # fold 1/sqrt(hd) into q
        wk = lp['w_qkv'][:, D:2 * D]
        wv = lp['w_qkv'][:, 2 * D:]
        bq = lp['b_qkv'][:, :D] * scale
        bk = lp['b_qkv'][:, D:2 * D]
        bv = lp['b_qkv'][:, 2 * D:]
        wqkv.append(jnp.stack([heads_w(wq), heads_w(wk), heads_w(wv)])
                    .reshape(3 * nhead, D, hd))             # (3*nh, D, hd)
        bqkv.append(jnp.stack([heads_b(bq), heads_b(bk), heads_b(bv)])
                    .reshape(3 * nhead, 1, hd))             # (3*nh, 1, hd)
        wo.append(lp['w_o'].reshape(nhead, hd, D))          # (nh, hd, D)
        wp.append(lp['w_p']); bp.append(lp['b_p'])
        wg.append(lp['w_g']); bg.append(lp['b_g'])
        gate = jax.nn.sigmoid(lp['gate'][0, 0])             # fold gate here
        wfcs.append(jnp.stack([gate * lp['w_f'][:P],
                               gate * lp['w_f'][P:2 * P]]))  # (2, P, D)
        wfg.append((1.0 - gate) * lp['w_f'][2 * P:])         # (G, D)
        vec.append(jnp.concatenate([lp['b_o'], lp['n1_w'], lp['n1_b'],
                                    lp['b_f'], lp['n2_w'], lp['n2_b']],
                                   axis=0))                  # (6, D)

    wdt = matmul_dtype
    return {
        'w_in': params['w_in'].astype(wdt),
        'b_in': params['b_in'],
        'pe': params['pe'][0],                               # (max_len, D)
        'head_norm': jnp.concatenate([params['norm_w'], params['norm_b']],
                                     axis=0),                # (2, D)
        'w_out': params['w_out'].astype(wdt),
        'b_out': params['b_out'],
        'wqkv': jnp.stack(wqkv).astype(wdt),                 # (L, 3nh, D, hd)
        'bqkv': jnp.stack(bqkv),                             # (L, 3nh, 1, hd)
        'wo': jnp.stack(wo).astype(wdt),                     # (L, nh, hd, D)
        'wp': jnp.stack(wp).astype(wdt),                     # (L, D, P)
        'bp': jnp.stack(bp),                                 # (L, 1, P)
        'wg': jnp.stack(wg).astype(wdt),                     # (L, D, G)
        'bg': jnp.stack(bg),                                 # (L, 1, G)
        'wf_cs': jnp.stack(wfcs).astype(wdt),                # (L, 2, P, D)
        'wf_g': jnp.stack(wfg).astype(wdt),                  # (L, G, D)
        'vec': jnp.stack(vec),                               # (L, 6, D)
    }


def forecaster_forward(x, packed, *, horizon, output_dim, batch_block=None):
    B, S, I = x.shape
    D = packed['w_in'].shape[1]
    L, nhead, hd, _ = packed['wo'].shape
    P = packed['wp'].shape[2]
    G = packed['wg'].shape[2]
    HO = packed['w_out'].shape[1]
    assert HO == horizon * output_dim

    if batch_block is None:
        batch_block = B                       # whole batch per grid step
    assert B % batch_block == 0
    bg = B // batch_block
    BS = batch_block * S

    x2 = x.reshape(B * S, I)                             # flat (B*S, I)
    pe_t = jnp.tile(packed['pe'][:S], (batch_block, 1))  # (BS, D)

    in_specs = [
        pl.BlockSpec((BS, I), lambda b, l: (b, 0)),                      # x
        pl.BlockSpec((BS, D), lambda b, l: (0, 0)),                      # pe
        pl.BlockSpec((I, D), lambda b, l: (0, 0)),                       # w_in
        pl.BlockSpec((1, D), lambda b, l: (0, 0)),                       # b_in
        pl.BlockSpec((2, D), lambda b, l: (0, 0)),                       # head norm
        pl.BlockSpec((D, HO), lambda b, l: (0, 0)),                      # w_out
        pl.BlockSpec((1, HO), lambda b, l: (0, 0)),                      # b_out
        # per-layer weights, streamed along the (arbitrary) layer grid axis
        pl.BlockSpec((None, 3 * nhead, D, hd), lambda b, l: (l, 0, 0, 0)),
        pl.BlockSpec((None, 3 * nhead, 1, hd), lambda b, l: (l, 0, 0, 0)),
        pl.BlockSpec((None, nhead, hd, D), lambda b, l: (l, 0, 0, 0)),
        pl.BlockSpec((None, D, P), lambda b, l: (l, 0, 0)),              # wp
        pl.BlockSpec((None, 1, P), lambda b, l: (l, 0, 0)),              # bp
        pl.BlockSpec((None, D, G), lambda b, l: (l, 0, 0)),              # wg
        pl.BlockSpec((None, 1, G), lambda b, l: (l, 0, 0)),              # bg
        pl.BlockSpec((None, 2, P, D), lambda b, l: (l, 0, 0, 0)),        # wf_cs
        pl.BlockSpec((None, G, D), lambda b, l: (l, 0, 0)),              # wf_g
        pl.BlockSpec((None, 6, D), lambda b, l: (l, 0, 0)),              # vec
    ]

    y = pl.pallas_call(
        _fused_kernel,
        grid=(bg, L),
        in_specs=in_specs,
        out_specs=pl.BlockSpec((batch_block, HO), lambda b, l: (b, 0)),
        out_shape=jax.ShapeDtypeStruct((B, HO), jnp.float32),
        scratch_shapes=[pltpu.VMEM((BS, D), jnp.float32)],   # carried hidden
        compiler_params=pltpu.CompilerParams(
            dimension_semantics=("parallel", "arbitrary")),
    )(x2, pe_t, packed['w_in'], packed['b_in'], packed['head_norm'],
      packed['w_out'], packed['b_out'], packed['wqkv'], packed['bqkv'],
      packed['wo'], packed['wp'], packed['bp'], packed['wg'], packed['bg'],
      packed['wf_cs'], packed['wf_g'], packed['vec'])

    return y.reshape(B, horizon, output_dim)


# ------------------------- plain-JAX reference ----------------------------- #

def reference_forward(x, params, *, nhead, horizon, output_dim):
    B, S, _ = x.shape
    D = params['w_in'].shape[1]
    hd = D // nhead
    h = x @ params['w_in'] + params['b_in'] + params['pe'][:, :S, :]
    for lp in params['layers']:
        qkv = h @ lp['w_qkv'] + lp['b_qkv']
        q, k, v = jnp.split(qkv, 3, axis=-1)

        def sh(t):
            return t.reshape(B, S, nhead, hd).transpose(0, 2, 1, 3)
        qh, kh, vh = sh(q), sh(k), sh(v)
        s = jnp.einsum('bhqd,bhkd->bhqk', qh, kh) / math.sqrt(hd)
        p = jax.nn.softmax(s, axis=-1)
        o = jnp.einsum('bhqk,bhkd->bhqd', p, vh)
        o = o.transpose(0, 2, 1, 3).reshape(B, S, D)
        o = o @ lp['w_o'] + lp['b_o']
        h = _layernorm(h + o, lp['n1_w'], lp['n1_b'])

        pp = h @ lp['w_p'] + lp['b_p']
        gg = _gelu_tanh(h @ lp['w_g'] + lp['b_g'])
        gate = jax.nn.sigmoid(lp['gate'][0, 0])
        fan = jnp.concatenate(
            [gate * jnp.cos(pp), gate * jnp.sin(pp), (1.0 - gate) * gg], axis=-1)
        ff = fan @ lp['w_f'] + lp['b_f']
        h = _layernorm(h + ff, lp['n2_w'], lp['n2_b'])

    hl = _layernorm(h[:, -1, :], params['norm_w'], params['norm_b'])
    y = hl @ params['w_out'] + params['b_out']
    return y.reshape(B, horizon, output_dim)


if __name__ == "__main__":
    key = jax.random.PRNGKey(0)
    B, S = 2, 8
    input_dim, hidden_dim, output_dim = 4, 32, 2
    horizon, nhead, num_layers = 4, 4, 2

    pkey, xkey = jax.random.split(key)
    params = init_params(pkey, input_dim=input_dim, hidden_dim=hidden_dim,
                         output_dim=output_dim, horizon=horizon,
                         nhead=nhead, num_layers=num_layers, max_len=64)
    # float32 weights here for strict parity; use matmul_dtype=jnp.bfloat16
    # on v6e/v7x for production.
    packed = pack_params(params, nhead=nhead, matmul_dtype=jnp.float32)
    x = jax.random.normal(xkey, (B, S, input_dim), dtype=jnp.float32)

    out = forecaster_forward(x, packed, horizon=horizon,
                             output_dim=output_dim, batch_block=2)
    out = jax.block_until_ready(out)

    with jax.default_matmul_precision("highest"):
        ref = reference_forward(x, params, nhead=nhead, horizon=horizon,
                                output_dim=output_dim)
    # tolerance relaxed slightly vs pure-f32 because the kernel uses the
    # approximate-reciprocal (EUP) path for the softmax denominator.
    np.testing.assert_allclose(np.asarray(out), np.asarray(ref),
                               rtol=2e-3, atol=2e-3)
    assert out.shape == (B, horizon, output_dim)
    print("KERNEL_OK")
</pallas_src>

<mosaic_0001>
module attributes {stable_mosaic.version = 11 : i64} {
  func.func @_fused_kernel(%arg0: i32, %arg1: i32, %arg2: memref<16x4xf32, #tpu.memory_space<vmem>>, %arg3: memref<16x32xf32, #tpu.memory_space<vmem>>, %arg4: memref<4x32xf32, #tpu.memory_space<vmem>>, %arg5: memref<1x32xf32, #tpu.memory_space<vmem>>, %arg6: memref<2x32xf32, #tpu.memory_space<vmem>>, %arg7: memref<32x8xf32, #tpu.memory_space<vmem>>, %arg8: memref<1x8xf32, #tpu.memory_space<vmem>>, %arg9: memref<1x12x32x8xf32, #tpu.memory_space<vmem>>, %arg10: memref<1x12x1x8xf32, #tpu.memory_space<vmem>>, %arg11: memref<1x4x8x32xf32, #tpu.memory_space<vmem>>, %arg12: memref<1x32x32xf32, #tpu.memory_space<vmem>>, %arg13: memref<1x1x32xf32, #tpu.memory_space<vmem>>, %arg14: memref<1x32x64xf32, #tpu.memory_space<vmem>>, %arg15: memref<1x1x64xf32, #tpu.memory_space<vmem>>, %arg16: memref<1x2x32x32xf32, #tpu.memory_space<vmem>>, %arg17: memref<1x64x32xf32, #tpu.memory_space<vmem>>, %arg18: memref<1x6x32xf32, #tpu.memory_space<vmem>>, %arg19: memref<2x8xf32, #tpu.memory_space<vmem>>, %arg20: memref<16x32xf32, #tpu.memory_space<vmem>>) attributes {dimension_semantics = [#tpu.dimension_semantics<parallel>, #tpu.dimension_semantics<arbitrary>], iteration_bounds = array<i64: 1, 2>, scalar_prefetch = 0 : i64, scratch_operands = 1 : i64, tpu.core_type = #tpu.core_type<tc>, window_params = [{transform_indices = @transform_0, window_bounds = array<i64: 16, 4>}, {pipeline_mode = #tpu.pipeline_mode<synchronous>, transform_indices = @transform_1, window_bounds = array<i64: 16, 32>}, {pipeline_mode = #tpu.pipeline_mode<synchronous>, transform_indices = @transform_2, window_bounds = array<i64: 4, 32>}, {pipeline_mode = #tpu.pipeline_mode<synchronous>, transform_indices = @transform_3, window_bounds = array<i64: 1, 32>}, {pipeline_mode = #tpu.pipeline_mode<synchronous>, transform_indices = @transform_4, window_bounds = array<i64: 2, 32>}, {pipeline_mode = #tpu.pipeline_mode<synchronous>, transform_indices = @transform_5, window_bounds = array<i64: 32, 8>}, {pipeline_mode = #tpu.pipeline_mode<synchronous>, transform_indices = @transform_6, window_bounds = array<i64: 1, 8>}, {transform_indices = @transform_7, window_bounds = array<i64: 1, 12, 32, 8>}, {transform_indices = @transform_8, window_bounds = array<i64: 1, 12, 1, 8>}, {transform_indices = @transform_9, window_bounds = array<i64: 1, 4, 8, 32>}, {transform_indices = @transform_10, window_bounds = array<i64: 1, 32, 32>}, {transform_indices = @transform_11, window_bounds = array<i64: 1, 1, 32>}, {transform_indices = @transform_12, window_bounds = array<i64: 1, 32, 64>}, {transform_indices = @transform_13, window_bounds = array<i64: 1, 1, 64>}, {transform_indices = @transform_14, window_bounds = array<i64: 1, 2, 32, 32>}, {transform_indices = @transform_15, window_bounds = array<i64: 1, 64, 32>}, {transform_indices = @transform_16, window_bounds = array<i64: 1, 6, 32>}, {transform_indices = @transform_17, window_bounds = array<i64: 2, 8>}]} {
    %c0_i32 = arith.constant 0 : i32
    %0 = arith.cmpi eq, %arg1, %c0_i32 : i32
    %1 = arith.extui %0 : i1 to i32
    %c0_i32_0 = arith.constant 0 : i32
    %2 = arith.cmpi ne, %1, %c0_i32_0 : i32
    scf.if %2 {
      %c0_328 = arith.constant 0 : index
      %c0_329 = arith.constant 0 : index
      %407 = vector.load %arg2[%c0_328, %c0_329] : memref<16x4xf32, #tpu.memory_space<vmem>>, vector<16x4xf32>
      %c0_330 = arith.constant 0 : index
      %c0_331 = arith.constant 0 : index
      %408 = vector.load %arg4[%c0_330, %c0_331] : memref<4x32xf32, #tpu.memory_space<vmem>>, vector<4x32xf32>
      %cst_332 = arith.constant dense<0.000000e+00> : vector<16x32xf32>
      %409 = tpu.matmul %407, %408, %cst_332 {dimension_numbers = #tpu.dot_dimension_numbers<[1], [0], [0], [1], [0, 0, 1, 1], [], []>} : vector<16x4xf32>, vector<4x32xf32>, vector<16x32xf32> -> vector<16x32xf32>
      %c0_333 = arith.constant 0 : index
      %c0_334 = arith.constant 0 : index
      %410 = vector.load %arg5[%c0_333, %c0_334] : memref<1x32xf32, #tpu.memory_space<vmem>>, vector<1x32xf32>
      %411 = vector.broadcast %410 : vector<1x32xf32> to vector<16x32xf32>
      %412 = arith.addf %409, %411 : vector<16x32xf32>
      %c0_335 = arith.constant 0 : index
      %c0_336 = arith.constant 0 : index
      %413 = vector.load %arg3[%c0_335, %c0_336] : memref<16x32xf32, #tpu.memory_space<vmem>>, vector<16x32xf32>
      %414 = arith.addf %412, %413 : vector<16x32xf32>
      %c0_337 = arith.constant 0 : index
      %c0_338 = arith.constant 0 : index
      %415 = vector.load %arg20[%c0_337, %c0_338] : memref<16x32xf32, #tpu.memory_space<vmem>>, vector<16x32xf32>
      tpu.vector_store %arg20[%c0_337, %c0_338], %414 {strides = array<i32>} : memref<16x32xf32, #tpu.memory_space<vmem>>, vector<16x32xf32>,
    } else {
    }
    %c0 = arith.constant 0 : index
    %c0_1 = arith.constant 0 : index
    %3 = vector.load %arg20[%c0, %c0_1] : memref<16x32xf32, #tpu.memory_space<vmem>>, vector<16x32xf32>
    %c0_2 = arith.constant 0 : index
    %c0_3 = arith.constant 0 : index
    %c0_4 = arith.constant 0 : index
    %4 = vector.load %arg18[%c0_2, %c0_3, %c0_4] : memref<1x6x32xf32, #tpu.memory_space<vmem>>, vector<1x6x32xf32>
    %5 = vector.shape_cast %4 : vector<1x6x32xf32> to vector<6x32xf32>
    %6 = vector.extract_strided_slice %3 {offsets = [0, 0], sizes = [8, 32], strides = [1, 1]} : vector<16x32xf32> to vector<8x32xf32>
    %cst = arith.constant 0.000000e+00 : f32
    %7 = vector.broadcast %cst : f32 to vector<8x32xf32>
    %c0_5 = arith.constant 0 : index
    %c0_6 = arith.constant 0 : index
    %c0_7 = arith.constant 0 : index
    %c0_8 = arith.constant 0 : index
    %8 = vector.load %arg9[%c0_5, %c0_6, %c0_7, %c0_8] : memref<1x12x32x8xf32, #tpu.memory_space<vmem>>, vector<1x1x32x8xf32>
    %9 = vector.shape_cast %8 : vector<1x1x32x8xf32> to vector<32x8xf32>
    %cst_9 = arith.constant dense<0.000000e+00> : vector<8x8xf32>
    %10 = tpu.matmul %6, %9, %cst_9 {dimension_numbers = #tpu.dot_dimension_numbers<[1], [0], [0], [1], [0, 0, 1, 1], [], []>} : vector<8x32xf32>, vector<32x8xf32>, vector<8x8xf32> -> vector<8x8xf32>
    %c0_10 = arith.constant 0 : index
    %c0_11 = arith.constant 0 : index
    %c0_12 = arith.constant 0 : index
    %c0_13 = arith.constant 0 : index
    %11 = vector.load %arg10[%c0_10, %c0_11, %c0_12, %c0_13] : memref<1x12x1x8xf32, #tpu.memory_space<vmem>>, vector<1x1x1x8xf32>
    %12 = vector.shape_cast %11 : vector<1x1x1x8xf32> to vector<1x8xf32>
    %13 = vector.broadcast %12 : vector<1x8xf32> to vector<8x8xf32>
    %14 = arith.addf %10, %13 : vector<8x8xf32>
    %c0_14 = arith.constant 0 : index
    %c4 = arith.constant 4 : index
    %c0_15 = arith.constant 0 : index
    %c0_16 = arith.constant 0 : index
    %15 = vector.load %arg9[%c0_14, %c4, %c0_15, %c0_16] : memref<1x12x32x8xf32, #tpu.memory_space<vmem>>, vector<1x1x32x8xf32>
    %16 = vector.shape_cast %15 : vector<1x1x32x8xf32> to vector<32x8xf32>
    %cst_17 = arith.constant dense<0.000000e+00> : vector<8x8xf32>
    %17 = tpu.matmul %6, %16, %cst_17 {dimension_numbers = #tpu.dot_dimension_numbers<[1], [0], [0], [1], [0, 0, 1, 1], [], []>} : vector<8x32xf32>, vector<32x8xf32>, vector<8x8xf32> -> vector<8x8xf32>
    %c0_18 = arith.constant 0 : index
    %c4_19 = arith.constant 4 : index
    %c0_20 = arith.constant 0 : index
    %c0_21 = arith.constant 0 : index
    %18 = vector.load %arg10[%c0_18, %c4_19, %c0_20, %c0_21] : memref<1x12x1x8xf32, #tpu.memory_space<vmem>>, vector<1x1x1x8xf32>
    %19 = vector.shape_cast %18 : vector<1x1x1x8xf32> to vector<1x8xf32>
    %20 = vector.broadcast %19 : vector<1x8xf32> to vector<8x8xf32>
    %21 = arith.addf %17, %20 : vector<8x8xf32>
    %c0_22 = arith.constant 0 : index
    %c8 = arith.constant 8 : index
    %c0_23 = arith.constant 0 : index
    %c0_24 = arith.constant 0 : index
    %22 = vector.load %arg9[%c0_22, %c8, %c0_23, %c0_24] : memref<1x12x32x8xf32, #tpu.memory_space<vmem>>, vector<1x1x32x8xf32>
    %23 = vector.shape_cast %22 : vector<1x1x32x8xf32> to vector<32x8xf32>
    %cst_25 = arith.constant dense<0.000000e+00> : vector<8x8xf32>
    %24 = tpu.matmul %6, %23, %cst_25 {dimension_numbers = #tpu.dot_dimension_numbers<[1], [0], [0], [1], [0, 0, 1, 1], [], []>} : vector<8x32xf32>, vector<32x8xf32>, vector<8x8xf32> -> vector<8x8xf32>
    %c0_26 = arith.constant 0 : index
    %c8_27 = arith.constant 8 : index
    %c0_28 = arith.constant 0 : index
    %c0_29 = arith.constant 0 : index
    %25 = vector.load %arg10[%c0_26, %c8_27, %c0_28, %c0_29] : memref<1x12x1x8xf32, #tpu.memory_space<vmem>>, vector<1x1x1x8xf32>
    %26 = vector.shape_cast %25 : vector<1x1x1x8xf32> to vector<1x8xf32>
    %27 = vector.broadcast %26 : vector<1x8xf32> to vector<8x8xf32>
    %28 = arith.addf %24, %27 : vector<8x8xf32>
    "tpu.trace_start"() <{level = 10 : i32, message = "qd,kd->qk"}> : () -> ()
    %cst_30 = arith.constant dense<0.000000e+00> : vector<8x8xf32>
    %29 = tpu.matmul %14, %21, %cst_30 {dimension_numbers = #tpu.dot_dimension_numbers<[1], [1], [0], [0], [0, 0, 1, 0], [], []>} : vector<8x8xf32>, vector<8x8xf32>, vector<8x8xf32> -> vector<8x8xf32>
    "tpu.trace_stop"() : () -> ()
    %cst_31 = arith.constant dense<0xFF800000> : vector<8xf32>
    %30 = vector.multi_reduction <maximumf>, %29, %cst_31 [1] : vector<8x8xf32> to vector<8xf32>
    %31 = vector.shape_cast %30 : vector<8xf32> to vector<8x1xf32>
    %32 = vector.broadcast %31 : vector<8x1xf32> to vector<8x8xf32>
    %33 = arith.subf %29, %32 : vector<8x8xf32>
    %34 = math.exp %33 : vector<8x8xf32>
    %cst_32 = arith.constant dense<0.000000e+00> : vector<8xf32>
    %35 = vector.multi_reduction <add>, %34, %cst_32 [1] : vector<8x8xf32> to vector<8xf32>
    %36 = vector.shape_cast %35 : vector<8xf32> to vector<8x1xf32>
    %37 = tpu.reciprocal %36 {approx = true} : vector<8x1xf32> -> vector<8x1xf32>
    %38 = vector.broadcast %37 : vector<8x1xf32> to vector<8x8xf32>
    %39 = arith.mulf %34, %38 : vector<8x8xf32>
    %cst_33 = arith.constant dense<0.000000e+00> : vector<8x8xf32>
    %40 = tpu.matmul %39, %28, %cst_33 {dimension_numbers = #tpu.dot_dimension_numbers<[1], [0], [0], [1], [0, 0, 1, 1], [], []>} : vector<8x8xf32>, vector<8x8xf32>, vector<8x8xf32> -> vector<8x8xf32>
    %c0_34 = arith.constant 0 : index
    %c0_35 = arith.constant 0 : index
    %c0_36 = arith.constant 0 : index
    %c0_37 = arith.constant 0 : index
    %41 = vector.load %arg11[%c0_34, %c0_35, %c0_36, %c0_37] : memref<1x4x8x32xf32, #tpu.memory_space<vmem>>, vector<1x1x8x32xf32>
    %42 = vector.shape_cast %41 : vector<1x1x8x32xf32> to vector<8x32xf32>
    %cst_38 = arith.constant dense<0.000000e+00> : vector<8x32xf32>
    %43 = tpu.matmul %40, %42, %cst_38 {dimension_numbers = #tpu.dot_dimension_numbers<[1], [0], [0], [1], [0, 0, 1, 1], [], []>} : vector<8x8xf32>, vector<8x32xf32>, vector<8x32xf32> -> vector<8x32xf32>
    %44 = arith.addf %7, %43 : vector<8x32xf32>
    %c0_39 = arith.constant 0 : index
    %c1 = arith.constant 1 : index
    %c0_40 = arith.constant 0 : index
    %c0_41 = arith.constant 0 : index
    %45 = vector.load %arg9[%c0_39, %c1, %c0_40, %c0_41] : memref<1x12x32x8xf32, #tpu.memory_space<vmem>>, vector<1x1x32x8xf32>
    %46 = vector.shape_cast %45 : vector<1x1x32x8xf32> to vector<32x8xf32>
    %cst_42 = arith.constant dense<0.000000e+00> : vector<8x8xf32>
    %47 = tpu.matmul %6, %46, %cst_42 {dimension_numbers = #tpu.dot_dimension_numbers<[1], [0], [0], [1], [0, 0, 1, 1], [], []>} : vector<8x32xf32>, vector<32x8xf32>, vector<8x8xf32> -> vector<8x8xf32>
    %c0_43 = arith.constant 0 : index
    %c1_44 = arith.constant 1 : index
    %c0_45 = arith.constant 0 : index
    %c0_46 = arith.constant 0 : index
    %48 = vector.load %arg10[%c0_43, %c1_44, %c0_45, %c0_46] : memref<1x12x1x8xf32, #tpu.memory_space<vmem>>, vector<1x1x1x8xf32>
    %49 = vector.shape_cast %48 : vector<1x1x1x8xf32> to vector<1x8xf32>
    %50 = vector.broadcast %49 : vector<1x8xf32> to vector<8x8xf32>
    %51 = arith.addf %47, %50 : vector<8x8xf32>
    %c0_47 = arith.constant 0 : index
    %c5 = arith.constant 5 : index
    %c0_48 = arith.constant 0 : index
    %c0_49 = arith.constant 0 : index
    %52 = vector.load %arg9[%c0_47, %c5, %c0_48, %c0_49] : memref<1x12x32x8xf32, #tpu.memory_space<vmem>>, vector<1x1x32x8xf32>
    %53 = vector.shape_cast %52 : vector<1x1x32x8xf32> to vector<32x8xf32>
    %cst_50 = arith.constant dense<0.000000e+00> : vector<8x8xf32>
    %54 = tpu.matmul %6, %53, %cst_50 {dimension_numbers = #tpu.dot_dimension_numbers<[1], [0], [0], [1], [0, 0, 1, 1], [], []>} : vector<8x32xf32>, vector<32x8xf32>, vector<8x8xf32> -> vector<8x8xf32>
    %c0_51 = arith.constant 0 : index
    %c5_52 = arith.constant 5 : index
    %c0_53 = arith.constant 0 : index
    %c0_54 = arith.constant 0 : index
    %55 = vector.load %arg10[%c0_51, %c5_52, %c0_53, %c0_54] : memref<1x12x1x8xf32, #tpu.memory_space<vmem>>, vector<1x1x1x8xf32>
    %56 = vector.shape_cast %55 : vector<1x1x1x8xf32> to vector<1x8xf32>
    %57 = vector.broadcast %56 : vector<1x8xf32> to vector<8x8xf32>
    %58 = arith.addf %54, %57 : vector<8x8xf32>
    %c0_55 = arith.constant 0 : index
    %c9 = arith.constant 9 : index
    %c0_56 = arith.constant 0 : index
    %c0_57 = arith.constant 0 : index
    %59 = vector.load %arg9[%c0_55, %c9, %c0_56, %c0_57] : memref<1x12x32x8xf32, #tpu.memory_space<vmem>>, vector<1x1x32x8xf32>
    %60 = vector.shape_cast %59 : vector<1x1x32x8xf32> to vector<32x8xf32>
    %cst_58 = arith.constant dense<0.000000e+00> : vector<8x8xf32>
    %61 = tpu.matmul %6, %60, %cst_58 {dimension_numbers = #tpu.dot_dimension_numbers<[1], [0], [0], [1], [0, 0, 1, 1], [], []>} : vector<8x32xf32>, vector<32x8xf32>, vector<8x8xf32> -> vector<8x8xf32>
    %c0_59 = arith.constant 0 : index
    %c9_60 = arith.constant 9 : index
    %c0_61 = arith.constant 0 : index
    %c0_62 = arith.constant 0 : index
    %62 = vector.load %arg10[%c0_59, %c9_60, %c0_61, %c0_62] : memref<1x12x1x8xf32, #tpu.memory_space<vmem>>, vector<1x1x1x8xf32>
    %63 = vector.shape_cast %62 : vector<1x1x1x8xf32> to vector<1x8xf32>
    %64 = vector.broadcast %63 : vector<1x8xf32> to vector<8x8xf32>
    %65 = arith.addf %61, %64 : vector<8x8xf32>
    "tpu.trace_start"() <{level = 10 : i32, message = "qd,kd->qk"}> : () -> ()
    %cst_63 = arith.constant dense<0.000000e+00> : vector<8x8xf32>
    %66 = tpu.matmul %51, %58, %cst_63 {dimension_numbers = #tpu.dot_dimension_numbers<[1], [1], [0], [0], [0, 0, 1, 0], [], []>} : vector<8x8xf32>, vector<8x8xf32>, vector<8x8xf32> -> vector<8x8xf32>
    "tpu.trace_stop"() : () -> ()
    %cst_64 = arith.constant dense<0xFF800000> : vector<8xf32>
    %67 = vector.multi_reduction <maximumf>, %66, %cst_64 [1] : vector<8x8xf32> to vector<8xf32>
    %68 = vector.shape_cast %67 : vector<8xf32> to vector<8x1xf32>
    %69 = vector.broadcast %68 : vector<8x1xf32> to vector<8x8xf32>
    %70 = arith.subf %66, %69 : vector<8x8xf32>
    %71 = math.exp %70 : vector<8x8xf32>
    %cst_65 = arith.constant dense<0.000000e+00> : vector<8xf32>
    %72 = vector.multi_reduction <add>, %71, %cst_65 [1] : vector<8x8xf32> to vector<8xf32>
    %73 = vector.shape_cast %72 : vector<8xf32> to vector<8x1xf32>
    %74 = tpu.reciprocal %73 {approx = true} : vector<8x1xf32> -> vector<8x1xf32>
    %75 = vector.broadcast %74 : vector<8x1xf32> to vector<8x8xf32>
    %76 = arith.mulf %71, %75 : vector<8x8xf32>
    %cst_66 = arith.constant dense<0.000000e+00> : vector<8x8xf32>
    %77 = tpu.matmul %76, %65, %cst_66 {dimension_numbers = #tpu.dot_dimension_numbers<[1], [0], [0], [1], [0, 0, 1, 1], [], []>} : vector<8x8xf32>, vector<8x8xf32>, vector<8x8xf32> -> vector<8x8xf32>
    %c0_67 = arith.constant 0 : index
    %c1_68 = arith.constant 1 : index
    %c0_69 = arith.constant 0 : index
    %c0_70 = arith.constant 0 : index
    %78 = vector.load %arg11[%c0_67, %c1_68, %c0_69, %c0_70] : memref<1x4x8x32xf32, #tpu.memory_space<vmem>>, vector<1x1x8x32xf32>
    %79 = vector.shape_cast %78 : vector<1x1x8x32xf32> to vector<8x32xf32>
    %cst_71 = arith.constant dense<0.000000e+00> : vector<8x32xf32>
    %80 = tpu.matmul %77, %79, %cst_71 {dimension_numbers = #tpu.dot_dimension_numbers<[1], [0], [0], [1], [0, 0, 1, 1], [], []>} : vector<8x8xf32>, vector<8x32xf32>, vector<8x32xf32> -> vector<8x32xf32>
    %81 = arith.addf %44, %80 : vector<8x32xf32>
    %c0_72 = arith.constant 0 : index
    %c2 = arith.constant 2 : index
    %c0_73 = arith.constant 0 : index
    %c0_74 = arith.constant 0 : index
    %82 = vector.load %arg9[%c0_72, %c2, %c0_73, %c0_74] : memref<1x12x32x8xf32, #tpu.memory_space<vmem>>, vector<1x1x32x8xf32>
    %83 = vector.shape_cast %82 : vector<1x1x32x8xf32> to vector<32x8xf32>
    %cst_75 = arith.constant dense<0.000000e+00> : vector<8x8xf32>
    %84 = tpu.matmul %6, %83, %cst_75 {dimension_numbers = #tpu.dot_dimension_numbers<[1], [0], [0], [1], [0, 0, 1, 1], [], []>} : vector<8x32xf32>, vector<32x8xf32>, vector<8x8xf32> -> vector<8x8xf32>
    %c0_76 = arith.constant 0 : index
    %c2_77 = arith.constant 2 : index
    %c0_78 = arith.constant 0 : index
    %c0_79 = arith.constant 0 : index
    %85 = vector.load %arg10[%c0_76, %c2_77, %c0_78, %c0_79] : memref<1x12x1x8xf32, #tpu.memory_space<vmem>>, vector<1x1x1x8xf32>
    %86 = vector.shape_cast %85 : vector<1x1x1x8xf32> to vector<1x8xf32>
    %87 = vector.broadcast %86 : vector<1x8xf32> to vector<8x8xf32>
    %88 = arith.addf %84, %87 : vector<8x8xf32>
    %c0_80 = arith.constant 0 : index
    %c6 = arith.constant 6 : index
    %c0_81 = arith.constant 0 : index
    %c0_82 = arith.constant 0 : index
    %89 = vector.load %arg9[%c0_80, %c6, %c0_81, %c0_82] : memref<1x12x32x8xf32, #tpu.memory_space<vmem>>, vector<1x1x32x8xf32>
    %90 = vector.shape_cast %89 : vector<1x1x32x8xf32> to vector<32x8xf32>
    %cst_83 = arith.constant dense<0.000000e+00> : vector<8x8xf32>
    %91 = tpu.matmul %6, %90, %cst_83 {dimension_numbers = #tpu.dot_dimension_numbers<[1], [0], [0], [1], [0, 0, 1, 1], [], []>} : vector<8x32xf32>, vector<32x8xf32>, vector<8x8xf32> -> vector<8x8xf32>
    %c0_84 = arith.constant 0 : index
    %c6_85 = arith.constant 6 : index
    %c0_86 = arith.constant 0 : index
    %c0_87 = arith.constant 0 : index
    %92 = vector.load %arg10[%c0_84, %c6_85, %c0_86, %c0_87] : memref<1x12x1x8xf32, #tpu.memory_space<vmem>>, vector<1x1x1x8xf32>
    %93 = vector.shape_cast %92 : vector<1x1x1x8xf32> to vector<1x8xf32>
    %94 = vector.broadcast %93 : vector<1x8xf32> to vector<8x8xf32>
    %95 = arith.addf %91, %94 : vector<8x8xf32>
    %c0_88 = arith.constant 0 : index
    %c10 = arith.constant 10 : index
    %c0_89 = arith.constant 0 : index
    %c0_90 = arith.constant 0 : index
    %96 = vector.load %arg9[%c0_88, %c10, %c0_89, %c0_90] : memref<1x12x32x8xf32, #tpu.memory_space<vmem>>, vector<1x1x32x8xf32>
    %97 = vector.shape_cast %96 : vector<1x1x32x8xf32> to vector<32x8xf32>
    %cst_91 = arith.constant dense<0.000000e+00> : vector<8x8xf32>
    %98 = tpu.matmul %6, %97, %cst_91 {dimension_numbers = #tpu.dot_dimension_numbers<[1], [0], [0], [1], [0, 0, 1, 1], [], []>} : vector<8x32xf32>, vector<32x8xf32>, vector<8x8xf32> -> vector<8x8xf32>
    %c0_92 = arith.constant 0 : index
    %c10_93 = arith.constant 10 : index
    %c0_94 = arith.constant 0 : index
    %c0_95 = arith.constant 0 : index
    %99 = vector.load %arg10[%c0_92, %c10_93, %c0_94, %c0_95] : memref<1x12x1x8xf32, #tpu.memory_space<vmem>>, vector<1x1x1x8xf32>
    %100 = vector.shape_cast %99 : vector<1x1x1x8xf32> to vector<1x8xf32>
    %101 = vector.broadcast %100 : vector<1x8xf32> to vector<8x8xf32>
    %102 = arith.addf %98, %101 : vector<8x8xf32>
    "tpu.trace_start"() <{level = 10 : i32, message = "qd,kd->qk"}> : () -> ()
    %cst_96 = arith.constant dense<0.000000e+00> : vector<8x8xf32>
    %103 = tpu.matmul %88, %95, %cst_96 {dimension_numbers = #tpu.dot_dimension_numbers<[1], [1], [0], [0], [0, 0, 1, 0], [], []>} : vector<8x8xf32>, vector<8x8xf32>, vector<8x8xf32> -> vector<8x8xf32>
    "tpu.trace_stop"() : () -> ()
    %cst_97 = arith.constant dense<0xFF800000> : vector<8xf32>
    %104 = vector.multi_reduction <maximumf>, %103, %cst_97 [1] : vector<8x8xf32> to vector<8xf32>
    %105 = vector.shape_cast %104 : vector<8xf32> to vector<8x1xf32>
    %106 = vector.broadcast %105 : vector<8x1xf32> to vector<8x8xf32>
    %107 = arith.subf %103, %106 : vector<8x8xf32>
    %108 = math.exp %107 : vector<8x8xf32>
    %cst_98 = arith.constant dense<0.000000e+00> : vector<8xf32>
    %109 = vector.multi_reduction <add>, %108, %cst_98 [1] : vector<8x8xf32> to vector<8xf32>
    %110 = vector.shape_cast %109 : vector<8xf32> to vector<8x1xf32>
    %111 = tpu.reciprocal %110 {approx = true} : vector<8x1xf32> -> vector<8x1xf32>
    %112 = vector.broadcast %111 : vector<8x1xf32> to vector<8x8xf32>
    %113 = arith.mulf %108, %112 : vector<8x8xf32>
    %cst_99 = arith.constant dense<0.000000e+00> : vector<8x8xf32>
    %114 = tpu.matmul %113, %102, %cst_99 {dimension_numbers = #tpu.dot_dimension_numbers<[1], [0], [0], [1], [0, 0, 1, 1], [], []>} : vector<8x8xf32>, vector<8x8xf32>, vector<8x8xf32> -> vector<8x8xf32>
    %c0_100 = arith.constant 0 : index
    %c2_101 = arith.constant 2 : index
    %c0_102 = arith.constant 0 : index
    %c0_103 = arith.constant 0 : index
    %115 = vector.load %arg11[%c0_100, %c2_101, %c0_102, %c0_103] : memref<1x4x8x32xf32, #tpu.memory_space<vmem>>, vector<1x1x8x32xf32>
    %116 = vector.shape_cast %115 : vector<1x1x8x32xf32> to vector<8x32xf32>
    %cst_104 = arith.constant dense<0.000000e+00> : vector<8x32xf32>
    %117 = tpu.matmul %114, %116, %cst_104 {dimension_numbers = #tpu.dot_dimension_numbers<[1], [0], [0], [1], [0, 0, 1, 1], [], []>} : vector<8x8xf32>, vector<8x32xf32>, vector<8x32xf32> -> vector<8x32xf32>
    %118 = arith.addf %81, %117 : vector<8x32xf32>
    %c0_105 = arith.constant 0 : index
    %c3 = arith.constant 3 : index
    %c0_106 = arith.constant 0 : index
    %c0_107 = arith.constant 0 : index
    %119 = vector.load %arg9[%c0_105, %c3, %c0_106, %c0_107] : memref<1x12x32x8xf32, #tpu.memory_space<vmem>>, vector<1x1x32x8xf32>
    %120 = vector.shape_cast %119 : vector<1x1x32x8xf32> to vector<32x8xf32>
    %cst_108 = arith.constant dense<0.000000e+00> : vector<8x8xf32>
    %121 = tpu.matmul %6, %120, %cst_108 {dimension_numbers = #tpu.dot_dimension_numbers<[1], [0], [0], [1], [0, 0, 1, 1], [], []>} : vector<8x32xf32>, vector<32x8xf32>, vector<8x8xf32> -> vector<8x8xf32>
    %c0_109 = arith.constant 0 : index
    %c3_110 = arith.constant 3 : index
    %c0_111 = arith.constant 0 : index
    %c0_112 = arith.constant 0 : index
    %122 = vector.load %arg10[%c0_109, %c3_110, %c0_111, %c0_112] : memref<1x12x1x8xf32, #tpu.memory_space<vmem>>, vector<1x1x1x8xf32>
    %123 = vector.shape_cast %122 : vector<1x1x1x8xf32> to vector<1x8xf32>
    %124 = vector.broadcast %123 : vector<1x8xf32> to vector<8x8xf32>
    %125 = arith.addf %121, %124 : vector<8x8xf32>
    %c0_113 = arith.constant 0 : index
    %c7 = arith.constant 7 : index
    %c0_114 = arith.constant 0 : index
    %c0_115 = arith.constant 0 : index
    %126 = vector.load %arg9[%c0_113, %c7, %c0_114, %c0_115] : memref<1x12x32x8xf32, #tpu.memory_space<vmem>>, vector<1x1x32x8xf32>
    %127 = vector.shape_cast %126 : vector<1x1x32x8xf32> to vector<32x8xf32>
    %cst_116 = arith.constant dense<0.000000e+00> : vector<8x8xf32>
    %128 = tpu.matmul %6, %127, %cst_116 {dimension_numbers = #tpu.dot_dimension_numbers<[1], [0], [0], [1], [0, 0, 1, 1], [], []>} : vector<8x32xf32>, vector<32x8xf32>, vector<8x8xf32> -> vector<8x8xf32>
    %c0_117 = arith.constant 0 : index
    %c7_118 = arith.constant 7 : index
    %c0_119 = arith.constant 0 : index
    %c0_120 = arith.constant 0 : index
    %129 = vector.load %arg10[%c0_117, %c7_118, %c0_119, %c0_120] : memref<1x12x1x8xf32, #tpu.memory_space<vmem>>, vector<1x1x1x8xf32>
    %130 = vector.shape_cast %129 : vector<1x1x1x8xf32> to vector<1x8xf32>
    %131 = vector.broadcast %130 : vector<1x8xf32> to vector<8x8xf32>
    %132 = arith.addf %128, %131 : vector<8x8xf32>
    %c0_121 = arith.constant 0 : index
    %c11 = arith.constant 11 : index
    %c0_122 = arith.constant 0 : index
    %c0_123 = arith.constant 0 : index
    %133 = vector.load %arg9[%c0_121, %c11, %c0_122, %c0_123] : memref<1x12x32x8xf32, #tpu.memory_space<vmem>>, vector<1x1x32x8xf32>
    %134 = vector.shape_cast %133 : vector<1x1x32x8xf32> to vector<32x8xf32>
    %cst_124 = arith.constant dense<0.000000e+00> : vector<8x8xf32>
    %135 = tpu.matmul %6, %134, %cst_124 {dimension_numbers = #tpu.dot_dimension_numbers<[1], [0], [0], [1], [0, 0, 1, 1], [], []>} : vector<8x32xf32>, vector<32x8xf32>, vector<8x8xf32> -> vector<8x8xf32>
    %c0_125 = arith.constant 0 : index
    %c11_126 = arith.constant 11 : index
    %c0_127 = arith.constant 0 : index
    %c0_128 = arith.constant 0 : index
    %136 = vector.load %arg10[%c0_125, %c11_126, %c0_127, %c0_128] : memref<1x12x1x8xf32, #tpu.memory_space<vmem>>, vector<1x1x1x8xf32>
    %137 = vector.shape_cast %136 : vector<1x1x1x8xf32> to vector<1x8xf32>
    %138 = vector.broadcast %137 : vector<1x8xf32> to vector<8x8xf32>
    %139 = arith.addf %135, %138 : vector<8x8xf32>
    "tpu.trace_start"() <{level = 10 : i32, message = "qd,kd->qk"}> : () -> ()
    %cst_129 = arith.constant dense<0.000000e+00> : vector<8x8xf32>
    %140 = tpu.matmul %125, %132, %cst_129 {dimension_numbers = #tpu.dot_dimension_numbers<[1], [1], [0], [0], [0, 0, 1, 0], [], []>} : vector<8x8xf32>, vector<8x8xf32>, vector<8x8xf32> -> vector<8x8xf32>
    "tpu.trace_stop"() : () -> ()
    %cst_130 = arith.constant dense<0xFF800000> : vector<8xf32>
    %141 = vector.multi_reduction <maximumf>, %140, %cst_130 [1] : vector<8x8xf32> to vector<8xf32>
    %142 = vector.shape_cast %141 : vector<8xf32> to vector<8x1xf32>
    %143 = vector.broadcast %142 : vector<8x1xf32> to vector<8x8xf32>
    %144 = arith.subf %140, %143 : vector<8x8xf32>
    %145 = math.exp %144 : vector<8x8xf32>
    %cst_131 = arith.constant dense<0.000000e+00> : vector<8xf32>
    %146 = vector.multi_reduction <add>, %145, %cst_131 [1] : vector<8x8xf32> to vector<8xf32>
    %147 = vector.shape_cast %146 : vector<8xf32> to vector<8x1xf32>
    %148 = tpu.reciprocal %147 {approx = true} : vector<8x1xf32> -> vector<8x1xf32>
    %149 = vector.broadcast %148 : vector<8x1xf32> to vector<8x8xf32>
    %150 = arith.mulf %145, %149 : vector<8x8xf32>
    %cst_132 = arith.constant dense<0.000000e+00> : vector<8x8xf32>
    %151 = tpu.matmul %150, %139, %cst_132 {dimension_numbers = #tpu.dot_dimension_numbers<[1], [0], [0], [1], [0, 0, 1, 1], [], []>} : vector<8x8xf32>, vector<8x8xf32>, vector<8x8xf32> -> vector<8x8xf32>
    %c0_133 = arith.constant 0 : index
    %c3_134 = arith.constant 3 : index
    %c0_135 = arith.constant 0 : index
    %c0_136 = arith.constant 0 : index
    %152 = vector.load %arg11[%c0_133, %c3_134, %c0_135, %c0_136] : memref<1x4x8x32xf32, #tpu.memory_space<vmem>>, vector<1x1x8x32xf32>
    %153 = vector.shape_cast %152 : vector<1x1x8x32xf32> to vector<8x32xf32>
    %cst_137 = arith.constant dense<0.000000e+00> : vector<8x32xf32>
    %154 = tpu.matmul %151, %153, %cst_137 {dimension_numbers = #tpu.dot_dimension_numbers<[1], [0], [0], [1], [0, 0, 1, 1], [], []>} : vector<8x8xf32>, vector<8x32xf32>, vector<8x32xf32> -> vector<8x32xf32>
    %155 = arith.addf %118, %154 : vector<8x32xf32>
    %156 = vector.extract_strided_slice %3 {offsets = [8, 0], sizes = [8, 32], strides = [1, 1]} : vector<16x32xf32> to vector<8x32xf32>
    %cst_138 = arith.constant 0.000000e+00 : f32
    %157 = vector.broadcast %cst_138 : f32 to vector<8x32xf32>
    %c0_139 = arith.constant 0 : index
    %c0_140 = arith.constant 0 : index
    %c0_141 = arith.constant 0 : index
    %c0_142 = arith.constant 0 : index
    %158 = vector.load %arg9[%c0_139, %c0_140, %c0_141, %c0_142] : memref<1x12x32x8xf32, #tpu.memory_space<vmem>>, vector<1x1x32x8xf32>
    %159 = vector.shape_cast %158 : vector<1x1x32x8xf32> to vector<32x8xf32>
    %cst_143 = arith.constant dense<0.000000e+00> : vector<8x8xf32>
    %160 = tpu.matmul %156, %159, %cst_143 {dimension_numbers = #tpu.dot_dimension_numbers<[1], [0], [0], [1], [0, 0, 1, 1], [], []>} : vector<8x32xf32>, vector<32x8xf32>, vector<8x8xf32> -> vector<8x8xf32>
    %c0_144 = arith.constant 0 : index
    %c0_145 = arith.constant 0 : index
    %c0_146 = arith.constant 0 : index
    %c0_147 = arith.constant 0 : index
    %161 = vector.load %arg10[%c0_144, %c0_145, %c0_146, %c0_147] : memref<1x12x1x8xf32, #tpu.memory_space<vmem>>, vector<1x1x1x8xf32>
    %162 = vector.shape_cast %161 : vector<1x1x1x8xf32> to vector<1x8xf32>
    %163 = vector.broadcast %162 : vector<1x8xf32> to vector<8x8xf32>
    %164 = arith.addf %160, %163 : vector<8x8xf32>
    %c0_148 = arith.constant 0 : index
    %c4_149 = arith.constant 4 : index
    %c0_150 = arith.constant 0 : index
    %c0_151 = arith.constant 0 : index
    %165 = vector.load %arg9[%c0_148, %c4_149, %c0_150, %c0_151] : memref<1x12x32x8xf32, #tpu.memory_space<vmem>>, vector<1x1x32x8xf32>
    %166 = vector.shape_cast %165 : vector<1x1x32x8xf32> to vector<32x8xf32>
    %cst_152 = arith.constant dense<0.000000e+00> : vector<8x8xf32>
    %167 = tpu.matmul %156, %166, %cst_152 {dimension_numbers = #tpu.dot_dimension_numbers<[1], [0], [0], [1], [0, 0, 1, 1], [], []>} : vector<8x32xf32>, vector<32x8xf32>, vector<8x8xf32> -> vector<8x8xf32>
    %c0_153 = arith.constant 0 : index
    %c4_154 = arith.constant 4 : index
    %c0_155 = arith.constant 0 : index
    %c0_156 = arith.constant 0 : index
    %168 = vector.load %arg10[%c0_153, %c4_154, %c0_155, %c0_156] : memref<1x12x1x8xf32, #tpu.memory_space<vmem>>, vector<1x1x1x8xf32>
    %169 = vector.shape_cast %168 : vector<1x1x1x8xf32> to vector<1x8xf32>
    %170 = vector.broadcast %169 : vector<1x8xf32> to vector<8x8xf32>
    %171 = arith.addf %167, %170 : vector<8x8xf32>
    %c0_157 = arith.constant 0 : index
    %c8_158 = arith.constant 8 : index
    %c0_159 = arith.constant 0 : index
    %c0_160 = arith.constant 0 : index
    %172 = vector.load %arg9[%c0_157, %c8_158, %c0_159, %c0_160] : memref<1x12x32x8xf32, #tpu.memory_space<vmem>>, vector<1x1x32x8xf32>
    %173 = vector.shape_cast %172 : vector<1x1x32x8xf32> to vector<32x8xf32>
    %cst_161 = arith.constant dense<0.000000e+00> : vector<8x8xf32>
    %174 = tpu.matmul %156, %173, %cst_161 {dimension_numbers = #tpu.dot_dimension_numbers<[1], [0], [0], [1], [0, 0, 1, 1], [], []>} : vector<8x32xf32>, vector<32x8xf32>, vector<8x8xf32> -> vector<8x8xf32>
    %c0_162 = arith.constant 0 : index
    %c8_163 = arith.constant 8 : index
    %c0_164 = arith.constant 0 : index
    %c0_165 = arith.constant 0 : index
    %175 = vector.load %arg10[%c0_162, %c8_163, %c0_164, %c0_165] : memref<1x12x1x8xf32, #tpu.memory_space<vmem>>, vector<1x1x1x8xf32>
    %176 = vector.shape_cast %175 : vector<1x1x1x8xf32> to vector<1x8xf32>
    %177 = vector.broadcast %176 : vector<1x8xf32> to vector<8x8xf32>
    %178 = arith.addf %174, %177 : vector<8x8xf32>
    "tpu.trace_start"() <{level = 10 : i32, message = "qd,kd->qk"}> : () -> ()
    %cst_166 = arith.constant dense<0.000000e+00> : vector<8x8xf32>
    %179 = tpu.matmul %164, %171, %cst_166 {dimension_numbers = #tpu.dot_dimension_numbers<[1], [1], [0], [0], [0, 0, 1, 0], [], []>} : vector<8x8xf32>, vector<8x8xf32>, vector<8x8xf32> -> vector<8x8xf32>
    "tpu.trace_stop"() : () -> ()
    %cst_167 = arith.constant dense<0xFF800000> : vector<8xf32>
    %180 = vector.multi_reduction <maximumf>, %179, %cst_167 [1] : vector<8x8xf32> to vector<8xf32>
    %181 = vector.shape_cast %180 : vector<8xf32> to vector<8x1xf32>
    %182 = vector.broadcast %181 : vector<8x1xf32> to vector<8x8xf32>
    %183 = arith.subf %179, %182 : vector<8x8xf32>
    %184 = math.exp %183 : vector<8x8xf32>
    %cst_168 = arith.constant dense<0.000000e+00> : vector<8xf32>
    %185 = vector.multi_reduction <add>, %184, %cst_168 [1] : vector<8x8xf32> to vector<8xf32>
    %186 = vector.shape_cast %185 : vector<8xf32> to vector<8x1xf32>
    %187 = tpu.reciprocal %186 {approx = true} : vector<8x1xf32> -> vector<8x1xf32>
    %188 = vector.broadcast %187 : vector<8x1xf32> to vector<8x8xf32>
    %189 = arith.mulf %184, %188 : vector<8x8xf32>
    %cst_169 = arith.constant dense<0.000000e+00> : vector<8x8xf32>
    %190 = tpu.matmul %189, %178, %cst_169 {dimension_numbers = #tpu.dot_dimension_numbers<[1], [0], [0], [1], [0, 0, 1, 1], [], []>} : vector<8x8xf32>, vector<8x8xf32>, vector<8x8xf32> -> vector<8x8xf32>
    %c0_170 = arith.constant 0 : index
    %c0_171 = arith.constant 0 : index
    %c0_172 = arith.constant 0 : index
    %c0_173 = arith.constant 0 : index
    %191 = vector.load %arg11[%c0_170, %c0_171, %c0_172, %c0_173] : memref<1x4x8x32xf32, #tpu.memory_space<vmem>>, vector<1x1x8x32xf32>
    %192 = vector.shape_cast %191 : vector<1x1x8x32xf32> to vector<8x32xf32>
    %cst_174 = arith.constant dense<0.000000e+00> : vector<8x32xf32>
    %193 = tpu.matmul %190, %192, %cst_174 {dimension_numbers = #tpu.dot_dimension_numbers<[1], [0], [0], [1], [0, 0, 1, 1], [], []>} : vector<8x8xf32>, vector<8x32xf32>, vector<8x32xf32> -> vector<8x32xf32>
    %194 = arith.addf %157, %193 : vector<8x32xf32>
    %c0_175 = arith.constant 0 : index
    %c1_176 = arith.constant 1 : index
    %c0_177 = arith.constant 0 : index
    %c0_178 = arith.constant 0 : index
    %195 = vector.load %arg9[%c0_175, %c1_176, %c0_177, %c0_178] : memref<1x12x32x8xf32, #tpu.memory_space<vmem>>, vector<1x1x32x8xf32>
    %196 = vector.shape_cast %195 : vector<1x1x32x8xf32> to vector<32x8xf32>
    %cst_179 = arith.constant dense<0.000000e+00> : vector<8x8xf32>
    %197 = tpu.matmul %156, %196, %cst_179 {dimension_numbers = #tpu.dot_dimension_numbers<[1], [0], [0], [1], [0, 0, 1, 1], [], []>} : vector<8x32xf32>, vector<32x8xf32>, vector<8x8xf32> -> vector<8x8xf32>
    %c0_180 = arith.constant 0 : index
    %c1_181 = arith.constant 1 : index
    %c0_182 = arith.constant 0 : index
    %c0_183 = arith.constant 0 : index
    %198 = vector.load %arg10[%c0_180, %c1_181, %c0_182, %c0_183] : memref<1x12x1x8xf32, #tpu.memory_space<vmem>>, vector<1x1x1x8xf32>
    %199 = vector.shape_cast %198 : vector<1x1x1x8xf32> to vector<1x8xf32>
    %200 = vector.broadcast %199 : vector<1x8xf32> to vector<8x8xf32>
    %201 = arith.addf %197, %200 : vector<8x8xf32>
    %c0_184 = arith.constant 0 : index
    %c5_185 = arith.constant 5 : index
    %c0_186 = arith.constant 0 : index
    %c0_187 = arith.constant 0 : index
    %202 = vector.load %arg9[%c0_184, %c5_185, %c0_186, %c0_187] : memref<1x12x32x8xf32, #tpu.memory_space<vmem>>, vector<1x1x32x8xf32>
    %203 = vector.shape_cast %202 : vector<1x1x32x8xf32> to vector<32x8xf32>
    %cst_188 = arith.constant dense<0.000000e+00> : vector<8x8xf32>
    %204 = tpu.matmul %156, %203, %cst_188 {dimension_numbers = #tpu.dot_dimension_numbers<[1], [0], [0], [1], [0, 0, 1, 1], [], []>} : vector<8x32xf32>, vector<32x8xf32>, vector<8x8xf32> -> vector<8x8xf32>
    %c0_189 = arith.constant 0 : index
    %c5_190 = arith.constant 5 : index
    %c0_191 = arith.constant 0 : index
    %c0_192 = arith.constant 0 : index
    %205 = vector.load %arg10[%c0_189, %c5_190, %c0_191, %c0_192] : memref<1x12x1x8xf32, #tpu.memory_space<vmem>>, vector<1x1x1x8xf32>
    %206 = vector.shape_cast %205 : vector<1x1x1x8xf32> to vector<1x8xf32>
    %207 = vector.broadcast %206 : vector<1x8xf32> to vector<8x8xf32>
    %208 = arith.addf %204, %207 : vector<8x8xf32>
    %c0_193 = arith.constant 0 : index
    %c9_194 = arith.constant 9 : index
    %c0_195 = arith.constant 0 : index
    %c0_196 = arith.constant 0 : index
    %209 = vector.load %arg9[%c0_193, %c9_194, %c0_195, %c0_196] : memref<1x12x32x8xf32, #tpu.memory_space<vmem>>, vector<1x1x32x8xf32>
    %210 = vector.shape_cast %209 : vector<1x1x32x8xf32> to vector<32x8xf32>
    %cst_197 = arith.constant dense<0.000000e+00> : vector<8x8xf32>
    %211 = tpu.matmul %156, %210, %cst_197 {dimension_numbers = #tpu.dot_dimension_numbers<[1], [0], [0], [1], [0, 0, 1, 1], [], []>} : vector<8x32xf32>, vector<32x8xf32>, vector<8x8xf32> -> vector<8x8xf32>
    %c0_198 = arith.constant 0 : index
    %c9_199 = arith.constant 9 : index
    %c0_200 = arith.constant 0 : index
    %c0_201 = arith.constant 0 : index
    %212 = vector.load %arg10[%c0_198, %c9_199, %c0_200, %c0_201] : memref<1x12x1x8xf32, #tpu.memory_space<vmem>>, vector<1x1x1x8xf32>
    %213 = vector.shape_cast %212 : vector<1x1x1x8xf32> to vector<1x8xf32>
    %214 = vector.broadcast %213 : vector<1x8xf32> to vector<8x8xf32>
    %215 = arith.addf %211, %214 : vector<8x8xf32>
    "tpu.trace_start"() <{level = 10 : i32, message = "qd,kd->qk"}> : () -> ()
    %cst_202 = arith.constant dense<0.000000e+00> : vector<8x8xf32>
    %216 = tpu.matmul %201, %208, %cst_202 {dimension_numbers = #tpu.dot_dimension_numbers<[1], [1], [0], [0], [0, 0, 1, 0], [], []>} : vector<8x8xf32>, vector<8x8xf32>, vector<8x8xf32> -> vector<8x8xf32>
    "tpu.trace_stop"() : () -> ()
    %cst_203 = arith.constant dense<0xFF800000> : vector<8xf32>
    %217 = vector.multi_reduction <maximumf>, %216, %cst_203 [1] : vector<8x8xf32> to vector<8xf32>
    %218 = vector.shape_cast %217 : vector<8xf32> to vector<8x1xf32>
    %219 = vector.broadcast %218 : vector<8x1xf32> to vector<8x8xf32>
    %220 = arith.subf %216, %219 : vector<8x8xf32>
    %221 = math.exp %220 : vector<8x8xf32>
    %cst_204 = arith.constant dense<0.000000e+00> : vector<8xf32>
    %222 = vector.multi_reduction <add>, %221, %cst_204 [1] : vector<8x8xf32> to vector<8xf32>
    %223 = vector.shape_cast %222 : vector<8xf32> to vector<8x1xf32>
    %224 = tpu.reciprocal %223 {approx = true} : vector<8x1xf32> -> vector<8x1xf32>
    %225 = vector.broadcast %224 : vector<8x1xf32> to vector<8x8xf32>
    %226 = arith.mulf %221, %225 : vector<8x8xf32>
    %cst_205 = arith.constant dense<0.000000e+00> : vector<8x8xf32>
    %227 = tpu.matmul %226, %215, %cst_205 {dimension_numbers = #tpu.dot_dimension_numbers<[1], [0], [0], [1], [0, 0, 1, 1], [], []>} : vector<8x8xf32>, vector<8x8xf32>, vector<8x8xf32> -> vector<8x8xf32>
    %c0_206 = arith.constant 0 : index
    %c1_207 = arith.constant 1 : index
    %c0_208 = arith.constant 0 : index
    %c0_209 = arith.constant 0 : index
    %228 = vector.load %arg11[%c0_206, %c1_207, %c0_208, %c0_209] : memref<1x4x8x32xf32, #tpu.memory_space<vmem>>, vector<1x1x8x32xf32>
    %229 = vector.shape_cast %228 : vector<1x1x8x32xf32> to vector<8x32xf32>
    %cst_210 = arith.constant dense<0.000000e+00> : vector<8x32xf32>
    %230 = tpu.matmul %227, %229, %cst_210 {dimension_numbers = #tpu.dot_dimension_numbers<[1], [0], [0], [1], [0, 0, 1, 1], [], []>} : vector<8x8xf32>, vector<8x32xf32>, vector<8x32xf32> -> vector<8x32xf32>
    %231 = arith.addf %194, %230 : vector<8x32xf32>
    %c0_211 = arith.constant 0 : index
    %c2_212 = arith.constant 2 : index
    %c0_213 = arith.constant 0 : index
    %c0_214 = arith.constant 0 : index
    %232 = vector.load %arg9[%c0_211, %c2_212, %c0_213, %c0_214] : memref<1x12x32x8xf32, #tpu.memory_space<vmem>>, vector<1x1x32x8xf32>
    %233 = vector.shape_cast %232 : vector<1x1x32x8xf32> to vector<32x8xf32>
    %cst_215 = arith.constant dense<0.000000e+00> : vector<8x8xf32>
    %234 = tpu.matmul %156, %233, %cst_215 {dimension_numbers = #tpu.dot_dimension_numbers<[1], [0], [0], [1], [0, 0, 1, 1], [], []>} : vector<8x32xf32>, vector<32x8xf32>, vector<8x8xf32> -> vector<8x8xf32>
    %c0_216 = arith.constant 0 : index
    %c2_217 = arith.constant 2 : index
    %c0_218 = arith.constant 0 : index
    %c0_219 = arith.constant 0 : index
    %235 = vector.load %arg10[%c0_216, %c2_217, %c0_218, %c0_219] : memref<1x12x1x8xf32, #tpu.memory_space<vmem>>, vector<1x1x1x8xf32>
    %236 = vector.shape_cast %235 : vector<1x1x1x8xf32> to vector<1x8xf32>
    %237 = vector.broadcast %236 : vector<1x8xf32> to vector<8x8xf32>
    %238 = arith.addf %234, %237 : vector<8x8xf32>
    %c0_220 = arith.constant 0 : index
    %c6_221 = arith.constant 6 : index
    %c0_222 = arith.constant 0 : index
    %c0_223 = arith.constant 0 : index
    %239 = vector.load %arg9[%c0_220, %c6_221, %c0_222, %c0_223] : memref<1x12x32x8xf32, #tpu.memory_space<vmem>>, vector<1x1x32x8xf32>
    %240 = vector.shape_cast %239 : vector<1x1x32x8xf32> to vector<32x8xf32>
    %cst_224 = arith.constant dense<0.000000e+00> : vector<8x8xf32>
    %241 = tpu.matmul %156, %240, %cst_224 {dimension_numbers = #tpu.dot_dimension_numbers<[1], [0], [0], [1], [0, 0, 1, 1], [], []>} : vector<8x32xf32>, vector<32x8xf32>, vector<8x8xf32> -> vector<8x8xf32>
    %c0_225 = arith.constant 0 : index
    %c6_226 = arith.constant 6 : index
    %c0_227 = arith.constant 0 : index
    %c0_228 = arith.constant 0 : index
    %242 = vector.load %arg10[%c0_225, %c6_226, %c0_227, %c0_228] : memref<1x12x1x8xf32, #tpu.memory_space<vmem>>, vector<1x1x1x8xf32>
    %243 = vector.shape_cast %242 : vector<1x1x1x8xf32> to vector<1x8xf32>
    %244 = vector.broadcast %243 : vector<1x8xf32> to vector<8x8xf32>
    %245 = arith.addf %241, %244 : vector<8x8xf32>
    %c0_229 = arith.constant 0 : index
    %c10_230 = arith.constant 10 : index
    %c0_231 = arith.constant 0 : index
    %c0_232 = arith.constant 0 : index
    %246 = vector.load %arg9[%c0_229, %c10_230, %c0_231, %c0_232] : memref<1x12x32x8xf32, #tpu.memory_space<vmem>>, vector<1x1x32x8xf32>
    %247 = vector.shape_cast %246 : vector<1x1x32x8xf32> to vector<32x8xf32>
    %cst_233 = arith.constant dense<0.000000e+00> : vector<8x8xf32>
    %248 = tpu.matmul %156, %247, %cst_233 {dimension_numbers = #tpu.dot_dimension_numbers<[1], [0], [0], [1], [0, 0, 1, 1], [], []>} : vector<8x32xf32>, vector<32x8xf32>, vector<8x8xf32> -> vector<8x8xf32>
    %c0_234 = arith.constant 0 : index
    %c10_235 = arith.constant 10 : index
    %c0_236 = arith.constant 0 : index
    %c0_237 = arith.constant 0 : index
    %249 = vector.load %arg10[%c0_234, %c10_235, %c0_236, %c0_237] : memref<1x12x1x8xf32, #tpu.memory_space<vmem>>, vector<1x1x1x8xf32>
    %250 = vector.shape_cast %249 : vector<1x1x1x8xf32> to vector<1x8xf32>
    %251 = vector.broadcast %250 : vector<1x8xf32> to vector<8x8xf32>
    %252 = arith.addf %248, %251 : vector<8x8xf32>
    "tpu.trace_start"() <{level = 10 : i32, message = "qd,kd->qk"}> : () -> ()
    %cst_238 = arith.constant dense<0.000000e+00> : vector<8x8xf32>
    %253 = tpu.matmul %238, %245, %cst_238 {dimension_numbers = #tpu.dot_dimension_numbers<[1], [1], [0], [0], [0, 0, 1, 0], [], []>} : vector<8x8xf32>, vector<8x8xf32>, vector<8x8xf32> -> vector<8x8xf32>
    "tpu.trace_stop"() : () -> ()
    %cst_239 = arith.constant dense<0xFF800000> : vector<8xf32>
    %254 = vector.multi_reduction <maximumf>, %253, %cst_239 [1] : vector<8x8xf32> to vector<8xf32>
    %255 = vector.shape_cast %254 : vector<8xf32> to vector<8x1xf32>
    %256 = vector.broadcast %255 : vector<8x1xf32> to vector<8x8xf32>
    %257 = arith.subf %253, %256 : vector<8x8xf32>
    %258 = math.exp %257 : vector<8x8xf32>
    %cst_240 = arith.constant dense<0.000000e+00> : vector<8xf32>
    %259 = vector.multi_reduction <add>, %258, %cst_240 [1] : vector<8x8xf32> to vector<8xf32>
    %260 = vector.shape_cast %259 : vector<8xf32> to vector<8x1xf32>
    %261 = tpu.reciprocal %260 {approx = true} : vector<8x1xf32> -> vector<8x1xf32>
    %262 = vector.broadcast %261 : vector<8x1xf32> to vector<8x8xf32>
    %263 = arith.mulf %258, %262 : vector<8x8xf32>
    %cst_241 = arith.constant dense<0.000000e+00> : vector<8x8xf32>
    %264 = tpu.matmul %263, %252, %cst_241 {dimension_numbers = #tpu.dot_dimension_numbers<[1], [0], [0], [1], [0, 0, 1, 1], [], []>} : vector<8x8xf32>, vector<8x8xf32>, vector<8x8xf32> -> vector<8x8xf32>
    %c0_242 = arith.constant 0 : index
    %c2_243 = arith.constant 2 : index
    %c0_244 = arith.constant 0 : index
    %c0_245 = arith.constant 0 : index
    %265 = vector.load %arg11[%c0_242, %c2_243, %c0_244, %c0_245] : memref<1x4x8x32xf32, #tpu.memory_space<vmem>>, vector<1x1x8x32xf32>
    %266 = vector.shape_cast %265 : vector<1x1x8x32xf32> to vector<8x32xf32>
    %cst_246 = arith.constant dense<0.000000e+00> : vector<8x32xf32>
    %267 = tpu.matmul %264, %266, %cst_246 {dimension_numbers = #tpu.dot_dimension_numbers<[1], [0], [0], [1], [0, 0, 1, 1], [], []>} : vector<8x8xf32>, vector<8x32xf32>, vector<8x32xf32> -> vector<8x32xf32>
    %268 = arith.addf %231, %267 : vector<8x32xf32>
    %c0_247 = arith.constant 0 : index
    %c3_248 = arith.constant 3 : index
    %c0_249 = arith.constant 0 : index
    %c0_250 = arith.constant 0 : index
    %269 = vector.load %arg9[%c0_247, %c3_248, %c0_249, %c0_250] : memref<1x12x32x8xf32, #tpu.memory_space<vmem>>, vector<1x1x32x8xf32>
    %270 = vector.shape_cast %269 : vector<1x1x32x8xf32> to vector<32x8xf32>
    %cst_251 = arith.constant dense<0.000000e+00> : vector<8x8xf32>
    %271 = tpu.matmul %156, %270, %cst_251 {dimension_numbers = #tpu.dot_dimension_numbers<[1], [0], [0], [1], [0, 0, 1, 1], [], []>} : vector<8x32xf32>, vector<32x8xf32>, vector<8x8xf32> -> vector<8x8xf32>
    %c0_252 = arith.constant 0 : index
    %c3_253 = arith.constant 3 : index
    %c0_254 = arith.constant 0 : index
    %c0_255 = arith.constant 0 : index
    %272 = vector.load %arg10[%c0_252, %c3_253, %c0_254, %c0_255] : memref<1x12x1x8xf32, #tpu.memory_space<vmem>>, vector<1x1x1x8xf32>
    %273 = vector.shape_cast %272 : vector<1x1x1x8xf32> to vector<1x8xf32>
    %274 = vector.broadcast %273 : vector<1x8xf32> to vector<8x8xf32>
    %275 = arith.addf %271, %274 : vector<8x8xf32>
    %c0_256 = arith.constant 0 : index
    %c7_257 = arith.constant 7 : index
    %c0_258 = arith.constant 0 : index
    %c0_259 = arith.constant 0 : index
    %276 = vector.load %arg9[%c0_256, %c7_257, %c0_258, %c0_259] : memref<1x12x32x8xf32, #tpu.memory_space<vmem>>, vector<1x1x32x8xf32>
    %277 = vector.shape_cast %276 : vector<1x1x32x8xf32> to vector<32x8xf32>
    %cst_260 = arith.constant dense<0.000000e+00> : vector<8x8xf32>
    %278 = tpu.matmul %156, %277, %cst_260 {dimension_numbers = #tpu.dot_dimension_numbers<[1], [0], [0], [1], [0, 0, 1, 1], [], []>} : vector<8x32xf32>, vector<32x8xf32>, vector<8x8xf32> -> vector<8x8xf32>
    %c0_261 = arith.constant 0 : index
    %c7_262 = arith.constant 7 : index
    %c0_263 = arith.constant 0 : index
    %c0_264 = arith.constant 0 : index
    %279 = vector.load %arg10[%c0_261, %c7_262, %c0_263, %c0_264] : memref<1x12x1x8xf32, #tpu.memory_space<vmem>>, vector<1x1x1x8xf32>
    %280 = vector.shape_cast %279 : vector<1x1x1x8xf32> to vector<1x8xf32>
    %281 = vector.broadcast %280 : vector<1x8xf32> to vector<8x8xf32>
    %282 = arith.addf %278, %281 : vector<8x8xf32>
    %c0_265 = arith.constant 0 : index
    %c11_266 = arith.constant 11 : index
    %c0_267 = arith.constant 0 : index
    %c0_268 = arith.constant 0 : index
    %283 = vector.load %arg9[%c0_265, %c11_266, %c0_267, %c0_268] : memref<1x12x32x8xf32, #tpu.memory_space<vmem>>, vector<1x1x32x8xf32>
    %284 = vector.shape_cast %283 : vector<1x1x32x8xf32> to vector<32x8xf32>
    %cst_269 = arith.constant dense<0.000000e+00> : vector<8x8xf32>
    %285 = tpu.matmul %156, %284, %cst_269 {dimension_numbers = #tpu.dot_dimension_numbers<[1], [0], [0], [1], [0, 0, 1, 1], [], []>} : vector<8x32xf32>, vector<32x8xf32>, vector<8x8xf32> -> vector<8x8xf32>
    %c0_270 = arith.constant 0 : index
    %c11_271 = arith.constant 11 : index
    %c0_272 = arith.constant 0 : index
    %c0_273 = arith.constant 0 : index
    %286 = vector.load %arg10[%c0_270, %c11_271, %c0_272, %c0_273] : memref<1x12x1x8xf32, #tpu.memory_space<vmem>>, vector<1x1x1x8xf32>
    %287 = vector.shape_cast %286 : vector<1x1x1x8xf32> to vector<1x8xf32>
    %288 = vector.broadcast %287 : vector<1x8xf32> to vector<8x8xf32>
    %289 = arith.addf %285, %288 : vector<8x8xf32>
    "tpu.trace_start"() <{level = 10 : i32, message = "qd,kd->qk"}> : () -> ()
    %cst_274 = arith.constant dense<0.000000e+00> : vector<8x8xf32>
    %290 = tpu.matmul %275, %282, %cst_274 {dimension_numbers = #tpu.dot_dimension_numbers<[1], [1], [0], [0], [0, 0, 1, 0], [], []>} : vector<8x8xf32>, vector<8x8xf32>, vector<8x8xf32> -> vector<8x8xf32>
    "tpu.trace_stop"() : () -> ()
    %cst_275 = arith.constant dense<0xFF800000> : vector<8xf32>
    %291 = vector.multi_reduction <maximumf>, %290, %cst_275 [1] : vector<8x8xf32> to vector<8xf32>
    %292 = vector.shape_cast %291 : vector<8xf32> to vector<8x1xf32>
    %293 = vector.broadcast %292 : vector<8x1xf32> to vector<8x8xf32>
    %294 = arith.subf %290, %293 : vector<8x8xf32>
    %295 = math.exp %294 : vector<8x8xf32>
    %cst_276 = arith.constant dense<0.000000e+00> : vector<8xf32>
    %296 = vector.multi_reduction <add>, %295, %cst_276 [1] : vector<8x8xf32> to vector<8xf32>
    %297 = vector.shape_cast %296 : vector<8xf32> to vector<8x1xf32>
    %298 = tpu.reciprocal %297 {approx = true} : vector<8x1xf32> -> vector<8x1xf32>
    %299 = vector.broadcast %298 : vector<8x1xf32> to vector<8x8xf32>
    %300 = arith.mulf %295, %299 : vector<8x8xf32>
    %cst_277 = arith.constant dense<0.000000e+00> : vector<8x8xf32>
    %301 = tpu.matmul %300, %289, %cst_277 {dimension_numbers = #tpu.dot_dimension_numbers<[1], [0], [0], [1], [0, 0, 1, 1], [], []>} : vector<8x8xf32>, vector<8x8xf32>, vector<8x8xf32> -> vector<8x8xf32>
    %c0_278 = arith.constant 0 : index
    %c3_279 = arith.constant 3 : index
    %c0_280 = arith.constant 0 : index
    %c0_281 = arith.constant 0 : index
    %302 = vector.load %arg11[%c0_278, %c3_279, %c0_280, %c0_281] : memref<1x4x8x32xf32, #tpu.memory_space<vmem>>, vector<1x1x8x32xf32>
    %303 = vector.shape_cast %302 : vector<1x1x8x32xf32> to vector<8x32xf32>
    %cst_282 = arith.constant dense<0.000000e+00> : vector<8x32xf32>
    %304 = tpu.matmul %301, %303, %cst_282 {dimension_numbers = #tpu.dot_dimension_numbers<[1], [0], [0], [1], [0, 0, 1, 1], [], []>} : vector<8x8xf32>, vector<8x32xf32>, vector<8x32xf32> -> vector<8x32xf32>
    %305 = arith.addf %268, %304 : vector<8x32xf32>
    %306 = tpu.concatenate %155, %305 in 0 : vector<8x32xf32>, vector<8x32xf32> -> vector<16x32xf32>
    %307 = vector.extract_strided_slice %5 {offsets = [0, 0], sizes = [1, 32], strides = [1, 1]} : vector<6x32xf32> to vector<1x32xf32>
    %308 = vector.broadcast %307 : vector<1x32xf32> to vector<16x32xf32>
    %309 = arith.addf %306, %308 : vector<16x32xf32>
    %310 = arith.addf %3, %309 : vector<16x32xf32>
    %311 = vector.extract_strided_slice %5 {offsets = [1, 0], sizes = [1, 32], strides = [1, 1]} : vector<6x32xf32> to vector<1x32xf32>
    %312 = vector.extract_strided_slice %5 {offsets = [2, 0], sizes = [1, 32], strides = [1, 1]} : vector<6x32xf32> to vector<1x32xf32>
    %cst_283 = arith.constant dense<0.000000e+00> : vector<16xf32>
    %313 = vector.multi_reduction <add>, %310, %cst_283 [1] : vector<16x32xf32> to vector<16xf32>
    %314 = vector.shape_cast %313 : vector<16xf32> to vector<16x1xf32>
    %cst_284 = arith.constant 3.200000e+01 : f32
    %315 = vector.broadcast %cst_284 : f32 to vector<16x1xf32>
    %316 = arith.divf %314, %315 : vector<16x1xf32>
    %317 = vector.broadcast %316 : vector<16x1xf32> to vector<16x32xf32>
    %318 = arith.subf %310, %317 : vector<16x32xf32>
    %319 = arith.mulf %318, %318 : vector<16x32xf32>
    %cst_285 = arith.constant dense<0.000000e+00> : vector<16xf32>
    %320 = vector.multi_reduction <add>, %319, %cst_285 [1] : vector<16x32xf32> to vector<16xf32>
    %321 = vector.shape_cast %320 : vector<16xf32> to vector<16x1xf32>
    %cst_286 = arith.constant 3.200000e+01 : f32
    %322 = vector.broadcast %cst_286 : f32 to vector<16x1xf32>
    %323 = arith.divf %321, %322 : vector<16x1xf32>
    %324 = vector.broadcast %316 : vector<16x1xf32> to vector<16x32xf32>
    %325 = arith.subf %310, %324 : vector<16x32xf32>
    %cst_287 = arith.constant 9.99999974E-6 : f32
    %326 = vector.broadcast %cst_287 : f32 to vector<16x1xf32>
    %327 = arith.addf %323, %326 : vector<16x1xf32>
    %328 = math.rsqrt %327 : vector<16x1xf32>
    %329 = vector.broadcast %328 : vector<16x1xf32> to vector<16x32xf32>
    %330 = arith.mulf %325, %329 : vector<16x32xf32>
    %331 = vector.broadcast %311 : vector<1x32xf32> to vector<16x32xf32>
    %332 = arith.mulf %330, %331 : vector<16x32xf32>
    %333 = vector.broadcast %312 : vector<1x32xf32> to vector<16x32xf32>
    %334 = arith.addf %332, %333 : vector<16x32xf32>
    %c0_288 = arith.constant 0 : index
    %c0_289 = arith.constant 0 : index
    %c0_290 = arith.constant 0 : index
    %335 = vector.load %arg12[%c0_288, %c0_289, %c0_290] : memref<1x32x32xf32, #tpu.memory_space<vmem>>, vector<1x32x32xf32>
    %336 = vector.shape_cast %335 : vector<1x32x32xf32> to vector<32x32xf32>
    %cst_291 = arith.constant dense<0.000000e+00> : vector<16x32xf32>
    %337 = tpu.matmul %334, %336, %cst_291 {dimension_numbers = #tpu.dot_dimension_numbers<[1], [0], [0], [1], [0, 0, 1, 1], [], []>} : vector<16x32xf32>, vector<32x32xf32>, vector<16x32xf32> -> vector<16x32xf32>
    %c0_292 = arith.constant 0 : index
    %c0_293 = arith.constant 0 : index
    %c0_294 = arith.constant 0 : index
    %338 = vector.load %arg13[%c0_292, %c0_293, %c0_294] : memref<1x1x32xf32, #tpu.memory_space<vmem>>, vector<1x1x32xf32>
    %339 = vector.shape_cast %338 : vector<1x1x32xf32> to vector<1x32xf32>
    %340 = vector.broadcast %339 : vector<1x32xf32> to vector<16x32xf32>
    %341 = arith.addf %337, %340 : vector<16x32xf32>
    %c0_295 = arith.constant 0 : index
    %c0_296 = arith.constant 0 : index
    %c0_297 = arith.constant 0 : index
    %342 = vector.load %arg14[%c0_295, %c0_296, %c0_297] : memref<1x32x64xf32, #tpu.memory_space<vmem>>, vector<1x32x64xf32>
    %343 = vector.shape_cast %342 : vector<1x32x64xf32> to vector<32x64xf32>
    %cst_298 = arith.constant dense<0.000000e+00> : vector<16x64xf32>
    %344 = tpu.matmul %334, %343, %cst_298 {dimension_numbers = #tpu.dot_dimension_numbers<[1], [0], [0], [1], [0, 0, 1, 1], [], []>} : vector<16x32xf32>, vector<32x64xf32>, vector<16x64xf32> -> vector<16x64xf32>
    %c0_299 = arith.constant 0 : index
    %c0_300 = arith.constant 0 : index
    %c0_301 = arith.constant 0 : index
    %345 = vector.load %arg15[%c0_299, %c0_300, %c0_301] : memref<1x1x64xf32, #tpu.memory_space<vmem>>, vector<1x1x64xf32>
    %346 = vector.shape_cast %345 : vector<1x1x64xf32> to vector<1x64xf32>
    %347 = vector.broadcast %346 : vector<1x64xf32> to vector<16x64xf32>
    %348 = arith.addf %344, %347 : vector<16x64xf32>
    %cst_302 = arith.constant 5.000000e-01 : f32
    %349 = vector.broadcast %cst_302 : f32 to vector<16x64xf32>
    %350 = arith.mulf %349, %348 : vector<16x64xf32>
    %cst_303 = arith.constant 4.471500e-02 : f32
    %351 = vector.broadcast %cst_303 : f32 to vector<16x64xf32>
    %352 = arith.mulf %351, %348 : vector<16x64xf32>
    %353 = arith.mulf %352, %348 : vector<16x64xf32>
    %354 = arith.mulf %353, %348 : vector<16x64xf32>
    %355 = arith.addf %348, %354 : vector<16x64xf32>
    %cst_304 = arith.constant 0.797884583 : f32
    %356 = vector.broadcast %cst_304 : f32 to vector<16x64xf32>
    %357 = arith.mulf %356, %355 : vector<16x64xf32>
    %358 = math.tanh %357 : vector<16x64xf32>
    %cst_305 = arith.constant 1.000000e+00 : f32
    %359 = vector.broadcast %cst_305 : f32 to vector<16x64xf32>
    %360 = arith.addf %359, %358 : vector<16x64xf32>
    %361 = arith.mulf %350, %360 : vector<16x64xf32>
    %362 = math.cos %341 : vector<16x32xf32>
    %c0_306 = arith.constant 0 : index
    %c0_307 = arith.constant 0 : index
    %c0_308 = arith.constant 0 : index
    %c0_309 = arith.constant 0 : index
    %363 = vector.load %arg16[%c0_306, %c0_307, %c0_308, %c0_309] : memref<1x2x32x32xf32, #tpu.memory_space<vmem>>, vector<1x1x32x32xf32>
    %364 = vector.shape_cast %363 : vector<1x1x32x32xf32> to vector<32x32xf32>
    %cst_310 = arith.constant dense<0.000000e+00> : vector<16x32xf32>
    %365 = tpu.matmul %362, %364, %cst_310 {dimension_numbers = #tpu.dot_dimension_numbers<[1], [0], [0], [1], [0, 0, 1, 1], [], []>} : vector<16x32xf32>, vector<32x32xf32>, vector<16x32xf32> -> vector<16x32xf32>
    %366 = math.sin %341 : vector<16x32xf32>
    %c0_311 = arith.constant 0 : index
    %c1_312 = arith.constant 1 : index
    %c0_313 = arith.constant 0 : index
    %c0_314 = arith.constant 0 : index
    %367 = vector.load %arg16[%c0_311, %c1_312, %c0_313, %c0_314] : memref<1x2x32x32xf32, #tpu.memory_space<vmem>>, vector<1x1x32x32xf32>
    %368 = vector.shape_cast %367 : vector<1x1x32x32xf32> to vector<32x32xf32>
    %cst_315 = arith.constant dense<0.000000e+00> : vector<16x32xf32>
    %369 = tpu.matmul %366, %368, %cst_315 {dimension_numbers = #tpu.dot_dimension_numbers<[1], [0], [0], [1], [0, 0, 1, 1], [], []>} : vector<16x32xf32>, vector<32x32xf32>, vector<16x32xf32> -> vector<16x32xf32>
    %370 = arith.addf %365, %369 : vector<16x32xf32>
    %c0_316 = arith.constant 0 : index
    %c0_317 = arith.constant 0 : index
    %c0_318 = arith.constant 0 : index
    %371 = vector.load %arg17[%c0_316, %c0_317, %c0_318] : memref<1x64x32xf32, #tpu.memory_space<vmem>>, vector<1x64x32xf32>
    %372 = vector.shape_cast %371 : vector<1x64x32xf32> to vector<64x32xf32>
    %cst_319 = arith.constant dense<0.000000e+00> : vector<16x32xf32>
    %373 = tpu.matmul %361, %372, %cst_319 {dimension_numbers = #tpu.dot_dimension_numbers<[1], [0], [0], [1], [0, 0, 1, 1], [], []>} : vector<16x64xf32>, vector<64x32xf32>, vector<16x32xf32> -> vector<16x32xf32>
    %374 = arith.addf %370, %373 : vector<16x32xf32>
    %375 = vector.extract_strided_slice %5 {offsets = [3, 0], sizes = [1, 32], strides = [1, 1]} : vector<6x32xf32> to vector<1x32xf32>
    %376 = vector.broadcast %375 : vector<1x32xf32> to vector<16x32xf32>
    %377 = arith.addf %374, %376 : vector<16x32xf32>
    %378 = arith.addf %334, %377 : vector<16x32xf32>
    %379 = vector.extract_strided_slice %5 {offsets = [4, 0], sizes = [1, 32], strides = [1, 1]} : vector<6x32xf32> to vector<1x32xf32>
    %380 = vector.extract_strided_slice %5 {offsets = [5, 0], sizes = [1, 32], strides = [1, 1]} : vector<6x32xf32> to vector<1x32xf32>
    %cst_320 = arith.constant dense<0.000000e+00> : vector<16xf32>
    %381 = vector.multi_reduction <add>, %378, %cst_320 [1] : vector<16x32xf32> to vector<16xf32>
    %382 = vector.shape_cast %381 : vector<16xf32> to vector<16x1xf32>
    %cst_321 = arith.constant 3.200000e+01 : f32
    %383 = vector.broadcast %cst_321 : f32 to vector<16x1xf32>
    %384 = arith.divf %382, %383 : vector<16x1xf32>
    %385 = vector.broadcast %384 : vector<16x1xf32> to vector<16x32xf32>
    %386 = arith.subf %378, %385 : vector<16x32xf32>
    %387 = arith.mulf %386, %386 : vector<16x32xf32>
    %cst_322 = arith.constant dense<0.000000e+00> : vector<16xf32>
    %388 = vector.multi_reduction <add>, %387, %cst_322 [1] : vector<16x32xf32> to vector<16xf32>
    %389 = vector.shape_cast %388 : vector<16xf32> to vector<16x1xf32>
    %cst_323 = arith.constant 3.200000e+01 : f32
    %390 = vector.broadcast %cst_323 : f32 to vector<16x1xf32>
    %391 = arith.divf %389, %390 : vector<16x1xf32>
    %392 = vector.broadcast %384 : vector<16x1xf32> to vector<16x32xf32>
    %393 = arith.subf %378, %392 : vector<16x32xf32>
    %cst_324 = arith.constant 9.99999974E-6 : f32
    %394 = vector.broadcast %cst_324 : f32 to vector<16x1xf32>
    %395 = arith.addf %391, %394 : vector<16x1xf32>
    %396 = math.rsqrt %395 : vector<16x1xf32>
    %397 = vector.broadcast %396 : vector<16x1xf32> to vector<16x32xf32>
    %398 = arith.mulf %393, %397 : vector<16x32xf32>
    %399 = vector.broadcast %379 : vector<1x32xf32> to vector<16x32xf32>
    %400 = arith.mulf %398, %399 : vector<16x32xf32>
    %401 = vector.broadcast %380 : vector<1x32xf32> to vector<16x32xf32>
    %402 = arith.addf %400, %401 : vector<16x32xf32>
    %c0_325 = arith.constant 0 : index
    %c0_326 = arith.constant 0 : index
    %403 = vector.load %arg20[%c0_325, %c0_326] : memref<16x32xf32, #tpu.memory_space<vmem>>, vector<16x32xf32>
    tpu.vector_store %arg20[%c0_325, %c0_326], %402 {strides = array<i32>} : memref<16x32xf32, #tpu.memory_space<vmem>>, vector<16x32xf32>,
    %c1_i32 = arith.constant 1 : i32
    %404 = arith.cmpi eq, %arg1, %c1_i32 : i32
    %405 = arith.extui %404 : i1 to i32
    %c0_i32_327 = arith.constant 0 : i32
    %406 = arith.cmpi ne, %405, %c0_i32_327 : i32
    scf.if %406 {
      %407 = vector.extract_strided_slice %402 {offsets = [7, 0], sizes = [1, 32], strides = [1, 1]} : vector<16x32xf32> to vector<1x32xf32>
      %408 = vector.extract_strided_slice %402 {offsets = [15, 0], sizes = [1, 32], strides = [1, 1]} : vector<16x32xf32> to vector<1x32xf32>
      %409 = tpu.concatenate %407, %408 in 0 : vector<1x32xf32>, vector<1x32xf32> -> vector<2x32xf32>
      %c0_328 = arith.constant 0 : index
      %c0_329 = arith.constant 0 : index
      %410 = vector.load %arg6[%c0_328, %c0_329] : memref<2x32xf32, #tpu.memory_space<vmem>>, vector<1x32xf32>
      %c1_330 = arith.constant 1 : index
      %c0_331 = arith.constant 0 : index
      %411 = vector.load %arg6[%c1_330, %c0_331] : memref<2x32xf32, #tpu.memory_space<vmem>>, vector<1x32xf32>
      %cst_332 = arith.constant dense<0.000000e+00> : vector<2xf32>
      %412 = vector.multi_reduction <add>, %409, %cst_332 [1] : vector<2x32xf32> to vector<2xf32>
      %413 = vector.shape_cast %412 : vector<2xf32> to vector<2x1xf32>
      %cst_333 = arith.constant 3.200000e+01 : f32
      %414 = vector.broadcast %cst_333 : f32 to vector<2x1xf32>
      %415 = arith.divf %413, %414 : vector<2x1xf32>
      %416 = vector.broadcast %415 : vector<2x1xf32> to vector<2x32xf32>
      %417 = arith.subf %409, %416 : vector<2x32xf32>
      %418 = arith.mulf %417, %417 : vector<2x32xf32>
      %cst_334 = arith.constant dense<0.000000e+00> : vector<2xf32>
      %419 = vector.multi_reduction <add>, %418, %cst_334 [1] : vector<2x32xf32> to vector<2xf32>
      %420 = vector.shape_cast %419 : vector<2xf32> to vector<2x1xf32>
      %cst_335 = arith.constant 3.200000e+01 : f32
      %421 = vector.broadcast %cst_335 : f32 to vector<2x1xf32>
      %422 = arith.divf %420, %421 : vector<2x1xf32>
      %423 = vector.broadcast %415 : vector<2x1xf32> to vector<2x32xf32>
      %424 = arith.subf %409, %423 : vector<2x32xf32>
      %cst_336 = arith.constant 9.99999974E-6 : f32
      %425 = vector.broadcast %cst_336 : f32 to vector<2x1xf32>
      %426 = arith.addf %422, %425 : vector<2x1xf32>
      %427 = math.rsqrt %426 : vector<2x1xf32>
      %428 = vector.broadcast %427 : vector<2x1xf32> to vector<2x32xf32>
      %429 = arith.mulf %424, %428 : vector<2x32xf32>
      %430 = vector.broadcast %410 : vector<1x32xf32> to vector<2x32xf32>
      %431 = arith.mulf %429, %430 : vector<2x32xf32>
      %432 = vector.broadcast %411 : vector<1x32xf32> to vector<2x32xf32>
      %433 = arith.addf %431, %432 : vector<2x32xf32>
      %c0_337 = arith.constant 0 : index
      %c0_338 = arith.constant 0 : index
      %434 = vector.load %arg7[%c0_337, %c0_338] : memref<32x8xf32, #tpu.memory_space<vmem>>, vector<32x8xf32>
      %cst_339 = arith.constant dense<0.000000e+00> : vector<2x8xf32>
      %435 = tpu.matmul %433, %434, %cst_339 {dimension_numbers = #tpu.dot_dimension_numbers<[1], [0], [0], [1], [0, 0, 1, 1], [], []>} : vector<2x32xf32>, vector<32x8xf32>, vector<2x8xf32> -> vector<2x8xf32>
      %c0_340 = arith.constant 0 : index
      %c0_341 = arith.constant 0 : index
      %436 = vector.load %arg8[%c0_340, %c0_341] : memref<1x8xf32, #tpu.memory_space<vmem>>, vector<1x8xf32>
      %437 = vector.broadcast %436 : vector<1x8xf32> to vector<2x8xf32>
      %438 = arith.addf %435, %437 : vector<2x8xf32>
      %c0_342 = arith.constant 0 : index
      %c0_343 = arith.constant 0 : index
      %439 = vector.load %arg19[%c0_342, %c0_343] : memref<2x8xf32, #tpu.memory_space<vmem>>, vector<2x8xf32>
      tpu.vector_store %arg19[%c0_342, %c0_343], %438 {strides = array<i32>} : memref<2x8xf32, #tpu.memory_space<vmem>>, vector<2x8xf32>,
    } else {
    }
    return
  }
  func.func @transform_0(%arg0: i32, %arg1: i32) -> (i32, i32) {
    %c0_i32 = arith.constant 0 : i32
    %c0_i32_0 = arith.constant 0 : i32
    return %arg0, %c0_i32 : i32, i32
  }
  func.func @transform_1(%arg0: i32, %arg1: i32) -> (i32, i32) {
    %c0_i32 = arith.constant 0 : i32
    %c0_i32_0 = arith.constant 0 : i32
    %c0_i32_1 = arith.constant 0 : i32
    return %c0_i32, %c0_i32_0 : i32, i32
  }
  func.func @transform_2(%arg0: i32, %arg1: i32) -> (i32, i32) {
    %c0_i32 = arith.constant 0 : i32
    %c0_i32_0 = arith.constant 0 : i32
    %c0_i32_1 = arith.constant 0 : i32
    return %c0_i32, %c0_i32_0 : i32, i32
  }
  func.func @transform_3(%arg0: i32, %arg1: i32) -> (i32, i32) {
    %c0_i32 = arith.constant 0 : i32
    %c0_i32_0 = arith.constant 0 : i32
    %c0_i32_1 = arith.constant 0 : i32
    return %c0_i32, %c0_i32_0 : i32, i32
  }
  func.func @transform_4(%arg0: i32, %arg1: i32) -> (i32, i32) {
    %c0_i32 = arith.constant 0 : i32
    %c0_i32_0 = arith.constant 0 : i32
    %c0_i32_1 = arith.constant 0 : i32
    return %c0_i32, %c0_i32_0 : i32, i32
  }
  func.func @transform_5(%arg0: i32, %arg1: i32) -> (i32, i32) {
    %c0_i32 = arith.constant 0 : i32
    %c0_i32_0 = arith.constant 0 : i32
    %c0_i32_1 = arith.constant 0 : i32
    return %c0_i32, %c0_i32_0 : i32, i32
  }
  func.func @transform_6(%arg0: i32, %arg1: i32) -> (i32, i32) {
    %c0_i32 = arith.constant 0 : i32
    %c0_i32_0 = arith.constant 0 : i32
    %c0_i32_1 = arith.constant 0 : i32
    return %c0_i32, %c0_i32_0 : i32, i32
  }
  func.func @transform_7(%arg0: i32, %arg1: i32) -> (i32, i32, i32, i32) {
    %c0_i32 = arith.constant 0 : i32
    %c0_i32_0 = arith.constant 0 : i32
    %c0_i32_1 = arith.constant 0 : i32
    %c0_i32_2 = arith.constant 0 : i32
    return %arg1, %c0_i32, %c0_i32_0, %c0_i32_1 : i32, i32, i32, i32
  }
  func.func @transform_8(%arg0: i32, %arg1: i32) -> (i32, i32, i32, i32) {
    %c0_i32 = arith.constant 0 : i32
    %c0_i32_0 = arith.constant 0 : i32
    %c0_i32_1 = arith.constant 0 : i32
    %c0_i32_2 = arith.constant 0 : i32
    return %arg1, %c0_i32, %c0_i32_0, %c0_i32_1 : i32, i32, i32, i32
  }
  func.func @transform_9(%arg0: i32, %arg1: i32) -> (i32, i32, i32, i32) {
    %c0_i32 = arith.constant 0 : i32
    %c0_i32_0 = arith.constant 0 : i32
    %c0_i32_1 = arith.constant 0 : i32
    %c0_i32_2 = arith.constant 0 : i32
    return %arg1, %c0_i32, %c0_i32_0, %c0_i32_1 : i32, i32, i32, i32
  }
  func.func @transform_10(%arg0: i32, %arg1: i32) -> (i32, i32, i32) {
    %c0_i32 = arith.constant 0 : i32
    %c0_i32_0 = arith.constant 0 : i32
    %c0_i32_1 = arith.constant 0 : i32
    return %arg1, %c0_i32, %c0_i32_0 : i32, i32, i32
  }
  func.func @transform_11(%arg0: i32, %arg1: i32) -> (i32, i32, i32) {
    %c0_i32 = arith.constant 0 : i32
    %c0_i32_0 = arith.constant 0 : i32
    %c0_i32_1 = arith.constant 0 : i32
    return %arg1, %c0_i32, %c0_i32_0 : i32, i32, i32
  }
  func.func @transform_12(%arg0: i32, %arg1: i32) -> (i32, i32, i32) {
    %c0_i32 = arith.constant 0 : i32
    %c0_i32_0 = arith.constant 0 : i32
    %c0_i32_1 = arith.constant 0 : i32
    return %arg1, %c0_i32, %c0_i32_0 : i32, i32, i32
  }
  func.func @transform_13(%arg0: i32, %arg1: i32) -> (i32, i32, i32) {
    %c0_i32 = arith.constant 0 : i32
    %c0_i32_0 = arith.constant 0 : i32
    %c0_i32_1 = arith.constant 0 : i32
    return %arg1, %c0_i32, %c0_i32_0 : i32, i32, i32
  }
  func.func @transform_14(%arg0: i32, %arg1: i32) -> (i32, i32, i32, i32) {
    %c0_i32 = arith.constant 0 : i32
    %c0_i32_0 = arith.constant 0 : i32
    %c0_i32_1 = arith.constant 0 : i32
    %c0_i32_2 = arith.constant 0 : i32
    return %arg1, %c0_i32, %c0_i32_0, %c0_i32_1 : i32, i32, i32, i32
  }
  func.func @transform_15(%arg0: i32, %arg1: i32) -> (i32, i32, i32) {
    %c0_i32 = arith.constant 0 : i32
    %c0_i32_0 = arith.constant 0 : i32
    %c0_i32_1 = arith.constant 0 : i32
    return %arg1, %c0_i32, %c0_i32_0 : i32, i32, i32
  }
  func.func @transform_16(%arg0: i32, %arg1: i32) -> (i32, i32, i32) {
    %c0_i32 = arith.constant 0 : i32
    %c0_i32_0 = arith.constant 0 : i32
    %c0_i32_1 = arith.constant 0 : i32
    return %arg1, %c0_i32, %c0_i32_0 : i32, i32, i32
  }
  func.func @transform_17(%arg0: i32, %arg1: i32) -> (i32, i32) {
    %c0_i32 = arith.constant 0 : i32
    %c0_i32_0 = arith.constant 0 : i32
    return %arg0, %c0_i32 : i32, i32
  }
}

</mosaic_0001>

<bundles_post_ra>
// kernel: tpu_custom_call.1
= control target key start
LH: loop header
LB: loop body
LE: loop exit
PB: predicated region body
PF: predicated region fallthrough
CT: control target
= control target key end

     0   :  { %s8152_s0 = inlined_call_operand.vmem [shape: f32[16,4], index: 0, kind: input, shape index: {}]   ;;  %s8153_s1 = inlined_call_operand.vmem [shape: f32[16,32], index: 1, kind: input, shape index: {}]   ;;  %s8154_s2 = inlined_call_operand.vmem [shape: f32[4,32], index: 2, kind: input, shape index: {}]   ;;  %s8155_s3 = inlined_call_operand.vmem [shape: f32[1,32], index: 3, kind: input, shape index: {}]   ;;  %s8156_s4 = inlined_call_operand.vmem [shape: f32[2,32], index: 4, kind: input, shape index: {}]   ;;  %s8157_s5 = inlined_call_operand.vmem [shape: f32[32,8], index: 5, kind: input, shape index: {}]   ;;  %s8158_s6 = inlined_call_operand.vmem [shape: f32[1,8], index: 6, kind: input, shape index: {}]   ;;  %s8159_s7 = inlined_call_operand.vmem [shape: f32[2,12,32,8], index: 7, kind: input, shape index: {}]   ;;  %s8160_s8 = inlined_call_operand.vmem [shape: f32[2,12,1,8], index: 8, kind: input, shape index: {}]   ;;  %s8161_s9 = inlined_call_operand.vmem [shape: f32[2,4,8,32], index: 9, kind: input, shape index: {}]   ;;  %s8162_s10 = inlined_call_operand.vmem [shape: f32[2,32,32], index: 10, kind: input, shape index: {}]   ;;  %s8163_s11 = inlined_call_operand.vmem [shape: f32[2,1,32], index: 11, kind: input, shape index: {}]   ;;  %s8164_s12 = inlined_call_operand.vmem [shape: f32[2,32,64], index: 12, kind: input, shape index: {}]   ;;  %s8165_s13 = inlined_call_operand.vmem [shape: f32[2,1,64], index: 13, kind: input, shape index: {}]   ;;  %s8166_s14 = inlined_call_operand.vmem [shape: f32[2,2,32,32], index: 14, kind: input, shape index: {}]   ;;  %s8167_s15 = inlined_call_operand.vmem [shape: f32[2,64,32], index: 15, kind: input, shape index: {}]   ;;  %s8168_s16 = inlined_call_operand.vmem [shape: f32[2,6,32], index: 16, kind: input, shape index: {}]   ;;  %s8169_s17 = inlined_call_operand.hbm [shape: f32[2,8], index: 17, kind: output, shape index: {}]  }
   0x1   :  { %8192 = sst [smem:[#allocation23_spill]] %s8152_s0 }
   0x2   :  { %8193 = sst [smem:[#allocation24_spill]] %s8153_s1 }
   0x3   :  { %8194 = sst [smem:[#allocation25_spill]] %s8156_s4 }
   0x4   :  { %8195 = sst [smem:[#allocation26_spill]] %s8157_s5 }
   0x5   :  { %8196 = sst [smem:[#allocation27_spill]] %s8158_s6 }
   0x6   :  { %8197 = sst [smem:[#allocation28_spill]] %s8159_s7 }
   0x7   :  { %8198 = sst [smem:[#allocation29_spill]] %s8161_s9 }
   0x8   :  { %8199 = sst [smem:[#allocation30_spill]] %s8162_s10 }
   0x9   :  { %8200 = sst [smem:[#allocation31_spill]] %s8169_s17 }
   0xa   :  { %22 = vsyncpa [#allocation4], 0  ;;  %s7163_s24 = smov 0   ;;  %s7165_s25 = smov 0  }
   0xb   :  { %s7167_s26 = smov 0  }
   0xc LB: > { %8201 = sst [smem:[#allocation6_spill]] %s7056_s25  ;;  %s37_s28 = sadd.s32 1, %s7056_s25  ;;  %s7060_s26 = sphi %s7167_s26, %s28_s26   ;;  %s7056_s25 = sphi %s7165_s25, %s8249_s25   ;;  %s7052_s24 = sphi %s7163_s24, %s8248_s24  }
   0xd   : > { %8202 = sst [smem:[#allocation7_spill]] %s7060_s26  ;;  %p38_p0 = scmp.ge.s32.totalorder %s37_s28, 2 }
   0xe   : > { %p5971_p1 = scmp.ge.s32.totalorder %s7060_s26, 1  ;;  %p595_p2 = scmp.lt.s32.totalorder %s7060_s26, 3 }
   0xf   : > { %s8251_s28 = smov (%p38_p0, %s37_s28), 0 }
  0x10   : > { %8203 = sst [smem:[#allocation8_spill]] %s8251_s28  ;;  %p596_p3 = pnand %p5971_p1, %p595_p2 }
  0x12   : > { %599 = sbr.rel (%p596_p3) target bundleno = 8945 (0x22f1), region = 88 }
  0x17   : > { %p692_p4 = scmp.lt.s32.totalorder %s7052_s24, 1  ;;  %s8204_s9 = sld [smem:[#allocation29_spill]] }
  0x18   : > { %s8205_s7 = sld [smem:[#allocation28_spill]]  ;;  %p5984_p5 = scmp.ne.s32.totalorder %s7052_s24, 0 }
  0x19   : > { %s7186_s29 = scalar_select %p692_p4, %s7052_s24, 1 }
  0x1a   : > { %s8206_s10 = sld [smem:[#allocation30_spill]] }
  0x1b   : > { %s6904_s0 = smul.u32 384, %s7186_s29  ;;  %s6226_s30 = sshll.u32 %s7186_s29, 5 }
  0x1c   : > { %s6905_s18 = smul.u32 12, %s7186_s29  ;;  %s713_s19 = scalar_lea.vmem %s8163_s11, %s7186_s29 }
  0x1d   : > { %s7194_s20 = scalar_lea.vmem %s8204_s9, %s6226_s30  ;;  %s7218_s21 = scalar_lea.vmem %s8164_s12, %s6226_s30 }
  0x1e   : > { %s7199_s23 = scalar_lea.vmem %s8205_s7, %s6904_s0  ;;  %s7209_s6 = scalar_lea.vmem %s8160_s8, %s6905_s18 }
  0x1f   : > { %s721_s27 = scalar_lea.vmem %s8165_s13, %s7186_s29  ;;  %s6229_s28 = sshll.u32 %s7186_s29, 6 }
  0x20   : > { %s7204_s25 = scalar_lea.vmem %s8206_s10, %s6226_s30  ;;  %s5983_s7 = sshll.u32 %s7186_s29, 3 }
  0x21   : > { %8207 = sst [smem:[#allocation9_spill]] %s7204_s25  ;;  %s7229_s17 = scalar_lea.vmem %s8166_s14, %s6229_s28 }
  0x22   : > { %s7234_s4 = scalar_lea.vmem %s8167_s15, %s6229_s28  ;;  %s7239_s30 = scalar_lea.vmem %s8168_s16, %s5983_s7 }
  0x23   : > { %739 = sbr.rel (%p5984_p5) target bundleno = 243 (0xf3), region = 92  ;;  %s8208_s22 = sld [smem:[#allocation23_spill]] (!%p5984_p5) }
  0x24   : > { %s8209_s1 = sld [smem:[#allocation24_spill]] (!%p5984_p5) }
  0x28   : > { %v742_v0 = vld [vmem:[%s8154_s2] sm:$0xf]  ;;  %vm757_vm0 = vcmask 1043456   ;;  %vm750_vm1 = vcmask 31744   ;;  %vm840_vm2 = vcmask 261120  }
  0x29   : > { %v740_v1 = vld [vmem:[%s8208_s22] sm:$0xff]  ;;  %v741_v2 = vld [vmem:[%s8208_s22 + $0x8] sm:$0xff]  ;;  %6441 = vmatprep.subr.msk.mxu0 %vm757_vm0, %v742_v0 }
  0x2a   : > { %6443 = vmatprep.mubr.msk.f32.mxu0 %vm750_vm1, %v740_v1  ;;  %6442 = vmatpush3.msk.msra.mxu0 %vm757_vm0, %v742_v0  ;;  %v5985_v3 = vld [vmem:[%s8155_s3] ss:$0 sm:$0xff]  ;;  %v837_v5 = vld [vmem:[%s8209_s1 + $0x8] sm:$0xff] }
  0x2b   : > { %6444 = vmatmul.mubr.msk.f32.vlgmr.msra.gmra.mxu0 %vm750_vm1, %v741_v2  ;;  %v836_v8 = vld [vmem:[%s8209_s1] sm:$0xff] }
  0xeb   : > { %v6445_v4 = vpop.f32.mrf.mxu0 }
  0xec   : > { %v833_v6 = vadd.f32 %v6445_v4, %v5985_v3 }
  0xed   : > { %v827_v7 = vpop.f32.mrf.mxu0 }
  0xee   : > { %v839_v9 = vadd.f32 %v837_v5, %v833_v6  ;;  %v828_v10 = vadd.f32 %v5985_v3, %v827_v7 }
  0xf0   : > { %842 = vst.msk [vmem:[#allocation2 + $0x8] sm:$0xff] %vm840_vm2, %v839_v9  ;;  %v838_v11 = vadd.f32 %v836_v8, %v828_v10 }
  0xf2   : > { %841 = vst.msk [vmem:[#allocation2] sm:$0xff] %vm840_vm2, %v838_v11 }
  0xf3 PF: > { %v7261_v12 = vld [vmem:[%s7199_s23 + $0x18] sm:$0xff]  ;;  %v8182_v13 = vmov 0.0   ;;  %v7265_v14 = vld [vmem:[%s7199_s23 + $0x10] sm:$0xff]  ;;  %vm7063_vm3 = vmmov 0   ;;  %v7273_v15 = vld [vmem:[%s7199_s23 + $0x8] sm:$0xff]  ;;  %vm857_vm4 = vcmask 261120  }
  0xf4   : > { %6446 = vmatprep.subr.mxu1 %v8182_v13  ;;  %6454 = vmatprep.mubr.msk.f32.mxu1 %vm7063_vm3, %v8182_v13  ;;  %v7280_v16 = vld [vmem:[%s7199_s23] sm:$0xff]  ;;  %v7287_v18 = vld [vmem:[%s7199_s23 + $0x98] sm:$0xff]  ;;  %v7294_v19 = vld [vmem:[%s7199_s23 + $0x90] sm:$0xff]  ;;  %vm1097_vm5 = vcmask 64512   ;;  %p6217_p6 = scmp.ne.s32.totalorder %s7052_s24, 1 }
  0xf5   : > { %6447 = vmatpush3.msra.mxu1 %v7261_v12  ;;  %6468 = vmatprep.subr.mxu0 %v8182_v13  ;;  %v7301_v20 = vld [vmem:[%s7199_s23 + $0x88] sm:$0xff]  ;;  %v7306_v21 = vld [vmem:[%s7199_s23 + $0x80] sm:$0xff]  ;;  %v7330_v30 = vld [vmem:[%s7199_s23 + $0x118] sm:$0xff]  ;;  %s8241_s5 = sld [smem:[#allocation25_spill]] (!%p6217_p6) }
  0xf6   : > { %6448 = vmatprep.subr.mxu1 %v8182_v13  ;;  %6476 = vmatprep.mubr.msk.f32.mxu0 %vm7063_vm3, %v8182_v13  ;;  %v7317_v24 = vld [vmem:[%s7209_s6 + $0x4] ss:$0 sm:$0xff]  ;;  %v7320_v26 = vld [vmem:[%s7209_s6] ss:$0 sm:$0xff]  ;;  %v7333_v31 = vld [vmem:[%s7199_s23 + $0x110] sm:$0xff] }
  0xf7   : > { %6449 = vmatpush3.msra.mxu1 %v7265_v14  ;;  %6469 = vmatpush3.msra.mxu0 %v7330_v30  ;;  %v7338_v32 = vld [vmem:[%s7199_s23 + $0x108] sm:$0xff]  ;;  %v7343_v33 = vld [vmem:[%s7199_s23 + $0x100] sm:$0xff]  ;;  %v7361_v46 = vld [vmem:[%s7199_s23 + $0x38] sm:$0xff] }
  0xf8   : > { %6450 = vmatprep.subr.mxu1 %v8182_v13  ;;  %6470 = vmatprep.subr.mxu0 %v8182_v13  ;;  %v7356_v42 = vld [vmem:[%s7209_s6 + $0x8] ss:$0 sm:$0xff]  ;;  %v7366_v47 = vld [vmem:[%s7199_s23 + $0x30] sm:$0xff]  ;;  %v7376_v49 = vld [vmem:[%s7199_s23 + $0x20] sm:$0xff] }
  0xf9   : > { %6451 = vmatpush3.msra.mxu1 %v7273_v15  ;;  %v7283_v17 = vld [vmem:[#allocation2] sm:$0xff]  ;;  %6471 = vmatpush3.msra.mxu0 %v7333_v31  ;;  %v7371_v48 = vld [vmem:[%s7199_s23 + $0x28] sm:$0xff]  ;;  %v7385_v53 = vld [vmem:[%s7199_s23 + $0xb8] sm:$0xff] }
  0xfa   : > { %6452 = vmatprep.subr.mxu1 %v8182_v13  ;;  %6472 = vmatprep.subr.mxu0 %v8182_v13  ;;  %v7389_v54 = vld [vmem:[%s7199_s23 + $0xb0] sm:$0xff]  ;;  %v7396_v55 = vld [vmem:[%s7199_s23 + $0xa8] sm:$0xff]  ;;  %v7401_v56 = vld [vmem:[%s7199_s23 + $0xa0] sm:$0xff] }
  0xfb   : > { %6453 = vmatpush3.msra.mxu1 %v7280_v16  ;;  %6473 = vmatpush3.msra.mxu0 %v7338_v32  ;;  %v7412_v61 = vld [vmem:[%s7209_s6 + $0x5] ss:$0 sm:$0xff]  ;;  %v7415_v62 = vld [vmem:[%s7209_s6 + $0x1] ss:$0 sm:$0xff]  ;;  %v7425_v3 = vld [vmem:[%s7199_s23 + $0x138] sm:$0xff] }
  0xfc   : > { %6455 = vmatmul.mubr.msk.f32.vlgmr.msra.gmra.mxu1 %vm857_vm4, %v7283_v17  ;;  %6457 = vmatprep.subr.mxu1 %v8182_v13  ;;  %v7428_v4 = vld [vmem:[%s7199_s23 + $0x130] sm:$0xff]  ;;  %v7433_v5 = vld [vmem:[%s7199_s23 + $0x128] sm:$0xff]  ;;  %v7438_v6 = vld [vmem:[%s7199_s23 + $0x120] sm:$0xff] }
  0xfd   : > { %6458 = vmatpush3.msra.mxu1 %v7287_v18  ;;  %6465 = vmatprep.mubr.msk.f32.mxu1 %vm7063_vm3, %v8182_v13 }
  0xfe   : > { %6459 = vmatprep.subr.mxu1 %v8182_v13  ;;  %6474 = vmatprep.subr.mxu0 %v8182_v13 }
  0xff   : > { %6460 = vmatpush3.msra.mxu1 %v7294_v19  ;;  %6475 = vmatpush3.msra.mxu0 %v7343_v33 }
 0x100   : > { %6461 = vmatprep.subr.mxu1 %v8182_v13  ;;  %6477 = vmatmul.mubr.msk.f32.vlgmr.msra.gmra.mxu0 %vm857_vm4, %v7283_v17 }
 0x101   : > { %6462 = vmatpush3.msra.mxu1 %v7301_v20  ;;  %6489 = vmatprep.subr.mxu0 %v8182_v13 }
 0x102   : > { %6463 = vmatprep.subr.mxu1 %v8182_v13  ;;  %6497 = vmatprep.mubr.msk.f32.mxu0 %vm7063_vm3, %v8182_v13 }
 0x103   : > { %6464 = vmatpush3.msra.mxu1 %v7306_v21  ;;  %6490 = vmatpush3.msra.mxu0 %v7361_v46 }
 0x104   : > { %6466 = vmatmul.mubr.msk.f32.vlgmr.msra.gmra.mxu1 %vm857_vm4, %v7283_v17  ;;  %6479 = vmatprep.subr.mxu1 %v8182_v13 }
 0x105   : > { %6481 = vmatprep.mubr.msk.f32.mxu1 %vm7063_vm3, %v8182_v13  ;;  %6491 = vmatprep.subr.mxu0 %v8182_v13 }
 0x106   : > { %6492 = vmatpush3.msra.mxu0 %v7366_v47 }
 0x107   : > { %6493 = vmatprep.subr.mxu0 %v8182_v13 }
 0x108   : > { %6494 = vmatpush3.msra.mxu0 %v7371_v48 }
 0x109   : > { %6495 = vmatprep.subr.mxu0 %v8182_v13 }
 0x10a   : > { %6496 = vmatpush3.msra.mxu0 %v7376_v49 }
 0x10b   : > { %6498 = vmatmul.mubr.msk.f32.vlgmr.msra.gmra.mxu0 %vm857_vm4, %v7283_v17  ;;  %6511 = vmatprep.subr.mxu0 %v8182_v13 }
 0x10c   : > { %6519 = vmatprep.mubr.msk.f32.mxu0 %vm7063_vm3, %v8182_v13  ;;  %6512 = vmatpush3.msra.mxu0 %v7425_v3 }
 0x10d   : > { %6513 = vmatprep.subr.mxu0 %v8182_v13 }
 0x10e   : > { %6514 = vmatpush3.msra.mxu0 %v7428_v4 }
 0x10f   : > { %6515 = vmatprep.subr.mxu0 %v8182_v13 }
 0x110   : > { %6516 = vmatpush3.msra.mxu0 %v7433_v5 }
 0x111   : > { %6517 = vmatprep.subr.mxu0 %v8182_v13 }
 0x112   : > { %6518 = vmatpush3.msra.mxu0 %v7438_v6 }
 0x113   : > { %6520 = vmatmul.mubr.msk.f32.vlgmr.msra.gmra.mxu0 %vm857_vm4, %v7283_v17  ;;  %6532 = vmatprep.subr.mxu0 %v8182_v13 }
 0x114   : > { %6534 = vmatprep.mubr.msk.f32.mxu0 %vm7063_vm3, %v8182_v13 }
 0x1bc   : > { %v927_v22 = vpop.f32.mrf.mxu1 }
 0x1bd   : > { %v928_v29 = vadd.f32 %v7320_v26, %v927_v22 }
 0x1be   : > { %v6456_v23 = vpop.f32.mrf.mxu1 }
 0x1c0   : > { %v1093_v43 = vpop.f32.mrf.mxu0 }
 0x1c1   : > { %v1094_v44 = vadd.f32 %v7356_v42, %v1093_v43  ;;  %v7482_v43 = vld [vmem:[%s7199_s23 + $0xc8] sm:$0xff] }
 0x1c2   : > { %v6478_v45 = vpop.f32.mrf.mxu0 }
 0x1c3   : > { %v7496_v45 = vld [vmem:[%s7199_s23 + $0x58] sm:$0xff] }
 0x1c4   : > { %v1010_v25 = vpop.f32.mrf.mxu1 }
 0x1c5   : > { %v1011_v27 = vadd.f32 %v7317_v24, %v1010_v25 }
 0x1c6   : > { %v6467_v28 = vpop.f32.mrf.mxu1 }
 0x1c7   : > { %6480 = vmatpush3.xpose.msk.msra.mxu1 %vm1097_vm5, %v1011_v27  ;;  %v7451_v27 = vld [vmem:[%s7209_s6 + $0x9] ss:$0 sm:$0xff] }
 0x1c8   : > { %6484 = vmatprep.subr.mxu1 %v8182_v13 }
 0x1ca   : > { %6482 = vmatmul.mubr.msk.f32.vlgmr.msra.gmra.mxu1 %vm1097_vm5, %v928_v29 }
 0x1cb   : > { %6486 = vmatprep.mubr.msk.f32.mxu1 %vm7063_vm3, %v8182_v13  ;;  %6485 = vmatpush3.msra.mxu1 %v1094_v44  ;;  %v1338_v57 = vpop.f32.mrf.mxu0  ;;  %v7487_v44 = vld [vmem:[%s7199_s23 + $0xc0] sm:$0xff] }
 0x1cc   : > { %6500 = vmatprep.subr.mxu1 %v8182_v13  ;;  %v1339_v1 = vadd.f32 %v7415_v62, %v1338_v57  ;;  %v7507_v57 = vld [vmem:[%s7199_s23 + $0x48] sm:$0xff] }
 0x1cd   : > { %v6499_v58 = vpop.f32.mrf.mxu0 }
 0x1d3   : > { %v1504_v28 = vpop.f32.mrf.mxu0 }
 0x1d4   : > { %v1505_v29 = vadd.f32 %v7451_v27, %v1504_v28  ;;  %v7548_v28 = vld [vmem:[%s7199_s23 + $0x148] sm:$0xff] }
 0x28a   : > { %v1170_v34 = vpop.f32.mrf.mxu1 }
 0x28b   : > { %v1174_v35 = vsel %vm1097_vm5, %v1170_v34, -inf }
 0x28c   : > { %1175 = vmax.xlane.f32.xlu0 %v1174_v35  ;;  %v6483_v36 = vpop.f32.mrf.mxu1  ;;  %v7456_v35 = vld [vmem:[%s7194_s20 + $0x8] sm:$0xff] }
 0x28d   : > { %6533 = vmatpush3.msra.mxu0 %v7456_v35 }
 0x28e   : > { %6542 = vmatprep.subr.mxu0 %v8182_v13 }
 0x315   : > { %v1176_v37 = vpop.xlane.xlu0 %1175 }
 0x316   : > { %v1177_v38 = vsub.f32 %v1170_v34, %v1176_v37  ;;  %v6521_v34 = vpop.f32.mrf.mxu0 }
 0x318   : > { %v1178_v39 = vmul.f32 1.442695, %v1177_v38 }
 0x31a   : > { %6955 = vpow2.f32 %v1178_v39  ;;  %v7461_v39 = vld [vmem:[%s7194_s20] sm:$0xff] }
 0x327   : > { %v6956_v40 = vpop.eup %6955 }
 0x328   : > { %v1180_v41 = vsel %vm1097_vm5, %v6956_v40, 0.0 }
 0x329   : > { %1181 = vadd.xlane.f32.xlu0 %v1180_v41  ;;  %v7473_v41 = vld [vmem:[%s7199_s23 + $0xd0] sm:$0xff] }
 0x3b2   : > { %v1182_v50 = vpop.xlane.xlu0 %1181 }
 0x3b3   : > { %6957 = vrcp.f32 %v1182_v50 }
 0x3c0   : > { %v6958_v51 = vpop.eup %6957 }
 0x3c1   : > { %v1184_v52 = vmul.f32 %v6958_v51, %v6956_v40  ;;  %v7469_v40 = vld [vmem:[%s7199_s23 + $0xd8] sm:$0xff]  ;;  %v7500_v51 = vld [vmem:[%s7199_s23 + $0x50] sm:$0xff] }
 0x3c3   : > { %6487 = vmatmul.mubr.msk.f32.vlgmr.msra.gmra.mxu1 %vm1097_vm5, %v1184_v52 }
 0x3c4   : > { %6501 = vmatpush3.msra.mxu1 %v7385_v53  ;;  %6508 = vmatprep.mubr.msk.f32.mxu1 %vm7063_vm3, %v8182_v13 }
 0x3c5   : > { %6502 = vmatprep.subr.mxu1 %v8182_v13 }
 0x3c6   : > { %6503 = vmatpush3.msra.mxu1 %v7389_v54 }
 0x3c7   : > { %6504 = vmatprep.subr.mxu1 %v8182_v13 }
 0x3c8   : > { %6505 = vmatpush3.msra.mxu1 %v7396_v55 }
 0x3c9   : > { %6506 = vmatprep.subr.mxu1 %v8182_v13 }
 0x3ca   : > { %6507 = vmatpush3.msra.mxu1 %v7401_v56 }
 0x3cb   : > { %6509 = vmatmul.mubr.msk.f32.vlgmr.msra.gmra.mxu1 %vm857_vm4, %v7283_v17  ;;  %6522 = vmatprep.subr.mxu1 %v8182_v13 }
 0x3cc   : > { %6524 = vmatprep.mubr.msk.f32.mxu1 %vm7063_vm3, %v8182_v13 }
 0x483   : > { %v1254_v59 = vpop.f32.mrf.mxu1 }
 0x485   : > { %v6488_v60 = vpop.f32.mrf.mxu1 }
 0x48b   : > { %v1421_v63 = vpop.f32.mrf.mxu1 }
 0x48c   : > { %v1422_v0 = vadd.f32 %v7412_v61, %v1421_v63  ;;  %v7525_v63 = vld [vmem:[%s7209_s6 + $0x6] ss:$0 sm:$0xff] }
 0x48d   : > { %v6510_v2 = vpop.f32.mrf.mxu1 }
 0x48e   : > { %6523 = vmatpush3.xpose.msk.msra.mxu1 %vm1097_vm5, %v1422_v0 }
 0x48f   : > { %6527 = vmatprep.subr.mxu1 %v8182_v13 }
 0x491   : > { %6525 = vmatmul.mubr.msk.f32.vlgmr.msra.gmra.mxu1 %vm1097_vm5, %v1339_v1 }
 0x492   : > { %6529 = vmatprep.mubr.msk.f32.mxu1 %vm7063_vm3, %v8182_v13  ;;  %6528 = vmatpush3.msra.mxu1 %v1505_v29  ;;  %v7553_v29 = vld [vmem:[%s7199_s23 + $0x140] sm:$0xff] }
 0x493   : > { %6537 = vmatprep.subr.mxu1 %v8182_v13 }
 0x551   : > { %v1580_v7 = vpop.f32.mrf.mxu1 }
 0x552   : > { %v1584_v8 = vsel %vm1097_vm5, %v1580_v7, -inf }
 0x553   : > { %1585 = vmax.xlane.f32.xlu1 %v1584_v8  ;;  %v6526_v9 = vpop.f32.mrf.mxu1 }
 0x554   : > { %v7533_v9 = vld [vmem:[%s7209_s6 + $0x2] ss:$0 sm:$0xff] }
 0x5dc   : > { %v1586_v10 = vpop.xlane.xlu1 %1585 }
 0x5dd   : > { %v1587_v11 = vsub.f32 %v1580_v7, %v1586_v10 }
 0x5df   : > { %v1588_v22 = vmul.f32 1.442695, %v1587_v11 }
 0x5e1   : > { %6959 = vpow2.f32 %v1588_v22 }
 0x5ee   : > { %v6960_v23 = vpop.eup %6959 }
 0x5ef   : > { %v1590_v25 = vsel %vm1097_vm5, %v6960_v23, 0.0 }
 0x5f0   : > { %1591 = vadd.xlane.f32.xlu1 %v1590_v25  ;;  %v7543_v25 = vld [vmem:[%s7199_s23 + $0x150] sm:$0xff] }
 0x679   : > { %v1592_v36 = vpop.xlane.xlu1 %1591 }
 0x67a   : > { %6961 = vrcp.f32 %v1592_v36 }
 0x687   : > { %v6962_v37 = vpop.eup %6961 }
 0x688   : > { %v1594_v38 = vmul.f32 %v6962_v37, %v6960_v23  ;;  %v7540_v23 = vld [vmem:[%s7199_s23 + $0x158] sm:$0xff] }
 0x68a   : > { %6530 = vmatmul.mubr.msk.f32.vlgmr.msra.gmra.mxu1 %vm1097_vm5, %v1594_v38 }
 0x68b   : > { %6538 = vmatpush3.msra.mxu1 %v7461_v39  ;;  %6539 = vmatprep.mubr.msk.f32.mxu1 %vm7063_vm3, %v8182_v13 }
 0x68c   : > { %6553 = vmatprep.subr.mxu1 %v8182_v13 }
 0x68e   : > { %6540 = vmatmul.mubr.msk.f32.vlgmr.msra.gmra.mxu1 %vm1097_vm5, %v1254_v59  ;;  %v7514_v59 = vld [vmem:[%s7199_s23 + $0x40] sm:$0xff] }
 0x68f   : > { %6554 = vmatpush3.msra.mxu1 %v7469_v40  ;;  %6561 = vmatprep.mubr.msk.f32.mxu1 %vm7063_vm3, %v8182_v13 }
 0x690   : > { %6555 = vmatprep.subr.mxu1 %v8182_v13 }
 0x691   : > { %6556 = vmatpush3.msra.mxu1 %v7473_v41 }
 0x692   : > { %6557 = vmatprep.subr.mxu1 %v8182_v13 }
 0x693   : > { %6558 = vmatpush3.msra.mxu1 %v7482_v43 }
 0x694   : > { %6559 = vmatprep.subr.mxu1 %v8182_v13 }
 0x695   : > { %6560 = vmatpush3.msra.mxu1 %v7487_v44 }
 0x696   : > { %6562 = vmatmul.mubr.msk.f32.vlgmr.msra.gmra.mxu1 %vm857_vm4, %v7283_v17  ;;  %6575 = vmatprep.subr.mxu1 %v8182_v13 }
 0x697   : > { %6577 = vmatprep.mubr.msk.f32.mxu1 %vm7063_vm3, %v8182_v13 }
 0x74a   : > { %v1664_v50 = vpop.f32.mrf.mxu1 }
 0x74b   : > { %6535 = vmatmul.mubr.msk.f32.vlgmr.msra.gmra.mxu0 %vm1097_vm5, %v1664_v50 }
 0x74c   : > { %6543 = vmatpush3.msra.mxu0 %v7496_v45  ;;  %v6531_v52 = vpop.f32.mrf.mxu1  ;;  %6550 = vmatprep.mubr.msk.f32.mxu0 %vm7063_vm3, %v8182_v13 }
 0x74d   : > { %6544 = vmatprep.subr.mxu0 %v8182_v13 }
 0x74e   : > { %6545 = vmatpush3.msra.mxu0 %v7500_v51  ;;  %v7510_v58 = vpop.f32.mrf.mxu1 }
 0x74f   : > { %6546 = vmatprep.subr.mxu0 %v8182_v13 }
 0x750   : > { %6547 = vmatpush3.msra.mxu0 %v7507_v57  ;;  %v6541_v60 = vpop.f32.mrf.mxu1 }
 0x751   : > { %6548 = vmatprep.subr.mxu0 %v8182_v13 }
 0x752   : > { %6549 = vmatpush3.msra.mxu0 %v7514_v59 }
 0x753   : > { %6551 = vmatmul.mubr.msk.f32.vlgmr.msra.gmra.mxu0 %vm857_vm4, %v7283_v17  ;;  %6564 = vmatprep.subr.mxu0 %v8182_v13 }
 0x754   : > { %6572 = vmatprep.mubr.msk.f32.mxu0 %vm7063_vm3, %v8182_v13  ;;  %6565 = vmatpush3.msra.mxu0 %v7540_v23 }
 0x755   : > { %6566 = vmatprep.subr.mxu0 %v8182_v13 }
 0x756   : > { %v1978_v0 = vpop.f32.mrf.mxu1  ;;  %6567 = vmatpush3.msra.mxu0 %v7543_v25 }
 0x757   : > { %v1979_v1 = vadd.f32 %v7525_v63, %v1978_v0  ;;  %6568 = vmatprep.subr.mxu0 %v8182_v13 }
 0x758   : > { %v6563_v2 = vpop.f32.mrf.mxu1  ;;  %6569 = vmatpush3.msra.mxu0 %v7548_v28 }
 0x759   : > { %6576 = vmatpush3.xpose.msk.msra.mxu1 %vm1097_vm5, %v1979_v1  ;;  %6570 = vmatprep.subr.mxu0 %v8182_v13  ;;  %v7566_v1 = vld [vmem:[%s7209_s6 + $0xa] ss:$0 sm:$0xff] }
 0x75a   : > { %6580 = vmatprep.subr.mxu1 %v8182_v13  ;;  %6571 = vmatpush3.msra.mxu0 %v7553_v29 }
 0x75b   : > { %6573 = vmatmul.mubr.msk.f32.vlgmr.msra.gmra.mxu0 %vm857_vm4, %v7283_v17  ;;  %6585 = vmatprep.subr.mxu0 %v8182_v13 }
 0x75c   : > { %6587 = vmatprep.mubr.msk.f32.mxu0 %vm7063_vm3, %v8182_v13 }
 0x80b   : > { %v7530_v7 = vpop.f32.mrf.mxu0 }
 0x80d   : > { %v6536_v8 = vpop.f32.mrf.mxu0 }
 0x813   : > { %v1895_v10 = vpop.f32.mrf.mxu0 }
 0x814   : > { %v1896_v11 = vadd.f32 %v7533_v9, %v1895_v10 }
 0x815   : > { %v6552_v22 = vpop.f32.mrf.mxu0 }
 0x816   : > { %6578 = vmatmul.mubr.msk.f32.vlgmr.msra.gmra.mxu1 %vm1097_vm5, %v1896_v11  ;;  %v7571_v11 = vld [vmem:[%s7194_s20 + $0x10] sm:$0xff] }
 0x817   : > { %6582 = vmatprep.mubr.msk.f32.mxu1 %vm7063_vm3, %v8182_v13  ;;  %6586 = vmatpush3.msra.mxu0 %v7571_v11 }
 0x818   : > { %6601 = vmatprep.subr.mxu0 %v8182_v13 }
 0x81b   : > { %v2061_v2 = vpop.f32.mrf.mxu0 }
 0x81c   : > { %v2062_v8 = vadd.f32 %v7566_v1, %v2061_v2  ;;  %v7607_v2 = vld [vmem:[%s7199_s23 + $0xf0] sm:$0xff] }
 0x81d   : > { %v6574_v10 = vpop.f32.mrf.mxu0  ;;  %8214 = vst [vmem:[#allocation14_spill] sm:$0xff] %v7607_v2 }
 0x81e   : > { %6581 = vmatpush3.msra.mxu1 %v2062_v8  ;;  %v7614_v10 = vld [vmem:[%s7199_s23 + $0xe8] sm:$0xff] }
 0x81f   : > { %6590 = vmatprep.subr.mxu1 %v8182_v13  ;;  %8215 = vst [vmem:[#allocation15_spill] sm:$0xff] %v7614_v10 }
 0x8d6   : > { %v2137_v34 = vpop.f32.mrf.mxu1 }
 0x8d7   : > { %v2141_v36 = vsel %vm1097_vm5, %v2137_v34, -inf }
 0x8d8   : > { %2142 = vmax.xlane.f32.xlu0 %v2141_v36  ;;  %v6579_v37 = vpop.f32.mrf.mxu1 }
 0x8d9   : > { %v7579_v37 = vld [vmem:[%s7199_s23 + $0x78] sm:$0xff] }
 0x961   : > { %v2143_v38 = vpop.xlane.xlu0 %2142 }
 0x962   : > { %v2144_v50 = vsub.f32 %v2137_v34, %v2143_v38  ;;  %v7584_v38 = vld [vmem:[%s7199_s23 + $0x70] sm:$0xff] }
 0x963   : > { %8210 = vst [vmem:[#allocation10_spill] sm:$0xff] %v7584_v38 }
 0x964   : > { %v2145_v52 = vmul.f32 1.442695, %v2144_v50  ;;  %v7589_v50 = vld [vmem:[%s7199_s23 + $0x68] sm:$0xff] }
 0x965   : > { %8211 = vst [vmem:[#allocation11_spill] sm:$0xff] %v7589_v50 }
 0x966   : > { %6963 = vpow2.f32 %v2145_v52  ;;  %v7594_v52 = vld [vmem:[%s7199_s23 + $0x60] sm:$0xff] }
 0x967   : > { %8212 = vst [vmem:[#allocation12_spill] sm:$0xff] %v7594_v52 }
 0x973   : > { %v6964_v60 = vpop.eup %6963 }
 0x974   : > { %v2147_v0 = vsel %vm1097_vm5, %v6964_v60, 0.0 }
 0x975   : > { %2148 = vadd.xlane.f32.xlu1 %v2147_v0 }
 0x9fe   : > { %v2149_v22 = vpop.xlane.xlu1 %2148 }
 0x9ff   : > { %6965 = vrcp.f32 %v2149_v22  ;;  %v7619_v22 = vld [vmem:[%s7199_s23 + $0xe0] sm:$0xff] }
 0xa00   : > { %8216 = vst [vmem:[#allocation16_spill] sm:$0xff] %v7619_v22 }
 0xa0c   : > { %v6966_v34 = vpop.eup %6965 }
 0xa0d   : > { %v2151_v36 = vmul.f32 %v6966_v34, %v6964_v60  ;;  %v7603_v60 = vld [vmem:[%s7199_s23 + $0xf8] sm:$0xff] }
 0xa0e   : > { %8213 = vst [vmem:[#allocation13_spill] sm:$0xff] %v7603_v60 }
 0xa0f   : > { %6583 = vmatmul.mubr.msk.f32.vlgmr.msra.gmra.mxu1 %vm1097_vm5, %v2151_v36 }
 0xa10   : > { %6598 = vmatprep.mubr.msk.f32.mxu1 %vm7063_vm3, %v8182_v13  ;;  %6591 = vmatpush3.msra.mxu1 %v7579_v37 }
 0xa11   : > { %6592 = vmatprep.subr.mxu1 %v8182_v13 }
 0xa12   : > { %6593 = vmatpush3.msra.mxu1 %v7584_v38  ;;  %v8219_v38 = vmov 0.0  }
 0xa13   : > { %6594 = vmatprep.subr.mxu1 %v8182_v13 }
 0xa14   : > { %6595 = vmatpush3.msra.mxu1 %v7589_v50 }
 0xa15   : > { %6596 = vmatprep.subr.mxu1 %v8182_v13 }
 0xa16   : > { %6597 = vmatpush3.msra.mxu1 %v7594_v52 }
 0xa17   : > { %6599 = vmatmul.mubr.msk.f32.vlgmr.msra.gmra.mxu1 %vm857_vm4, %v7283_v17  ;;  %6612 = vmatprep.subr.mxu1 %v8182_v13 }
 0xa18   : > { %6620 = vmatprep.mubr.msk.f32.mxu1 %vm7063_vm3, %v8182_v13 }
 0xacf   : > { %v2221_v0 = vpop.f32.mrf.mxu1 }
 0xad0   : > { %6588 = vmatmul.mubr.msk.f32.vlgmr.msra.gmra.mxu0 %vm1097_vm5, %v2221_v0  ;;  %v1813_v0 = vadd.f32 %v7510_v58, %v7530_v7  ;;  %v7647_v58 = vld [vmem:[%s7199_s23 + $0x178] sm:$0xff]  ;;  %v7650_v7 = vld [vmem:[%s7199_s23 + $0x170] sm:$0xff] }
 0xad1   : > { %6602 = vmatpush3.msra.mxu0 %v7603_v60  ;;  %v6584_v8 = vpop.f32.mrf.mxu1  ;;  %6609 = vmatprep.mubr.msk.f32.mxu0 %vm7063_vm3, %v8182_v13  ;;  %v7637_v60 = vld [vmem:[%s7209_s6 + $0x3] ss:$0 sm:$0xff]  ;;  %8220 = vst [vmem:[#allocation19_spill] sm:$0xff] %v7647_v58  ;;  %8221 = vst [vmem:[#allocation20_spill] sm:$0xff] %v7650_v7 }
 0xad2   : > { %6603 = vmatprep.subr.mxu0 %v8182_v13  ;;  %8218 = vst [vmem:[#allocation18_spill] sm:$0xff] %v7637_v60  ;;  %6613 = vmatpush3.msra.mxu1 %v7647_v58  ;;  %v7678_v58 = vld [vmem:[%s7194_s20 + $0x18] sm:$0xff]  ;;  %s8242_s20 = sld [smem:[#allocation27_spill]] (!%p6217_p6) }
 0xad3   : > { %6604 = vmatpush3.msra.mxu0 %v7607_v2  ;;  %v7634_v2 = vld [vmem:[%s7209_s6 + $0x7] ss:$0 sm:$0xff]  ;;  %6614 = vmatprep.subr.mxu1 %v8219_v38 }
 0xad4   : > { %6605 = vmatprep.subr.mxu0 %v8182_v13  ;;  %8217 = vst [vmem:[#allocation17_spill] sm:$0xff] %v7634_v2  ;;  %6615 = vmatpush3.msra.mxu1 %v7650_v7 }
 0xad5   : > { %6606 = vmatpush3.msra.mxu0 %v7614_v10  ;;  %6616 = vmatprep.subr.mxu1 %v8219_v38 }
 0xad6   : > { %6607 = vmatprep.subr.mxu0 %v8182_v13 }
 0xad7   : > { %6608 = vmatpush3.msra.mxu0 %v7619_v22  ;;  %v2380_v34 = vpop.f32.mrf.mxu1 }
 0xad8   : > { %6610 = vmatmul.mubr.msk.f32.vlgmr.msra.gmra.mxu0 %vm857_vm4, %v7283_v17  ;;  %6623 = vmatprep.subr.mxu0 %v8182_v13  ;;  %v2381_v50 = vadd.f32 %v7637_v60, %v2380_v34 }
 0xad9   : > { %6625 = vmatprep.mubr.msk.f32.mxu0 %vm7063_vm3, %v8182_v13  ;;  %v6600_v36 = vpop.f32.mrf.mxu1 }
 0xb90   : > { %v2296_v8 = vpop.f32.mrf.mxu0 }
 0xb91   : > { %v7631_v10 = vadd.f32 %v2296_v8, %v1813_v0 }
 0xb92   : > { %v6589_v22 = vpop.f32.mrf.mxu0 }
 0xb98   : > { %v2463_v52 = vpop.f32.mrf.mxu0 }
 0xb99   : > { %v2464_v13 = vadd.f32 %v7634_v2, %v2463_v52  ;;  %v7655_v52 = vld [vmem:[%s7199_s23 + $0x168] sm:$0xff] }
 0xb9a   : > { %v6611_v36 = vpop.f32.mrf.mxu0  ;;  %8222 = vst [vmem:[#allocation21_spill] sm:$0xff] %v7655_v52  ;;  %6617 = vmatpush3.msra.mxu1 %v7655_v52 }
 0xb9b   : > { %6624 = vmatpush3.xpose.msk.msra.mxu0 %vm1097_vm5, %v2464_v13  ;;  %v7660_v13 = vld [vmem:[%s7199_s23 + $0x160] sm:$0xff]  ;;  %6618 = vmatprep.subr.mxu1 %v8219_v38 }
 0xb9c   : > { %6628 = vmatprep.subr.mxu0 %v8219_v38  ;;  %8223 = vst [vmem:[#allocation22_spill] sm:$0xff] %v7660_v13  ;;  %6619 = vmatpush3.msra.mxu1 %v7660_v13 }
 0xb9d   : > { %6621 = vmatmul.mubr.msk.f32.vlgmr.msra.gmra.mxu1 %vm857_vm4, %v7283_v17  ;;  %6633 = vmatprep.subr.mxu1 %v8219_v38  ;;  %v7673_v17 = vld [vmem:[%s7209_s6 + $0xb] ss:$0 sm:$0xff]  ;;  %s8237_s6 = sld [smem:[#allocation9_spill]] }
 0xb9e   : > { %6626 = vmatmul.mubr.msk.f32.vlgmr.msra.gmra.mxu0 %vm1097_vm5, %v2381_v50  ;;  %6635 = vmatprep.mubr.msk.f32.mxu1 %vm7063_vm3, %v8219_v38 }
 0xb9f   : > { %6630 = vmatprep.mubr.msk.f32.mxu0 %vm7063_vm3, %v8219_v38  ;;  %6634 = vmatpush3.msra.mxu1 %v7678_v58 }
 0xba0   : > { %6649 = vmatprep.subr.mxu1 %v8219_v38 }
 0xc5d   : > { %v2546_v13 = vpop.f32.mrf.mxu1 }
 0xc5e   : > { %v2622_v50 = vpop.f32.mrf.mxu0  ;;  %v2547_v52 = vadd.f32 %v7673_v17, %v2546_v13 }
 0xc5f   : > { %v2626_v22 = vsel %vm1097_vm5, %v2622_v50, -inf  ;;  %v6622_v7 = vpop.f32.mrf.mxu1 }
 0xc60   : > { %2627 = vmax.xlane.f32.xlu0 %v2626_v22  ;;  %v6627_v34 = vpop.f32.mrf.mxu0  ;;  %6629 = vmatpush3.msra.mxu0 %v2547_v52 }
 0xc61   : > { %6638 = vmatprep.subr.mxu0 %v8219_v38 }
 0xce9   : > { %v2628_v0 = vpop.xlane.xlu0 %2627 }
 0xcea   : > { %v2629_v8 = vsub.f32 %v2622_v50, %v2628_v0 }
 0xcec   : > { %v2630_v36 = vmul.f32 1.442695, %v2629_v8 }
 0xcee   : > { %6967 = vpow2.f32 %v2630_v36 }
 0xcfb   : > { %v6968_v60 = vpop.eup %6967 }
 0xcfc   : > { %v2632_v2 = vsel %vm1097_vm5, %v6968_v60, 0.0 }
 0xcfd   : > { %2633 = vadd.xlane.f32.xlu1 %v2632_v2 }
 0xd86   : > { %v2634_v50 = vpop.xlane.xlu1 %2633 }
 0xd87   : > { %6969 = vrcp.f32 %v2634_v50 }
 0xd94   : > { %v6970_v22 = vpop.eup %6969 }
 0xd95   : > { %v2636_v34 = vmul.f32 %v6970_v22, %v6968_v60  ;;  %v7693_v60 = vld [vmem:[#allocation2 + $0x8] sm:$0xff] }
 0xd97   : > { %6631 = vmatmul.mubr.msk.f32.vlgmr.msra.gmra.mxu0 %vm1097_vm5, %v2636_v34 }
 0xd98   : > { %6639 = vmatpush3.msra.mxu0 %v7261_v12  ;;  %6646 = vmatprep.mubr.msk.f32.mxu0 %vm7063_vm3, %v8219_v38 }
 0xd99   : > { %6640 = vmatprep.subr.mxu0 %v8219_v38 }
 0xd9a   : > { %6641 = vmatpush3.msra.mxu0 %v7265_v14 }
 0xd9b   : > { %6642 = vmatprep.subr.mxu0 %v8219_v38 }
 0xd9c   : > { %6643 = vmatpush3.msra.mxu0 %v7273_v15 }
 0xd9d   : > { %6644 = vmatprep.subr.mxu0 %v8219_v38 }
 0xd9e   : > { %6645 = vmatpush3.msra.mxu0 %v7280_v16 }
 0xd9f   : > { %6660 = vmatprep.subr.mxu0 %v8219_v38  ;;  %6647 = vmatmul.mubr.msk.f32.vlgmr.msra.gmra.mxu0 %vm857_vm4, %v7693_v60 }
 0xda0   : > { %6661 = vmatpush3.msra.mxu0 %v7330_v30  ;;  %6668 = vmatprep.mubr.msk.f32.mxu0 %vm7063_vm3, %v8219_v38 }
 0xda1   : > { %6662 = vmatprep.subr.mxu0 %v8219_v38 }
 0xda2   : > { %6663 = vmatpush3.msra.mxu0 %v7333_v31 }
 0xda3   : > { %6664 = vmatprep.subr.mxu0 %v8219_v38 }
 0xda4   : > { %6665 = vmatpush3.msra.mxu0 %v7338_v32 }
 0xda5   : > { %6666 = vmatprep.subr.mxu0 %v8219_v38 }
 0xda6   : > { %6667 = vmatpush3.msra.mxu0 %v7343_v33 }
 0xda7   : > { %6669 = vmatmul.mubr.msk.f32.vlgmr.msra.gmra.mxu0 %vm857_vm4, %v7693_v60  ;;  %6681 = vmatprep.subr.mxu0 %v8219_v38 }
 0xda8   : > { %6682 = vmatpush3.msra.mxu0 %v7361_v46  ;;  %6689 = vmatprep.mubr.msk.f32.mxu0 %vm7063_vm3, %v8219_v38 }
 0xda9   : > { %6683 = vmatprep.subr.mxu0 %v8219_v38 }
 0xdaa   : > { %6684 = vmatpush3.msra.mxu0 %v7366_v47 }
 0xdab   : > { %6685 = vmatprep.subr.mxu0 %v8219_v38 }
 0xdac   : > { %6686 = vmatpush3.msra.mxu0 %v7371_v48 }
 0xdad   : > { %6687 = vmatprep.subr.mxu0 %v8219_v38 }
 0xdae   : > { %6688 = vmatpush3.msra.mxu0 %v7376_v49 }
 0xdaf   : > { %6690 = vmatmul.mubr.msk.f32.vlgmr.msra.gmra.mxu0 %vm857_vm4, %v7693_v60  ;;  %6703 = vmatprep.subr.mxu0 %v8219_v38 }
 0xdb0   : > { %6704 = vmatpush3.msra.mxu0 %v7425_v3  ;;  %6711 = vmatprep.mubr.msk.f32.mxu0 %vm7063_vm3, %v8219_v38 }
 0xdb1   : > { %6705 = vmatprep.subr.mxu0 %v8219_v38 }
 0xdb2   : > { %6706 = vmatpush3.msra.mxu0 %v7428_v4 }
 0xdb3   : > { %6707 = vmatprep.subr.mxu0 %v8219_v38 }
 0xdb4   : > { %6708 = vmatpush3.msra.mxu0 %v7433_v5 }
 0xdb5   : > { %6709 = vmatprep.subr.mxu0 %v8219_v38 }
 0xdb6   : > { %6710 = vmatpush3.msra.mxu0 %v7438_v6 }
 0xdb7   : > { %6712 = vmatmul.mubr.msk.f32.vlgmr.msra.gmra.mxu0 %vm857_vm4, %v7693_v60  ;;  %6724 = vmatprep.subr.mxu0 %v8219_v38 }
 0xdb8   : > { %6725 = vmatpush3.msra.mxu0 %v7456_v35  ;;  %6726 = vmatprep.mubr.msk.f32.mxu0 %vm7063_vm3, %v8219_v38 }
 0xdb9   : > { %6734 = vmatprep.subr.mxu0 %v8219_v38 }
 0xe57   : > { %v2706_v12 = vpop.f32.mrf.mxu0 }
 0xe58   : > { %6636 = vmatmul.mubr.msk.f32.vlgmr.msra.gmra.mxu1 %vm1097_vm5, %v2706_v12 }
 0xe59   : > { %6650 = vmatpush3.msra.mxu1 %v7287_v18  ;;  %v6632_v14 = vpop.f32.mrf.mxu0  ;;  %6657 = vmatprep.mubr.msk.f32.mxu1 %vm7063_vm3, %v8219_v38 }
 0xe5a   : > { %6651 = vmatprep.subr.mxu1 %v8219_v38 }
 0xe5b   : > { %6652 = vmatpush3.msra.mxu1 %v7294_v19 }
 0xe5c   : > { %6653 = vmatprep.subr.mxu1 %v8219_v38 }
 0xe5d   : > { %6654 = vmatpush3.msra.mxu1 %v7301_v20 }
 0xe5e   : > { %6655 = vmatprep.subr.mxu1 %v8219_v38 }
 0xe5f   : > { %6656 = vmatpush3.msra.mxu1 %v7306_v21  ;;  %v2866_v15 = vpop.f32.mrf.mxu0 }
 0xe60   : > { %6658 = vmatmul.mubr.msk.f32.vlgmr.msra.gmra.mxu1 %vm857_vm4, %v7693_v60  ;;  %6671 = vmatprep.subr.mxu1 %v8219_v38  ;;  %v2867_v21 = vadd.f32 %v7320_v26, %v2866_v15 }
 0xe61   : > { %6673 = vmatprep.mubr.msk.f32.mxu1 %vm7063_vm3, %v8219_v38  ;;  %v6648_v16 = vpop.f32.mrf.mxu0 }
 0xe67   : > { %v3028_v4 = vpop.f32.mrf.mxu0 }
 0xe68   : > { %v3029_v5 = vadd.f32 %v7356_v42, %v3028_v4  ;;  %v8229_v4 = vld [vmem:[#allocation21_spill] sm:$0xff] }
 0xe69   : > { %v6670_v6 = vpop.f32.mrf.mxu0 }
 0xe6f   : > { %v3270_v42 = vpop.f32.mrf.mxu0 }
 0xf18   : > { %v2781_v18 = vpop.f32.mrf.mxu1 }
 0xf19   : > { %v7753_v19 = vadd.f32 %v2781_v18, %v7631_v10 }
 0xf1a   : > { %v6637_v30 = vpop.f32.mrf.mxu1 }
 0xf20   : > { %v2947_v20 = vpop.f32.mrf.mxu1 }
 0xf21   : > { %v2948_v31 = vadd.f32 %v7317_v24, %v2947_v20 }
 0xf22   : > { %v6659_v32 = vpop.f32.mrf.mxu1 }
 0xf23   : > { %6672 = vmatpush3.xpose.msk.msra.mxu1 %vm1097_vm5, %v2948_v31 }
 0xf24   : > { %6676 = vmatprep.subr.mxu1 %v8219_v38 }
 0xf26   : > { %6674 = vmatmul.mubr.msk.f32.vlgmr.msra.gmra.mxu1 %vm1097_vm5, %v2867_v21 }
 0xf27   : > { %6678 = vmatprep.mubr.msk.f32.mxu1 %vm7063_vm3, %v8219_v38  ;;  %6677 = vmatpush3.msra.mxu1 %v3029_v5  ;;  %v8230_v5 = vld [vmem:[#allocation22_spill] sm:$0xff] }
 0xf28   : > { %6692 = vmatprep.subr.mxu1 %v8219_v38 }
 0xfe6   : > { %v3104_v33 = vpop.f32.mrf.mxu1 }
 0xfe7   : > { %v3108_v46 = vsel %vm1097_vm5, %v3104_v33, -inf }
 0xfe8   : > { %3109 = vmax.xlane.f32.xlu0 %v3108_v46  ;;  %v6675_v47 = vpop.f32.mrf.mxu1 }
0x1071   : > { %v3110_v48 = vpop.xlane.xlu0 %3109 }
0x1072   : > { %v3111_v49 = vsub.f32 %v3104_v33, %v3110_v48 }
0x1074   : > { %v3112_v24 = vmul.f32 1.442695, %v3111_v49 }
0x1076   : > { %6971 = vpow2.f32 %v3112_v24  ;;  %v8224_v24 = vld [vmem:[#allocation10_spill] sm:$0xff] }
0x1083   : > { %v6972_v26 = vpop.eup %6971 }
0x1084   : > { %v3114_v3 = vsel %vm1097_vm5, %v6972_v26, 0.0 }
0x1085   : > { %3115 = vadd.xlane.f32.xlu1 %v3114_v3  ;;  %v8228_v3 = vld [vmem:[#allocation20_spill] sm:$0xff] }
0x110e   : > { %v3116_v35 = vpop.xlane.xlu1 %3115 }
0x110f   : > { %6973 = vrcp.f32 %v3116_v35  ;;  %v8231_v35 = vld [vmem:[#allocation13_spill] sm:$0xff] }
0x111c   : > { %v6974_v2 = vpop.eup %6973 }
0x111d   : > { %v3118_v10 = vmul.f32 %v6974_v2, %v6972_v26  ;;  %v8226_v26 = vld [vmem:[#allocation12_spill] sm:$0xff] }
0x111f   : > { %6679 = vmatmul.mubr.msk.f32.vlgmr.msra.gmra.mxu1 %vm1097_vm5, %v3118_v10  ;;  %v8232_v10 = vld [vmem:[#allocation14_spill] sm:$0xff] }
0x1120   : > { %6693 = vmatpush3.msra.mxu1 %v7385_v53  ;;  %6700 = vmatprep.mubr.msk.f32.mxu1 %vm7063_vm3, %v8219_v38  ;;  %v6691_v53 = vpop.f32.mrf.mxu0 }
0x1121   : > { %6694 = vmatprep.subr.mxu1 %v8219_v38 }
0x1122   : > { %6695 = vmatpush3.msra.mxu1 %v7389_v54  ;;  %v3432_v12 = vpop.f32.mrf.mxu0 }
0x1123   : > { %6696 = vmatprep.subr.mxu1 %v8219_v38  ;;  %v3433_v14 = vadd.f32 %v7451_v27, %v3432_v12  ;;  %v7914_v12 = vld [vmem:[%s7239_s30] sm:$0x3f] }
0x1124   : > { %6697 = vmatpush3.msra.mxu1 %v7396_v55  ;;  %v3271_v55 = vadd.f32 %v7415_v62, %v3270_v42  ;;  %v6713_v15 = vpop.f32.mrf.mxu0  ;;  %v8233_v42 = vld [vmem:[#allocation15_spill] sm:$0xff] }
0x1125   : > { %6698 = vmatprep.subr.mxu1 %v8219_v38 }
0x1126   : > { %6699 = vmatpush3.msra.mxu1 %v7401_v56 }
0x1127   : > { %6701 = vmatmul.mubr.msk.f32.vlgmr.msra.gmra.mxu1 %vm857_vm4, %v7693_v60  ;;  %6714 = vmatprep.subr.mxu1 %v8219_v38 }
0x1128   : > { %6716 = vmatprep.mubr.msk.f32.mxu1 %vm7063_vm3, %v8219_v38 }
0x11df   : > { %v3188_v7 = vpop.f32.mrf.mxu1 }
0x11e1   : > { %v6680_v54 = vpop.f32.mrf.mxu1 }
0x11e7   : > { %v3351_v52 = vpop.f32.mrf.mxu1 }
0x11e8   : > { %v3352_v13 = vadd.f32 %v7412_v61, %v3351_v52 }
0x11e9   : > { %v6702_v0 = vpop.f32.mrf.mxu1 }
0x11ea   : > { %6715 = vmatpush3.xpose.msk.msra.mxu1 %vm1097_vm5, %v3352_v13 }
0x11eb   : > { %6719 = vmatprep.subr.mxu1 %v8219_v38 }
0x11ed   : > { %6717 = vmatmul.mubr.msk.f32.vlgmr.msra.gmra.mxu1 %vm1097_vm5, %v3271_v55 }
0x11ee   : > { %6721 = vmatprep.mubr.msk.f32.mxu1 %vm7063_vm3, %v8219_v38  ;;  %6720 = vmatpush3.msra.mxu1 %v3433_v14 }
0x11ef   : > { %6729 = vmatprep.subr.mxu1 %v8219_v38 }
0x12ad   : > { %v3508_v56 = vpop.f32.mrf.mxu1 }
0x12ae   : > { %v3512_v8 = vsel %vm1097_vm5, %v3508_v56, -inf }
0x12af   : > { %3513 = vmax.xlane.f32.xlu0 %v3512_v8  ;;  %v6718_v36 = vpop.f32.mrf.mxu1 }
0x12b0   : > { %v8236_v36 = vld [vmem:[#allocation18_spill] sm:$0xff] }
0x1338   : > { %v3514_v50 = vpop.xlane.xlu0 %3513 }
0x1339   : > { %v3515_v22 = vsub.f32 %v3508_v56, %v3514_v50  ;;  %v8235_v56 = vld [vmem:[#allocation17_spill] sm:$0xff] }
0x133b   : > { %v3516_v61 = vmul.f32 1.442695, %v3515_v22 }
0x133d   : > { %6975 = vpow2.f32 %v3516_v61  ;;  %v4699_v61 = vlaneseq }
0x134a   : > { %v6976_v62 = vpop.eup %6975 }
0x134b   : > { %v3518_v34 = vsel %vm1097_vm5, %v6976_v62, 0.0 }
0x134c   : > { %3519 = vadd.xlane.f32.xlu1 %v3518_v34 }
0x13d5   : > { %v3520_v16 = vpop.xlane.xlu1 %3519 }
0x13d6   : > { %6977 = vrcp.f32 %v3520_v16 }
0x13e3   : > { %v6978_v18 = vpop.eup %6977 }
0x13e4   : > { %v3522_v30 = vmul.f32 %v6978_v18, %v6976_v62  ;;  %v7910_v62 = vshrl.u32 %v4699_v61, 7 }
0x13e6   : > { %6722 = vmatmul.mubr.msk.f32.vlgmr.msra.gmra.mxu1 %vm1097_vm5, %v3522_v30  ;;  %v4701_v34 = vsub.s32 0, %v7910_v62  ;;  %v7007_v30 = vld [vmem:[#allocation2] sm:$0xff] }
0x13e7   : > { %6730 = vmatpush3.msra.mxu1 %v7461_v39  ;;  %6731 = vmatprep.mubr.msk.f32.mxu1 %vm7063_vm3, %v8219_v38 }
0x13e8   : > { %6745 = vmatprep.subr.mxu1 %v8219_v38  ;;  %v4702_v14 = vrot.slane %v7914_v12, %v4701_v34 }
0x13ea   : > { %6732 = vmatmul.mubr.msk.f32.vlgmr.msra.gmra.mxu1 %vm1097_vm5, %v3188_v7  ;;  %v4703_v15 = vadd.f32 %v4702_v14, %v7753_v19 }
0x13eb   : > { %6746 = vmatpush3.msra.mxu1 %v7469_v40  ;;  %6753 = vmatprep.mubr.msk.f32.mxu1 %vm7063_vm3, %v8219_v38 }
0x13ec   : > { %6747 = vmatprep.subr.mxu1 %v8219_v38 }
0x13ed   : > { %6748 = vmatpush3.msra.mxu1 %v7473_v41 }
0x13ee   : > { %6749 = vmatprep.subr.mxu1 %v8219_v38 }
0x13ef   : > { %6750 = vmatpush3.msra.mxu1 %v7482_v43 }
0x13f0   : > { %6751 = vmatprep.subr.mxu1 %v8219_v38 }
0x13f1   : > { %6752 = vmatpush3.msra.mxu1 %v7487_v44 }
0x13f2   : > { %6754 = vmatmul.mubr.msk.f32.vlgmr.msra.gmra.mxu1 %vm857_vm4, %v7693_v60  ;;  %6767 = vmatprep.subr.mxu1 %v8219_v38 }
0x13f3   : > { %6769 = vmatprep.mubr.msk.f32.mxu1 %vm7063_vm3, %v8219_v38 }
0x14a6   : > { %v3592_v27 = vpop.f32.mrf.mxu1 }
0x14a7   : > { %6727 = vmatmul.mubr.msk.f32.vlgmr.msra.gmra.mxu0 %vm1097_vm5, %v3592_v27  ;;  %v4705_v27 = vadd.f32 %v7007_v30, %v4703_v15  ;;  %v6210_v15 = vld [vmem:[%s7229_s17 + $0x38] sm:$0xff]  ;;  %v5150_v30 = vld [vmem:[%s7229_s17 + $0x10] sm:$0xff] }
0x14a8   : > { %6735 = vmatpush3.msra.mxu0 %v7496_v45  ;;  %v6723_v39 = vpop.f32.mrf.mxu1  ;;  %6742 = vmatprep.mubr.msk.f32.mxu0 %vm7063_vm3, %v8219_v38 }
0x14a9   : > { %6736 = vmatprep.subr.mxu0 %v8219_v38 }
0x14aa   : > { %6737 = vmatpush3.msra.mxu0 %v7500_v51  ;;  %v7818_v40 = vpop.f32.mrf.mxu1 }
0x14ab   : > { %6738 = vmatprep.subr.mxu0 %v8219_v38 }
0x14ac   : > { %6739 = vmatpush3.msra.mxu0 %v7507_v57  ;;  %v6733_v41 = vpop.f32.mrf.mxu1 }
0x14ad   : > { %6740 = vmatprep.subr.mxu0 %v8219_v38 }
0x14ae   : > { %6741 = vmatpush3.msra.mxu0 %v7514_v59 }
0x14af   : > { %6743 = vmatmul.mubr.msk.f32.vlgmr.msra.gmra.mxu0 %vm857_vm4, %v7693_v60  ;;  %6756 = vmatprep.subr.mxu0 %v8219_v38 }
0x14b0   : > { %6757 = vmatpush3.msra.mxu0 %v7540_v23  ;;  %6764 = vmatprep.mubr.msk.f32.mxu0 %vm7063_vm3, %v8219_v38 }
0x14b1   : > { %6758 = vmatprep.subr.mxu0 %v8219_v38 }
0x14b2   : > { %6759 = vmatpush3.msra.mxu0 %v7543_v25  ;;  %v3901_v43 = vpop.f32.mrf.mxu1 }
0x14b3   : > { %6760 = vmatprep.subr.mxu0 %v8219_v38  ;;  %v3902_v44 = vadd.f32 %v7525_v63, %v3901_v43 }
0x14b4   : > { %6761 = vmatpush3.msra.mxu0 %v7548_v28  ;;  %v6755_v45 = vpop.f32.mrf.mxu1 }
0x14b5   : > { %6762 = vmatprep.subr.mxu0 %v8219_v38  ;;  %6768 = vmatpush3.xpose.msk.msra.mxu1 %vm1097_vm5, %v3902_v44 }
0x14b6   : > { %6763 = vmatpush3.msra.mxu0 %v7553_v29  ;;  %6772 = vmatprep.subr.mxu1 %v8219_v38 }
0x14b7   : > { %6765 = vmatmul.mubr.msk.f32.vlgmr.msra.gmra.mxu0 %vm857_vm4, %v7693_v60  ;;  %6777 = vmatprep.subr.mxu0 %v8219_v38 }
0x14b8   : > { %6778 = vmatpush3.msra.mxu0 %v7571_v11  ;;  %6779 = vmatprep.mubr.msk.f32.mxu0 %vm7063_vm3, %v8219_v38 }
0x14b9   : > { %6793 = vmatprep.subr.mxu0 %v8219_v38 }
0x1567   : > { %v7846_v51 = vpop.f32.mrf.mxu0 }
0x1568   : > { %v3740_v54 = vadd.f32 %v7818_v40, %v7846_v51 }
0x1569   : > { %v6728_v57 = vpop.f32.mrf.mxu0 }
0x156f   : > { %v3820_v59 = vpop.f32.mrf.mxu0 }
0x1570   : > { %v3821_v23 = vadd.f32 %v7533_v9, %v3820_v59 }
0x1571   : > { %v6744_v25 = vpop.f32.mrf.mxu0 }
0x1572   : > { %6770 = vmatmul.mubr.msk.f32.vlgmr.msra.gmra.mxu1 %vm1097_vm5, %v3821_v23 }
0x1573   : > { %6774 = vmatprep.mubr.msk.f32.mxu1 %vm7063_vm3, %v8219_v38 }
0x1577   : > { %v3982_v9 = vpop.f32.mrf.mxu0 }
0x1578   : > { %v3983_v33 = vadd.f32 %v7566_v1, %v3982_v9  ;;  %v8225_v1 = vld [vmem:[#allocation11_spill] sm:$0xff] }
0x1579   : > { %v6766_v46 = vpop.f32.mrf.mxu0 }
0x157a   : > { %6773 = vmatpush3.msra.mxu1 %v3983_v33 }
0x157b   : > { %6782 = vmatprep.subr.mxu1 %v8219_v38 }
0x1632   : > { %v4058_v28 = vpop.f32.mrf.mxu1 }
0x1633   : > { %v4062_v63 = vsel %vm1097_vm5, %v4058_v28, -inf }
0x1634   : > { %4063 = vmax.xlane.f32.xlu0 %v4062_v63  ;;  %v6771_v29 = vpop.f32.mrf.mxu1 }
0x16bd   : > { %v4064_v11 = vpop.xlane.xlu0 %4063 }
0x16be   : > { %v4065_v20 = vsub.f32 %v4058_v28, %v4064_v11 }
0x16c0   : > { %v4066_v31 = vmul.f32 1.442695, %v4065_v20 }
0x16c2   : > { %6979 = vpow2.f32 %v4066_v31 }
0x16cf   : > { %v6980_v21 = vpop.eup %6979 }
0x16d0   : > { %v4068_v32 = vsel %vm1097_vm5, %v6980_v21, 0.0 }
0x16d1   : > { %4069 = vadd.xlane.f32.xlu1 %v4068_v32  ;;  %v4742_v32 = vsub.s32 2, %v7910_v62 }
0x175a   : > { %v4070_v47 = vpop.xlane.xlu1 %4069 }
0x175b   : > { %6981 = vrcp.f32 %v4070_v47  ;;  %v4743_v47 = vrot.slane %v7914_v12, %v4742_v32 }
0x1768   : > { %v6982_v48 = vpop.eup %6981 }
0x1769   : > { %v4072_v49 = vmul.f32 %v6982_v48, %v6980_v21  ;;  %v4736_v21 = vsub.s32 1, %v7910_v62 }
0x176b   : > { %6775 = vmatmul.mubr.msk.f32.vlgmr.msra.gmra.mxu1 %vm1097_vm5, %v4072_v49  ;;  %v4737_v9 = vrot.slane %v7914_v12, %v4736_v21 }
0x176c   : > { %6783 = vmatpush3.msra.mxu1 %v7579_v37  ;;  %6790 = vmatprep.mubr.msk.f32.mxu1 %vm7063_vm3, %v8219_v38  ;;  %v8227_v37 = vld [vmem:[#allocation19_spill] sm:$0xff] }
0x176d   : > { %6784 = vmatprep.subr.mxu1 %v8219_v38 }
0x176e   : > { %6785 = vmatpush3.msra.mxu1 %v8224_v24 }
0x176f   : > { %6786 = vmatprep.subr.mxu1 %v8219_v38 }
0x1770   : > { %6787 = vmatpush3.msra.mxu1 %v8225_v1 }
0x1771   : > { %6788 = vmatprep.subr.mxu1 %v8219_v38 }
0x1772   : > { %6789 = vmatpush3.msra.mxu1 %v8226_v26 }
0x1773   : > { %6791 = vmatmul.mubr.msk.f32.vlgmr.msra.gmra.mxu1 %vm857_vm4, %v7693_v60  ;;  %6804 = vmatprep.subr.mxu1 %v8219_v38 }
0x1774   : > { %6805 = vmatpush3.msra.mxu1 %v8227_v37  ;;  %6812 = vmatprep.mubr.msk.f32.mxu1 %vm7063_vm3, %v8219_v38 }
0x1775   : > { %6806 = vmatprep.subr.mxu1 %v8219_v38 }
0x1776   : > { %6807 = vmatpush3.msra.mxu1 %v8228_v3 }
0x1777   : > { %6808 = vmatprep.subr.mxu1 %v8219_v38 }
0x1778   : > { %6809 = vmatpush3.msra.mxu1 %v8229_v4 }
0x1779   : > { %6810 = vmatprep.subr.mxu1 %v8219_v38 }
0x177a   : > { %6811 = vmatpush3.msra.mxu1 %v8230_v5 }
0x177b   : > { %6813 = vmatmul.mubr.msk.f32.vlgmr.msra.gmra.mxu1 %vm857_vm4, %v7693_v60  ;;  %6825 = vmatprep.subr.mxu1 %v8219_v38 }
0x177c   : > { %6826 = vmatpush3.msra.mxu1 %v7678_v58  ;;  %6827 = vmatprep.mubr.msk.f32.mxu1 %vm7063_vm3, %v8219_v38  ;;  %v8234_v58 = vld [vmem:[#allocation16_spill] sm:$0xff] }
0x182b   : > { %v4142_v6 = vpop.f32.mrf.mxu1 }
0x182c   : > { %6780 = vmatmul.mubr.msk.f32.vlgmr.msra.gmra.mxu0 %vm1097_vm5, %v4142_v6 }
0x182d   : > { %6794 = vmatpush3.msra.mxu0 %v8231_v35  ;;  %v6776_v2 = vpop.f32.mrf.mxu1  ;;  %6801 = vmatprep.mubr.msk.f32.mxu0 %vm7063_vm3, %v8219_v38 }
0x182e   : > { %6795 = vmatprep.subr.mxu0 %v8219_v38 }
0x182f   : > { %6796 = vmatpush3.msra.mxu0 %v8232_v10 }
0x1830   : > { %6797 = vmatprep.subr.mxu0 %v8219_v38 }
0x1831   : > { %6798 = vmatpush3.msra.mxu0 %v8233_v42 }
0x1832   : > { %6799 = vmatprep.subr.mxu0 %v8219_v38 }
0x1833   : > { %6800 = vmatpush3.msra.mxu0 %v8234_v58  ;;  %v4298_v53 = vpop.f32.mrf.mxu1 }
0x1834   : > { %6802 = vmatmul.mubr.msk.f32.vlgmr.msra.gmra.mxu0 %vm857_vm4, %v7693_v60  ;;  %6815 = vmatprep.subr.mxu0 %v8219_v38  ;;  %v4299_v50 = vadd.f32 %v8236_v36, %v4298_v53 }
0x1835   : > { %6817 = vmatprep.mubr.msk.f32.mxu0 %vm7063_vm3, %v8219_v38  ;;  %v6792_v7 = vpop.f32.mrf.mxu1 }
0x1836   : > { %v4749_v7 = vld [vmem:[%s8237_s6 + $0x18] sm:$0xff] }
0x183b   : > { %v4460_v25 = vpop.f32.mrf.mxu1 }
0x183c   : > { %v4461_v28 = vadd.f32 %v7673_v17, %v4460_v25 }
0x183d   : > { %v6814_v63 = vpop.f32.mrf.mxu1 }
0x18ec   : > { %v4216_v52 = vpop.f32.mrf.mxu0 }
0x18ed   : > { %v7901_v13 = vadd.f32 %v4216_v52, %v3740_v54  ;;  %v4841_v54 = vld [vmem:[%s7218_s21 + $0x18] sm:$0xff]  ;;  %v4840_v52 = vld [vmem:[%s7218_s21 + $0x10] sm:$0xff] }
0x18ee   : > { %v6781_v55 = vpop.f32.mrf.mxu0  ;;  %6841 = vmatprep.subr.mxu1 %v4841_v54 }
0x18ef   : > { %v4839_v55 = vld [vmem:[%s7218_s21 + $0x8] sm:$0xff] }
0x18f4   : > { %v4379_v0 = vpop.f32.mrf.mxu0 }
0x18f5   : > { %v4380_v8 = vadd.f32 %v8235_v56, %v4379_v0  ;;  %v4746_v0 = vld [vmem:[%s8237_s6] sm:$0xff] }
0x18f6   : > { %v6803_v22 = vpop.f32.mrf.mxu0  ;;  %v4838_v56 = vld [vmem:[%s7218_s21] sm:$0xff] }
0x18f7   : > { %6816 = vmatpush3.xpose.msk.msra.mxu0 %vm1097_vm5, %v4380_v8 }
0x18f8   : > { %6820 = vmatprep.subr.mxu0 %v8219_v38 }
0x18fa   : > { %6818 = vmatmul.mubr.msk.f32.vlgmr.msra.gmra.mxu0 %vm1097_vm5, %v4299_v50 }
0x18fb   : > { %6822 = vmatprep.mubr.msk.f32.mxu0 %vm7063_vm3, %v8219_v38  ;;  %v4707_v38 = vsel %vm857_vm4, %v4705_v27, 0.0  ;;  %6821 = vmatpush3.msra.mxu0 %v4461_v28 }
0x18fc   : > { %6830 = vmatprep.subr.mxu0 %v4749_v7 }
0x19ba   : > { %v4536_v16 = vpop.f32.mrf.mxu0 }
0x19bb   : > { %v4540_v18 = vsel %vm1097_vm5, %v4536_v16, -inf }
0x19bc   : > { %4541 = vmax.xlane.f32.xlu0 %v4540_v18  ;;  %v6819_v39 = vpop.f32.mrf.mxu0  ;;  %v6209_v18 = vld [vmem:[%s7229_s17 + $0x30] sm:$0xff] }
0x19bd   : > { %v5149_v39 = vld [vmem:[%s7229_s17 + $0x8] sm:$0xff] }
0x19c0   : > { %4708 = vadd.xlane.f32.xlu0 %v4707_v38  ;;  %v6207_v38 = vld [vmem:[%s7229_s17 + $0x20] sm:$0xff] }
0x1a45   : > { %v4542_v40 = vpop.xlane.xlu0 %4541 }
0x1a46   : > { %v4543_v41 = vsub.f32 %v4536_v16, %v4542_v40  ;;  %v5151_v16 = vld [vmem:[%s7229_s17 + $0x18] sm:$0xff]  ;;  %v5148_v40 = vld [vmem:[%s7229_s17] sm:$0xff] }
0x1a48   : > { %v4544_v43 = vmul.f32 1.442695, %v4543_v41  ;;  %v7962_v41 = vld [vmem:[%s7234_s4 + $0x38] sm:$0xff] }
0x1a49   : > { %v4709_v44 = vpop.xlane.xlu0 %4708 }
0x1a4a   : > { %6983 = vpow2.f32 %v4544_v43  ;;  %v4714_v45 = vmul.f32 0.03125, %v4709_v44  ;;  %v6185_v43 = vld [vmem:[%s713_s19] ss:$0 sm:$0xff] }
0x1a4c   : > { %v4716_v51 = vsub.f32 %v4705_v27, %v4714_v45  ;;  %v6208_v27 = vld [vmem:[%s7229_s17 + $0x28] sm:$0xff]  ;;  %s8240_s17 = sld [smem:[#allocation26_spill]] (!%p6217_p6) }
0x1a4e   : > { %v4718_v57 = vmul.f32 %v4716_v51, %v4716_v51 }
0x1a50   : > { %v4720_v19 = vsel %vm857_vm4, %v4718_v57, 0.0 }
0x1a51   : > { %4721 = vadd.xlane.f32.xlu0 %v4720_v19 }
0x1a57   : > { %v6984_v59 = vpop.eup %6983 }
0x1a58   : > { %v4546_v23 = vsel %vm1097_vm5, %v6984_v59, 0.0 }
0x1a59   : > { %4547 = vadd.xlane.f32.xlu1 %v4546_v23 }
0x1ada   : > { %v4722_v29 = vpop.xlane.xlu0 %4721 }
0x1adb   : > { %v4726_v11 = vmul.f32 0.03125, %v4722_v29 }
0x1add   : > { %v4728_v20 = vadd.f32 1e-05, %v4726_v11 }
0x1adf   : > { %6985 = vrsqrt.f32 %v4728_v20 }
0x1ae2   : > { %v4548_v31 = vpop.xlane.xlu1 %4547 }
0x1ae3   : > { %6987 = vrcp.f32 %v4548_v31 }
0x1aec   : > { %v6986_v33 = vpop.eup %6985 }
0x1aed   : > { %v4732_v46 = vmul.f32 %v6986_v33, %v4716_v51 }
0x1aef   : > { %v4738_v48 = vmul.f32 %v4737_v9, %v4732_v46 }
0x1af0   : > { %v6988_v17 = vpop.eup %6987 }
0x1af1   : > { %v4550_v49 = vmul.f32 %v6988_v17, %v6984_v59  ;;  %v7927_v24 = vadd.f32 %v4743_v47, %v4738_v48 }
0x1af3   : > { %6823 = vmatmul.mubr.msk.f32.vlgmr.msra.gmra.mxu0 %vm1097_vm5, %v4550_v49  ;;  %v7064_v49 = vmov 683565275  }
0x1af4   : > { %6838 = vmatprep.mubr.msk.f32.mxu0 %vm857_vm4, %v7927_v24  ;;  %6831 = vmatpush3.msra.mxu0 %v4749_v7 }
0x1bb3   : > { %v4620_v1 = vpop.f32.mrf.mxu0 }
0x1bb4   : > { %6828 = vmatmul.mubr.msk.f32.vlgmr.msra.gmra.mxu1 %vm1097_vm5, %v4620_v1 }
0x1bb5   : > { %v6824_v26 = vpop.f32.mrf.mxu0  ;;  %6849 = vmatprep.mubr.msk.f32.mxu1 %vm857_vm4, %v7927_v24  ;;  %6842 = vmatpush3.msra.mxu1 %v4841_v54 }
0x1bb6   : > { %6843 = vmatprep.subr.mxu1 %v4840_v52 }
0x1bb7   : > { %6844 = vmatpush3.msra.mxu1 %v4840_v52 }
0x1bb8   : > { %6845 = vmatprep.subr.mxu1 %v4839_v55 }
0x1bb9   : > { %6846 = vmatpush3.msra.mxu1 %v4839_v55 }
0x1bba   : > { %6847 = vmatprep.subr.mxu1 %v4838_v56 }
0x1bbb   : > { %6848 = vmatpush3.msra.mxu1 %v4838_v56 }
0x1bbc   : > { %6863 = vmatprep.subr.mxu1 %v5151_v16 }
0x1c74   : > { %v4694_v37 = vpop.f32.mrf.mxu1 }
0x1c75   : > { %v4698_v3 = vadd.f32 %v4694_v37, %v7901_v13  ;;  %v4747_v13 = vld [vmem:[%s8237_s6 + $0x8] sm:$0xff]  ;;  %v7065_v37 = vmov 2475754826  }
0x1c76   : > { %v6829_v4 = vpop.f32.mrf.mxu1 }
0x1c77   : > { %v4704_v5 = vadd.f32 %v4702_v14, %v4698_v3  ;;  %v7066_v4 = vmov 2131351028  }
0x1c79   : > { %v4706_v6 = vadd.f32 %v4704_v5, %v7693_v60  ;;  %v4748_v60 = vld [vmem:[%s8237_s6 + $0x10] sm:$0xff] }
0x1c7a   : > { %6832 = vmatprep.subr.mxu0 %v4748_v60 }
0x1c7b   : > { %v4710_v35 = vsel %vm857_vm4, %v4706_v6, 0.0  ;;  %6833 = vmatpush3.msra.mxu0 %v4748_v60  ;;  %v7069_v60 = vmov 1326507024  }
0x1c7c   : > { %4711 = vadd.xlane.f32.xlu1 %v4710_v35  ;;  %6834 = vmatprep.subr.mxu0 %v4747_v13 }
0x1c7d   : > { %6835 = vmatpush3.msra.mxu0 %v4747_v13 }
0x1c7e   : > { %6836 = vmatprep.subr.mxu0 %v4746_v0 }
0x1c7f   : > { %6837 = vmatpush3.msra.mxu0 %v4746_v0 }
0x1c80   : > { %6852 = vmatprep.subr.mxu0 %v6210_v15 }
0x1d05   : > { %v4712_v2 = vpop.xlane.xlu1 %4711 }
0x1d06   : > { %v4715_v10 = vmul.f32 0.03125, %v4712_v2  ;;  %v7068_v2 = vmov 920167782  }
0x1d08   : > { %v4717_v42 = vsub.f32 %v4706_v6, %v4715_v10  ;;  %v7067_v6 = vmov 2102212464  }
0x1d0a   : > { %v4719_v58 = vmul.f32 %v4717_v42, %v4717_v42 }
0x1d0c   : > { %v4723_v53 = vsel %vm857_vm4, %v4719_v58, 0.0 }
0x1d0d   : > { %4724 = vadd.xlane.f32.xlu1 %v4723_v53 }
0x1d96   : > { %v4725_v8 = vpop.xlane.xlu1 %4724 }
0x1d97   : > { %v4727_v36 = vmul.f32 0.03125, %v4725_v8 }
0x1d99   : > { %v4729_v50 = vadd.f32 1e-05, %v4727_v36 }
0x1d9b   : > { %6989 = vrsqrt.f32 %v4729_v50 }
0x1da8   : > { %v6990_v22 = vpop.eup %6989 }
0x1da9   : > { %v4733_v61 = vmul.f32 %v6990_v22, %v4717_v42 }
0x1dab   : > { %v4739_v34 = vmul.f32 %v4737_v9, %v4733_v61 }
0x1dad   : > { %v7947_v14 = vadd.f32 %v4743_v47, %v4739_v34 }
0x1daf   : > { %6839 = vmatmul.mubr.msk.f32.vlgmr.msra.gmra.mxu0 %vm857_vm4, %v7947_v14  ;;  %6850 = vmatmul.mubr.msk.f32.vlgmr.msra.gmra.mxu1 %vm857_vm4, %v7947_v14 }
0x1db0   : > { %6853 = vmatpush3.msra.mxu0 %v6210_v15  ;;  %6864 = vmatpush3.msra.mxu1 %v5151_v16 }
0x1db1   : > { %6854 = vmatprep.subr.mxu0 %v6209_v18  ;;  %6865 = vmatprep.subr.mxu1 %v5150_v30 }
0x1db2   : > { %6855 = vmatpush3.msra.mxu0 %v6209_v18  ;;  %6866 = vmatpush3.msra.mxu1 %v5150_v30 }
0x1db3   : > { %6856 = vmatprep.subr.mxu0 %v6208_v27  ;;  %6867 = vmatprep.subr.mxu1 %v5149_v39 }
0x1db4   : > { %6857 = vmatpush3.msra.mxu0 %v6208_v27  ;;  %6868 = vmatpush3.msra.mxu1 %v5149_v39 }
0x1db5   : > { %6858 = vmatprep.subr.mxu0 %v6207_v38  ;;  %6869 = vmatprep.subr.mxu1 %v5148_v40 }
0x1db6   : > { %6859 = vmatpush3.msra.mxu0 %v6207_v38  ;;  %6870 = vmatpush3.msra.mxu1 %v5148_v40 }
0x1db7   : > { %6874 = vmatprep.subr.mxu0 %v7962_v41 }
0x1e6f   : > { %v6840_v44 = vpop.f32.mrf.mxu0 }
0x1e70   : > { %v7970_v45 = vadd.f32 %v6840_v44, %v6185_v43 }
0x1e71   : > { %v4829_v51 = vpop.f32.mrf.mxu0 }
0x1e72   : > { %v5045_v57 = vand.u32 2147483647, %v7970_v45  ;;  %v5048_v19 = vand.u32 2139095040, %v7970_v45  ;;  %v7974_v59 = vadd.f32 %v6185_v43, %v4829_v51  ;;  %vm5047_vm5 = vcmp.lt.s32.totalorder %v7970_v45, 0 }
0x1e74   : > { %v5049_v23 = vshrl.u32 %v5048_v19, 23  ;;  %v5052_v25 = vand.u32 8388607, %v5045_v57  ;;  %v4945_v28 = vand.u32 2139095040, %v7974_v59  ;;  %v4942_v29 = vand.u32 2147483647, %v7974_v59 }
0x1e76   : > { %v6195_v63 = vadd.s32 4294967169, %v5049_v23  ;;  %v4946_v11 = vshrl.u32 %v4945_v28, 23  ;;  %v5053_v31 = vor.u32 8388608, %v5052_v25  ;;  %v4949_v32 = vand.u32 8388607, %v4942_v29 }
0x1e78   : > { %v5055_v20 = vadd.s32 1, %v6195_v63  ;;  %v6191_v21 = vadd.s32 4294967169, %v4946_v11  ;;  %v7982_v48 = vshll.u32 %v5053_v31, 8  ;;  %v4950_v26 = vor.u32 8388608, %v4949_v32 }
0x1e7a   : > { %vm5056_vm6 = vcmp.gt.s32.totalorder %v5055_v20, 0  ;;  %v4952_v33 = vadd.s32 1, %v6191_v21  ;;  %v4990_v40 = vshll.u32 %v4950_v26, 8 }
0x1e7b   : > { %v5057_v9 = vsel %vm5056_vm6, %v5055_v20, 0  ;;  %vm8044_vm6 = vcmp.le.f32.partialorder %v5045_v57, 0.7853982 }
0x1e7c   : > { %v5058_v46 = vshrl.u32 %v5057_v9, 5  ;;  %v5059_v47 = vand.u32 31, %v5057_v9  ;;  %vm4953_vm7 = vcmp.gt.s32.totalorder %v4952_v33, 0 }
0x1e7d   : > { %v4954_v56 = vsel %vm4953_vm7, %v4952_v33, 0  ;;  %vm4944_vm7 = vcmp.lt.s32.totalorder %v7974_v59, 0 }
0x1e7e   : > { %v5060_v17 = vsub.s32 32, %v5059_v47  ;;  %v5062_v1 = vshll.u32 %v7064_v49, %v5059_v47  ;;  %v5065_v3 = vshll.u32 %v7065_v37, %v5059_v47  ;;  %v5068_v5 = vshll.u32 %v7066_v4, %v5059_v47 }
0x1e7f   : > { %v5071_v35 = vshll.u32 %v7067_v6, %v5059_v47  ;;  %v5074_v10 = vshll.u32 %v7068_v2, %v5059_v47  ;;  %vm5077_vm8 = vcmp.lt.s32.totalorder %v5058_v46, 1  ;;  %vm5079_vm9 = vcmp.lt.s32.totalorder %v5058_v46, 3 }
0x1e80   : > { %v5063_v42 = vshrl.u32 %v7065_v37, %v5060_v17  ;;  %v5066_v58 = vshrl.u32 %v7066_v4, %v5060_v17  ;;  %v5069_v53 = vshrl.u32 %v7067_v6, %v5060_v17  ;;  %v5061_v7 = vshrl.u32 %v7064_v49, %v5060_v17 }
0x1e81   : > { %v5072_v54 = vshrl.u32 %v7068_v2, %v5060_v17  ;;  %v5075_v52 = vshrl.u32 %v7069_v60, %v5060_v17  ;;  %vm5080_vm10 = vcmp.lt.s32.totalorder %v5058_v46, 4  ;;  %v4956_v50 = vand.u32 31, %v4954_v56 }
0x1e82   : > { %v5064_v13 = vor.u32 %v5063_v42, %v5062_v1  ;;  %v5067_v55 = vor.u32 %v5066_v58, %v5065_v3  ;;  %v5070_v0 = vor.u32 %v5069_v53, %v5068_v5  ;;  %vm5078_vm11 = vcmp.lt.s32.totalorder %v5058_v46, 2 }
0x1e83   : > { %v5073_v8 = vor.u32 %v5072_v54, %v5071_v35  ;;  %v5076_v36 = vor.u32 %v5075_v52, %v5074_v10  ;;  %v4957_v27 = vsub.s32 32, %v4956_v50  ;;  %v4955_v19 = vshrl.u32 %v4954_v56, 5 }
0x1e84   : > { %v5081_v22 = vsel %vm5077_vm8, %v5061_v7, %v5064_v13  ;;  %v5082_v61 = vsel %vm5080_vm10, %v5070_v0, 2102212464  ;;  %v5085_v34 = vsel %vm5077_vm8, %v5064_v13, %v5067_v55  ;;  %v5089_v15 = vsel %vm5077_vm8, %v5067_v55, %v5070_v0 }
0x1e85   : > { %v5083_v16 = vsel %vm5079_vm9, %v5067_v55, %v5082_v61  ;;  %v5086_v18 = vsel %vm5080_vm10, %v5073_v8, 920167782  ;;  %v5090_v30 = vsel %vm5080_vm10, %v5076_v36, 1326507024  ;;  %v4959_v11 = vshll.u32 %v7064_v49, %v4956_v50 }
0x1e86   : > { %v5087_v39 = vsel %vm5079_vm9, %v5070_v0, %v5086_v18  ;;  %v5091_v38 = vsel %vm5079_vm9, %v5073_v8, %v5090_v30  ;;  %v5084_v43 = vsel %vm5078_vm11, %v5081_v22, %v5083_v16  ;;  %v4960_v20 = vshrl.u32 %v7065_v37, %v4957_v27 }
0x1e87   : > { %v5088_v44 = vsel %vm5078_vm11, %v5085_v34, %v5087_v39  ;;  %v5092_v51 = vsel %vm5078_vm11, %v5089_v15, %v5091_v38  ;;  %v4962_v31 = vshll.u32 %v7065_v37, %v4956_v50  ;;  %v4963_v21 = vshrl.u32 %v7066_v4, %v4957_v27 }
0x1e88   : > { %v7994_v23 = vmul.u32.u64.low %v7982_v48, %v5092_v51  ;;  %v7995_v25 = vmul.u32.u64.high %v7982_v48, %v5092_v51, %v7994_v23  ;;  %v7998_v28 = vmul.u32.u64.low %v7982_v48, %v5088_v44  ;;  %v7999_v63 = vmul.u32.u64.high %v7982_v48, %v5088_v44, %v7998_v28 }
0x1e89   : > { %v4965_v32 = vshll.u32 %v7066_v4, %v4956_v50  ;;  %v4966_v9 = vshrl.u32 %v7067_v6, %v4957_v27  ;;  %v4968_v33 = vshll.u32 %v7067_v6, %v4956_v50  ;;  %v4969_v46 = vshrl.u32 %v7068_v2, %v4957_v27 }
0x1e8a   : > { %v4961_v47 = vor.u32 %v4960_v20, %v4959_v11  ;;  %v4964_v17 = vor.u32 %v4963_v21, %v4962_v31  ;;  %v4971_v1 = vshll.u32 %v7068_v2, %v4956_v50  ;;  %v4972_v26 = vshrl.u32 %v7069_v60, %v4957_v27 }
0x1e8b   : > { %v5100_v3 = vmul.u32 %v7982_v48, %v5084_v43  ;;  %vm5102_vm12 = vc.u32 %v7995_v25, %v7998_v28  ;;  %v5103_v5 = vadd.s32 1, %v7999_v63  ;;  %v4967_v35 = vor.u32 %v4966_v9, %v4965_v32  ;;  %v6851_v43 = vpop.f32.mrf.mxu1 }
0x1e8c   : > { %v4958_v10 = vshrl.u32 %v7064_v49, %v4957_v27  ;;  %v4970_v37 = vor.u32 %v4969_v46, %v4968_v33  ;;  %v4973_v42 = vor.u32 %v4972_v26, %v4971_v1  ;;  %vm4974_vm13 = vcmp.lt.s32.totalorder %v4955_v19, 1 }
0x1e8d   : > { %v5104_v4 = vsel %vm5102_vm12, %v5103_v5, %v7999_v63  ;;  %vm4976_vm14 = vcmp.lt.s32.totalorder %v4955_v19, 3  ;;  %vm4977_vm15 = vcmp.lt.s32.totalorder %v4955_v19, 4  ;;  %v4982_v6 = vsel %vm4974_vm13, %v4961_v47, %v4964_v17  ;;  %v4915_v11 = vpop.f32.mrf.mxu1 }
0x1e8e   : > { %v5105_v2 = vadd.s32 %v5104_v4, %v5100_v3  ;;  %v4979_v58 = vsel %vm4977_vm15, %v4967_v35, 2102212464  ;;  %v4983_v53 = vsel %vm4977_vm15, %v4970_v37, 920167782  ;;  %v4986_v48 = vsel %vm4974_vm13, %v4964_v17, %v4967_v35 }
0x1e8f   : > { %vm4975_vm0 = vcmp.lt.s32.totalorder %v4955_v19, 2  ;;  %v4978_v7 = vsel %vm4974_vm13, %v4958_v10, %v4961_v47  ;;  %v4984_v54 = vsel %vm4976_vm14, %v4967_v35, %v4983_v53  ;;  %v4987_v60 = vsel %vm4977_vm15, %v4973_v42, 1326507024 }
0x1e90   : > { %v5106_v52 = vadd.s32 536870912, %v5105_v2  ;;  %v4980_v13 = vsel %vm4976_vm14, %v4964_v17, %v4979_v58  ;;  %v4985_v55 = vsel %vm4975_vm0, %v4982_v6, %v4984_v54  ;;  %v4988_v49 = vsel %vm4976_vm14, %v4970_v37, %v4987_v60 }
0x1e91   : > { %v4989_v0 = vsel %vm4975_vm0, %v4986_v48, %v4988_v49  ;;  %v8009_v56 = vmul.u32.u64.low %v4990_v40, %v4985_v55  ;;  %v8010_v8 = vmul.u32.u64.high %v4990_v40, %v4985_v55, %v8009_v56  ;;  %v4981_v61 = vsel %vm4975_vm0, %v4978_v7, %v4980_v13 }
0x1e92   : > { %v8012_v36 = vshrl.u32 %v5106_v52, 30  ;;  %v8014_v50 = vmul.u32.u64.low %v4990_v40, %v4989_v0  ;;  %v8015_v22 = vmul.u32.u64.high %v4990_v40, %v4989_v0, %v8014_v50  ;;  %v4997_v18 = vmul.u32 %v4990_v40, %v4981_v61  ;;  %v6188_v40 = vld [vmem:[%s721_s27] ss:$0 sm:$0xff] }
0x1e93   : > { %v5000_v15 = vadd.s32 1, %v8010_v8  ;;  %v8029_v21 = vadd.f32 %v6188_v40, %v4915_v11  ;;  %v5101_v32 = vadd.s32 %v7998_v28, %v7995_v25  ;;  %v8038_v55 = vadd.f32 %v6851_v43, %v6188_v40 }
0x1e94   : > { %v5108_v34 = vshll.u32 %v8012_v36, 30  ;;  %vm4999_vm1 = vc.u32 %v8015_v22, %v8009_v56  ;;  %v4998_v58 = vadd.s32 %v8009_v56, %v8015_v22  ;;  %vm4943_vm8 = vcmp.le.f32.partialorder %v4942_v29, 0.7853982 }
0x1e95   : > { %v5001_v30 = vsel %vm4999_vm1, %v5000_v15, %v8010_v8  ;;  %v4926_v3 = vmul.f32 0.044715, %v8029_v21 }
0x1e96   : > { %v5109_v16 = vsub.s32 %v5105_v2, %v5108_v34  ;;  %v5002_v39 = vadd.s32 %v5001_v30, %v4997_v18  ;;  %v4927_v34 = vmul.f32 0.044715, %v8038_v55  ;;  %v5131_v30 = vsub.s32 4, %v8012_v36 }
0x1e97   : > { %v4928_v4 = vmul.f32 %v4926_v3, %v8029_v21 }
0x1e98   : > { %v5111_v27 = vsub.s32 0, %v5109_v16  ;;  %v5003_v44 = vadd.s32 536870912, %v5002_v39  ;;  %v5132_v43 = vsel %vm5047_vm5, %v5131_v30, %v8012_v36 }
0x1e99   : > { %v4930_v7 = vmul.f32 %v4928_v4, %v8029_v21  ;;  %v5134_v11 = vsel %vm8044_vm6, 0, %v5132_v43 }
0x1e9a   : > { %v6196_v38 = vmin.u32 %v5111_v27, %v5109_v16  ;;  %v8021_v19 = vshrl.u32 %v5003_v44, 30  ;;  %v4929_v27 = vmul.f32 %v4927_v34, %v8038_v55  ;;  %v5528_v34 = vld [vmem:[%s7234_s4 + $0x8] sm:$0xff] }
0x1e9b   : > { %v4932_v50 = vadd.f32 %v4930_v7, %v8029_v21 }
0x1e9c   : > { %v5113_v51 = vclz %v6196_v38  ;;  %v5005_v63 = vshll.u32 %v8021_v19, 30  ;;  %v5028_v38 = vsub.s32 4, %v8021_v19 }
0x1e9d   : > { %v4934_v18 = vmul.f32 0.7978846, %v4932_v50  ;;  %v5531_v50 = vld [vmem:[%s7234_s4 + $0x20] sm:$0xff] }
0x1e9e   : > { %v6197_v23 = vadd.s32 4294967294, %v5113_v51  ;;  %v5006_v20 = vsub.s32 %v5002_v39, %v5005_v63  ;;  %v4931_v51 = vmul.f32 %v4929_v27, %v8038_v55  ;;  %v5029_v63 = vsel %vm4944_vm7, %v5028_v38, %v8021_v19 }
0x1e9f   : > { %v5621_v27 = vsub.s32 3, %v7910_v62 }
0x1ea0   : > { %vm6198_vm2 = vcmp.lt.s32.totalorder %v6197_v23, 0  ;;  %v5008_v46 = vsub.s32 0, %v5006_v20  ;;  %v4933_v40 = vadd.f32 %v4931_v51, %v8038_v55 }
0x1ea1   : > { %v5116_v31 = vsel %vm6198_vm2, 0, %v6197_v23 }
0x1ea2   : > { %v5117_v9 = vsub.s32 32, %v5116_v31  ;;  %v5121_v33 = vsub.s32 4294967266, %v5116_v31  ;;  %v5118_v47 = vshll.u32 %v5109_v16, %v5116_v31  ;;  %v6192_v26 = vmin.u32 %v5008_v46, %v5006_v20 }
0x1ea3   : > { %v5349_v31 = vadd.s32 3, %v5134_v11 }
0x1ea4   : > { %v5119_v17 = vshrl.u32 %v5101_v32, %v5117_v9  ;;  %v5122_v1 = vadd.s32 127, %v5121_v33  ;;  %v5010_v10 = vclz %v6192_v26  ;;  %v4935_v9 = vmul.f32 0.7978846, %v4933_v40 }
0x1ea5   : > { %v5138_v33 = vand.u32 3, %v5134_v11  ;;  %v5350_v46 = vand.u32 3, %v5349_v31 }
0x1ea6   : > { %v5120_v5 = vor.u32 %v5119_v17, %v5118_v47  ;;  %v5123_v35 = vshll.u32 %v5122_v1, 23  ;;  %v6193_v42 = vadd.s32 4294967294, %v5010_v10 }
0x1ea7   : > { %vm5139_vm9 = vcmp.lt.s32.totalorder %v5138_v33, 2  ;;  %vm5351_vm10 = vcmp.lt.s32.totalorder %v5350_v46, 2  ;;  %vm5355_vm11 = vcmp.eq.s32.totalorder %v5350_v46, 2  ;;  %vm5140_vm12 = vcmp.eq.s32.totalorder %v5138_v33, 0 }
0x1ea8   : > { %v5124_v37 = vor.u32 4788187, %v5123_v35  ;;  %v5127_v2 = vcvt.s32.f32 %v5120_v5  ;;  %vm6194_vm3 = vcmp.lt.s32.totalorder %v6193_v42, 0  ;;  %vm5143_vm13 = vcmp.eq.s32.totalorder %v5138_v33, 2 }
0x1ea9   : > { %v5013_v25 = vsel %vm6194_vm3, 0, %v6193_v42  ;;  %vm5352_vm15 = vcmp.eq.s32.totalorder %v5350_v46, 0 }
0x1eaa   : > { %v5125_v6 = vand.u32 2147483647, %v5124_v37  ;;  %v5014_v53 = vsub.s32 32, %v5013_v25  ;;  %v5018_v48 = vsub.s32 4294967266, %v5013_v25  ;;  %v5015_v60 = vshll.u32 %v5006_v20, %v5013_v25 }
0x1eab   : > { %v5031_v20 = vsel %vm4943_vm8, 0, %v5029_v63 }
0x1eac   : > { %v5128_v28 = vmul.f32 %v5127_v2, %v5125_v6  ;;  %v5016_v52 = vshrl.u32 %v4998_v58, %v5014_v53  ;;  %v5019_v13 = vadd.s32 127, %v5018_v48  ;;  %v5245_v29 = vadd.s32 3, %v5031_v20 }
0x1ead   : > { %v5035_v47 = vand.u32 3, %v5031_v20 }
0x1eae   : > { %v5129_v54 = vxor.u32 2147483648, %v5128_v28  ;;  %v5017_v0 = vor.u32 %v5016_v52, %v5015_v60  ;;  %v5020_v8 = vshll.u32 %v5019_v13, 23  ;;  %v5246_v3 = vand.u32 3, %v5245_v29 }
0x1eaf   : > { %vm5036_vm14 = vcmp.lt.s32.totalorder %v5035_v47, 2  ;;  %vm5037_vm1 = vcmp.eq.s32.totalorder %v5035_v47, 0  ;;  %vm5040_vm2 = vcmp.eq.s32.totalorder %v5035_v47, 2  ;;  %v4924_v52 = vmul.f32 0.5, %v8029_v21 }
0x1eb0   : > { %v5130_v49 = vsel %vm5047_vm5, %v5129_v54, %v5128_v28  ;;  %v5021_v61 = vor.u32 4788187, %v5020_v8  ;;  %v5024_v16 = vcvt.s32.f32 %v5017_v0  ;;  %vm5251_vm0 = vcmp.eq.s32.totalorder %v5246_v3, 2 }
0x1eb1   : > { %v5133_v22 = vsel %vm8044_vm6, %v7970_v45, %v5130_v49  ;;  %vm5247_vm3 = vcmp.lt.s32.totalorder %v5246_v3, 2  ;;  %vm5248_vm5 = vcmp.eq.s32.totalorder %v5246_v3, 0  ;;  %vm5034_vm6 = vweird.f32 %v7974_v59 }
0x1eb2   : > { %v5022_v15 = vand.u32 2147483647, %v5021_v61  ;;  %6991 = vcosq.f32 %v5133_v22  ;;  %v5529_v61 = vld [vmem:[%s7234_s4 + $0x10] sm:$0xff] }
0x1eb3   : > { %6993 = vsinq.f32 %v5133_v22  ;;  %v5530_v22 = vld [vmem:[%s7234_s4 + $0x18] sm:$0xff] }
0x1eb4   : > { %v5025_v57 = vmul.f32 %v5024_v16, %v5022_v15  ;;  %6995 = vtanh.f32 %v4934_v18  ;;  %v4925_v16 = vmul.f32 0.5, %v8038_v55 }
0x1eb6   : > { %v5026_v39 = vxor.u32 2147483648, %v5025_v57 }
0x1eb8   : > { %v5027_v44 = vsel %vm4944_vm7, %v5026_v39, %v5025_v57  ;;  %vm5137_vm7 = vweird.f32 %v7970_v45  ;;  %v5532_v45 = vld [vmem:[%s7234_s4 + $0x28] sm:$0xff] }
0x1eb9   : > { %v5030_v23 = vsel %vm4943_vm8, %v7974_v59, %v5027_v44  ;;  %vm5535_vm8 = vcmask 523264   ;;  %v5533_v59 = vld [vmem:[%s7234_s4 + $0x30] sm:$0xff]  ;;  %v5622_v44 = vrot.slane %v7914_v12, %v5621_v27 }
0x1eba   : > { %6997 = vcosq.f32 %v5030_v23 }
0x1ebb   : > { %6999 = vsinq.f32 %v5030_v23 }
0x1ebc   : > { %7001 = vtanh.f32 %v4935_v9 }
0x1ebf   : > { %v6992_v36 = vpop.eup %6991 }
0x1ec0   : > { %v6994_v32 = vpop.eup %6993  ;;  %v5144_v17 = vxor.u32 2147483648, %v6992_v36 }
0x1ec1   : > { %v6996_v1 = vpop.eup %6995  ;;  %v5141_v26 = vxor.u32 2147483648, %v6994_v32 }
0x1ec2   : > { %v5357_v5 = vsel %vm5355_vm11, %v5144_v17, %v6994_v32  ;;  %v4938_v35 = vadd.f32 1.0, %v6996_v1  ;;  %v5145_v6 = vsel %vm5143_vm13, %v5144_v17, %v6994_v32 }
0x1ec3   : > { %v5354_v42 = vsel %vm5352_vm15, %v6992_v36, %v5141_v26  ;;  %v5142_v4 = vsel %vm5140_vm12, %v6992_v36, %v5141_v26 }
0x1ec4   : > { %v5358_v48 = vsel %vm5351_vm10, %v5354_v42, %v5357_v5  ;;  %v5146_v7 = vsel %vm5139_vm9, %v5142_v4, %v5145_v6  ;;  %v4940_v56 = vmul.f32 %v4938_v35, %v4924_v52  ;;  %v5655_v4 = vsub.s32 4, %v7910_v62 }
0x1ec5   : > { %v5359_v0 = vsel %vm5137_vm7, nan, %v5358_v48  ;;  %v5147_v8 = vsel %vm5137_vm7, nan, %v5146_v7  ;;  %v5661_v6 = vsub.s32 5, %v7910_v62 }
0x1ec7   : > { %v6998_v19 = vpop.eup %6997 }
0x1ec8   : > { %v7000_v10 = vpop.eup %6999  ;;  %v5041_v37 = vxor.u32 2147483648, %v6998_v19 }
0x1ec9   : > { %v5038_v2 = vxor.u32 2147483648, %v7000_v10  ;;  %v7002_v21 = vpop.eup %7001 }
0x1eca   : > { %v5253_v25 = vsel %vm5251_vm0, %v5041_v37, %v7000_v10  ;;  %v5042_v28 = vsel %vm5040_vm2, %v5041_v37, %v7000_v10  ;;  %v4939_v15 = vadd.f32 1.0, %v7002_v21 }
0x1ecb   : > { %v5250_v58 = vsel %vm5248_vm5, %v6998_v19, %v5038_v2  ;;  %v5039_v53 = vsel %vm5037_vm1, %v6998_v19, %v5038_v2  ;;  %v5656_v2 = vrot.slane %v7914_v12, %v5655_v4 }
0x1ecc   : > { %v5254_v54 = vsel %vm5247_vm3, %v5250_v58, %v5253_v25  ;;  %v5043_v60 = vsel %vm5036_vm14, %v5039_v53, %v5042_v28  ;;  %v4941_v18 = vmul.f32 %v4939_v15, %v4925_v16  ;;  %v5662_v28 = vrot.slane %v7914_v12, %v5661_v6 }
0x1ecd   : > { %v5255_v13 = vsel %vm5034_vm6, nan, %v5254_v54  ;;  %v5044_v49 = vsel %vm5034_vm6, nan, %v5043_v60 }
0x1ece   : > { %6860 = vmatprep.mubr.msk.f32.mxu0 %vm857_vm4, %v5255_v13  ;;  %6871 = vmatprep.mubr.msk.f32.mxu1 %vm857_vm4, %v5044_v49 }
0x1ecf   : > { %6861 = vmatmul.mubr.msk.f32.vlgmr.msra.gmra.mxu0 %vm857_vm4, %v5359_v0  ;;  %6872 = vmatmul.mubr.msk.f32.vlgmr.msra.gmra.mxu1 %vm857_vm4, %v5147_v8 }
0x1ed0   : > { %6875 = vmatpush3.msra.mxu0 %v7962_v41  ;;  %6890 = vmatprep.mubr.msk.f32.mxu0 %vm5535_vm8, %v4940_v56  ;;  %v5527_v41 = vld [vmem:[%s7234_s4] sm:$0xff] }
0x1ed1   : > { %6876 = vmatprep.subr.mxu0 %v5533_v59 }
0x1ed2   : > { %6877 = vmatpush3.msra.mxu0 %v5533_v59 }
0x1ed3   : > { %6878 = vmatprep.subr.mxu0 %v5532_v45 }
0x1ed4   : > { %6879 = vmatpush3.msra.mxu0 %v5532_v45 }
0x1ed5   : > { %6880 = vmatprep.subr.mxu0 %v5531_v50 }
0x1ed6   : > { %6881 = vmatpush3.msra.mxu0 %v5531_v50 }
0x1ed7   : > { %6882 = vmatprep.subr.mxu0 %v5530_v22 }
0x1ed8   : > { %6883 = vmatpush3.msra.mxu0 %v5530_v22 }
0x1ed9   : > { %6884 = vmatprep.subr.mxu0 %v5529_v61 }
0x1eda   : > { %6885 = vmatpush3.msra.mxu0 %v5529_v61 }
0x1edb   : > { %6886 = vmatprep.subr.mxu0 %v5528_v34 }
0x1edc   : > { %6887 = vmatpush3.msra.mxu0 %v5528_v34 }
0x1edd   : > { %6888 = vmatprep.subr.mxu0 %v5527_v41 }
0x1ede   : > { %6889 = vmatpush3.msra.mxu0 %v5527_v41 }
0x1edf   : > { %6891 = vmatmul.mubr.msk.f32.vlgmr.msra.gmra.mxu0 %vm5535_vm8, %v4941_v18 }
0x1f8f   : > { %v6862_v30 = vpop.f32.mrf.mxu0  ;;  %v6873_v57 = vpop.f32.mrf.mxu1 }
0x1f90   : > { %v5524_v43 = vadd.f32 %v6873_v57, %v6862_v30 }
0x1f91   : > { %v5437_v39 = vpop.f32.mrf.mxu0  ;;  %v5518_v38 = vpop.f32.mrf.mxu1 }
0x1f92   : > { %v5519_v23 = vadd.f32 %v5518_v38, %v5437_v39 }
0x1f9f   : > { %v6892_v51 = vpop.f32.mrf.mxu0 }
0x1fa0   : > { %v5618_v63 = vadd.f32 %v6892_v51, %v5524_v43 }
0x1fa1   : > { %v5608_v55 = vpop.f32.mrf.mxu0 }
0x1fa2   : > { %v5624_v11 = vadd.f32 %v5622_v44, %v5618_v63  ;;  %v5617_v40 = vadd.f32 %v5608_v55, %v5519_v23 }
0x1fa4   : > { %v5623_v20 = vadd.f32 %v5622_v44, %v5617_v40  ;;  %v5626_v31 = vadd.f32 %v5624_v11, %v7947_v14 }
0x1fa6   : > { %v5630_v36 = vsel %vm857_vm4, %v5626_v31, 0.0  ;;  %v5625_v32 = vadd.f32 %v5623_v20, %v7927_v24 }
0x1fa7   : > { %5631 = vadd.xlane.f32.xlu1 %v5630_v36 }
0x1fa8   : > { %v5627_v9 = vsel %vm857_vm4, %v5625_v32, 0.0 }
0x1fa9   : > { %5628 = vadd.xlane.f32.xlu0 %v5627_v9 }
0x2030   : > { %v5632_v29 = vpop.xlane.xlu1 %5631 }
0x2031   : > { %v5634_v33 = vmul.f32 0.03125, %v5632_v29 }
0x2032   : > { %v5629_v46 = vpop.xlane.xlu0 %5628 }
0x2033   : > { %v5636_v47 = vsub.f32 %v5626_v31, %v5634_v33  ;;  %v5633_v17 = vmul.f32 0.03125, %v5629_v46 }
0x2035   : > { %v5635_v1 = vsub.f32 %v5625_v32, %v5633_v17  ;;  %v5638_v26 = vmul.f32 %v5636_v47, %v5636_v47 }
0x2037   : > { %v5642_v3 = vsel %vm857_vm4, %v5638_v26, 0.0  ;;  %v5637_v19 = vmul.f32 %v5635_v1, %v5635_v1 }
0x2038   : > { %5643 = vadd.xlane.f32.xlu1 %v5642_v3 }
0x2039   : > { %v5639_v14 = vsel %vm857_vm4, %v5637_v19, 0.0 }
0x203a   : > { %5640 = vadd.xlane.f32.xlu0 %v5639_v14 }
0x20c1   : > { %v5644_v5 = vpop.xlane.xlu1 %5643 }
0x20c2   : > { %v5646_v24 = vmul.f32 0.03125, %v5644_v5 }
0x20c3   : > { %v5641_v35 = vpop.xlane.xlu0 %5640 }
0x20c4   : > { %v5648_v10 = vadd.f32 1e-05, %v5646_v24  ;;  %v5645_v37 = vmul.f32 0.03125, %v5641_v35 }
0x20c6   : > { %7003 = vrsqrt.f32 %v5648_v10  ;;  %v5647_v42 = vadd.f32 1e-05, %v5645_v37 }
0x20c8   : > { %7005 = vrsqrt.f32 %v5647_v42 }
0x20d3   : > { %v7004_v25 = vpop.eup %7003 }
0x20d4   : > { %v5652_v58 = vmul.f32 %v7004_v25, %v5636_v47 }
0x20d5   : > { %v7006_v53 = vpop.eup %7005 }
0x20d6   : > { %v5658_v48 = vmul.f32 %v5656_v2, %v5652_v58  ;;  %v5651_v7 = vmul.f32 %v7006_v53, %v5635_v1 }
0x20d8   : > { %v5664_v54 = vadd.f32 %v5662_v28, %v5658_v48  ;;  %v5657_v60 = vmul.f32 %v5656_v2, %v5651_v7  ;;  %5670 = sbr.rel (%p6217_p6) target bundleno = 8920 (0x22d8), region = 96 }
0x20da   : > { %5666 = vst.msk [vmem:[#allocation2 + $0x8] sm:$0xff] %vm857_vm4, %v5664_v54  ;;  %v5663_v52 = vadd.f32 %v5662_v28, %v5657_v60 }
0x20dc   : > { %5665 = vst.msk [vmem:[#allocation2] sm:$0xff] %vm857_vm4, %v5663_v52 }
0x20dd   : > { %v5672_v62 = vrot.slane %v5663_v52, 7  ;;  %v5675_v13 = vrot.slane %v5664_v54, 6  ;;  %vm5677_vm9 = vcmask 1040384   ;;  %vm5681_vm10 = vcmask 254976   ;;  %v5708_v21 = vld [vmem:[%s8240_s17 + $0x18] sm:$0xff]  ;;  %v5707_v22 = vld [vmem:[%s8240_s17 + $0x10] sm:$0xff] }
0x20de   : > { %v7070_v50 = vmov 0.0   ;;  %vm7071_vm11 = vmmov 0   ;;  %v5706_v61 = vld [vmem:[%s8240_s17 + $0x8] sm:$0xff]  ;;  %v5705_v34 = vld [vmem:[%s8240_s17] sm:$0xff]  ;;  %vm5789_vm12 = vcmask 58368  }
0x20df   : > { %v5678_v49 = vsel %vm5677_vm9, %v5672_v62, %v5675_v13  ;;  %6893 = vmatprep.subr.mxu0 %v7070_v50  ;;  %6901 = vmatprep.mubr.msk.f32.mxu0 %vm7071_vm11, %v7070_v50  ;;  %v6218_v30 = vld [vmem:[%s8241_s5] ss:$0 sm:$0xff]  ;;  %v6219_v27 = vld [vmem:[%s8241_s5 + $0x1] ss:$0 sm:$0xff] }
0x20e0   : > { %v5682_v12 = vsel %vm5681_vm10, %v5678_v49, 0.0  ;;  %6894 = vmatpush3.msra.mxu0 %v5708_v21  ;;  %v6220_v43 = vld [vmem:[%s8242_s20] ss:$0 sm:$0xff] }
0x20e1   : > { %5683 = vadd.xlane.f32.xlu0 %v5682_v12  ;;  %6895 = vmatprep.subr.mxu0 %v7070_v50 }
0x20e2   : > { %6896 = vmatpush3.msra.mxu0 %v5707_v22 }
0x20e3   : > { %6897 = vmatprep.subr.mxu0 %v7070_v50 }
0x20e4   : > { %6898 = vmatpush3.msra.mxu0 %v5706_v61 }
0x20e5   : > { %6899 = vmatprep.subr.mxu0 %v7070_v50 }
0x20e6   : > { %6900 = vmatpush3.msra.mxu0 %v5705_v34 }
0x216a   : > { %v5684_v0 = vpop.xlane.xlu0 %5683 }
0x216b   : > { %v5685_v8 = vmul.f32 0.03125, %v5684_v0 }
0x216d   : > { %v5686_v59 = vsub.f32 %v5678_v49, %v5685_v8 }
0x216f   : > { %v5687_v56 = vmul.f32 %v5686_v59, %v5686_v59 }
0x2171   : > { %v5688_v45 = vsel %vm5681_vm10, %v5687_v56, 0.0 }
0x2172   : > { %5689 = vadd.xlane.f32.xlu0 %v5688_v45 }
0x21fb   : > { %v5690_v15 = vpop.xlane.xlu0 %5689 }
0x21fc   : > { %v5691_v41 = vmul.f32 0.03125, %v5690_v15 }
0x21fe   : > { %v5692_v16 = vadd.f32 1e-05, %v5691_v41 }
0x2200   : > { %7008 = vrsqrt.f32 %v5692_v16 }
0x220d   : > { %v7009_v18 = vpop.eup %7008 }
0x220e   : > { %v5694_v57 = vmul.f32 %v7009_v18, %v5686_v59 }
0x2210   : > { %v5699_v39 = vmul.f32 %v6218_v30, %v5694_v57 }
0x2212   : > { %v5704_v38 = vadd.f32 %v6219_v27, %v5699_v39 }
0x2214   : > { %6902 = vmatmul.mubr.msk.f32.vlgmr.msra.gmra.mxu0 %vm857_vm4, %v5704_v38 }
0x22d4   : > { %v5785_v44 = vpop.f32.mrf.mxu0 }
0x22d5   : > { %v5786_v51 = vadd.f32 %v6220_v43, %v5785_v44 }
0x22d6   : > { %v6903_v23 = vpop.f32.mrf.mxu0 }
0x22d7   : > { %5790 = vst.msk [vmem:[#allocation3] sm:$0x3] %vm5789_vm12, %v5786_v51 }
0x22d8 PF: > { %s8243_s23 = sld [smem:[#allocation7_spill]]  ;;  %s7072_s29 = smov [#allocation3]  }
0x22d9   : > { %s5800_s27 = sshll.u32 %s7072_s29, 4  ;;  %s5801_s27 = int_to_ptr.vmem [resolvable:$true] %s5800_s27 }
0x22da   : > { %s7010_s24 = scalar_lea.vmem %s5801_s27, 32  ;;  %p7017_p11 = scmp.lt.s32.totalorder %s5801_s27, %s5801_s27 }
0x22db   : > { %p7011_p8 = scmp.ne.s32.totalorder %s5801_s27, %s7010_s24  ;;  %p7018_p12 = scmp.lt.s32.totalorder %s7010_s24, %s7010_s24 }
0x22dd   : > { %p7019_p13 = por %p7018_p12, %p7017_p11 }
0x22de   : > { %s8244_s19 = sadd.s32 4294967295, %s8243_s23  }
0x22df   : > { %p8128_p7 = scmp.eq.s32.totalorder %s8244_s19, 1 }
0x22e1   : > { %p7012_p9 = pnand %p7011_p8, %p8128_p7 }
0x22e3   : > { %p7013_p10 = pneg %p7012_p9 }
0x22e5   : > { %p7020_p0 = pnand %p7019_p13, %p7013_p10 }
0x22e7   : > { %7023 = shalt.err (!%p7020_p0)
}
0x22e8   : > { %s8246_s25 = sld [smem:[#allocation31_spill]] }
0x22ee   : > { %6915 = dma.vmem_to_hbm [thread:$0]  (%p8128_p7), %s5801_s27, 32, %s8246_s25, [#allocation4]  }
0x22ef   : > { %7047 = dma.done.wait (%p8128_p7), [#allocation4], 32  }
0x22f0   : > { %7049 = vsyncadd (%p8128_p7), [#allocation4], 4294967264 }
0x22f1 PF: > { %s8247_s28 = sld [smem:[#allocation7_spill]] }
0x22f2   : > { %s8248_s24 = sld [smem:[#allocation6_spill]] }
0x22f3   : > { %s8249_s25 = sld [smem:[#allocation8_spill]] }
0x22f7   : > { %s28_s26 = sadd.s32 1, %s8247_s28  }
0x22f8   : > { %p25_p1 = scmp.ge.s32.totalorder %s28_s26, 4  }
0x22fa   :  { %27 = sbr.rel (!%p25_p1) target bundleno = 12 (0xc), region = 180 }
0x22ff   :  { %5813 = vsyncpa [#allocation4], 1 }
0x2300   :  { %5815 = vsyncpa [#allocation4 + $0x1], 1 }

</bundles_post_ra>
